<compile_context>
chip_gen: v6e
topology: v6e:2x2x1
jax: 0.10.0
libtpu: 0.0.40
codegen_flags: <defaults>
</compile_context>

<pallas_src>
import functools

import jax
import jax.numpy as jnp
import numpy as np
from jax import lax
from jax.experimental import pallas as pl
from jax.experimental.pallas import tpu as pltpu

EPS = 1e-5
EXPANSION = 4
LANE = 128
SUBLANE = 8


# ----------------------------- Pallas kernels -------------------------------

def matmul_bn_kernel(x_ref, *rest, input_affine):
    """Tiled conv-as-matmul.

    Optionally applies the previous stage's BN affine + ReLU to the x tile
    (per input channel, i.e. per K column), runs the dot in bf16 on the MXU
    with an f32 accumulator, and at the last K step writes the raw output tile
    plus its per-channel [sum; sum_sq] slab (for this stage's training BN).
    """
    if input_affine:
        sc_ref, sh_ref, w_ref, y_ref, stats_ref, acc_ref = rest
    else:
        w_ref, y_ref, stats_ref, acc_ref = rest
    k = pl.program_id(2)

    @pl.when(k == 0)
    def _():
        acc_ref[...] = jnp.zeros_like(acc_ref)

    x = x_ref[...]
    if input_affine:
        x = jnp.maximum(x * sc_ref[...] + sh_ref[...], 0.0)
    acc_ref[...] += jnp.dot(x.astype(jnp.bfloat16), w_ref[...],
                            preferred_element_type=jnp.float32)

    @pl.when(k == pl.num_programs(2) - 1)
    def _():
        y = acc_ref[...]
        y_ref[...] = y
        # per-(M-tile, C-tile) stats slab; no concatenate, no cross-step accum.
        stats_ref[0:1, :] = jnp.sum(y, axis=0, keepdims=True)
        stats_ref[1:2, :] = jnp.sum(y * y, axis=0, keepdims=True)


def conv3x3_s1_kernel(x_ref, sc_ref, sh_ref, w_ref, y_ref, stats_ref,
                      xp_ref, acc_ref, *, H, W, C):
    """3x3 / stride-1 / pad-1 conv for one image.

    Fuses the previous stage's BN affine + ReLU onto the input, keeps the
    zero-padded activation in VMEM and accumulates 9 shifted-window matmuls
    (no im2col through HBM); emits this stage's BN [sum; sum_sq] slab.
    """
    a = jnp.maximum(x_ref[...] * sc_ref[...] + sh_ref[...], 0.0)   # (H, W, C)
    xp_ref[...] = jnp.zeros_like(xp_ref)
    xp_ref[1:H + 1, 1:W + 1, :] = a
    acc_ref[...] = jnp.zeros_like(acc_ref)
    for kh in range(3):
        for kw in range(3):
            t = kh * 3 + kw
            win = xp_ref[kh:kh + H, kw:kw + W, :]                  # (H, W, C)
            acc_ref[...] += jnp.dot(
                win.reshape(H * W, C).astype(jnp.bfloat16),
                w_ref[t * C:(t + 1) * C, :],
                preferred_element_type=jnp.float32)
    y = acc_ref[...]
    y_ref[...] = y
    stats_ref[0:1, :] = jnp.sum(y, axis=0, keepdims=True)
    stats_ref[1:2, :] = jnp.sum(y * y, axis=0, keepdims=True)


def residual_kernel(r_ref, rs_ref, rt_ref, s_ref, ss_ref, st_ref, o_ref):
    """Fused epilogue: affine(residual) + affine(shortcut) -> add -> ReLU."""
    r = r_ref[...] * rs_ref[...] + rt_ref[...]
    s = s_ref[...] * ss_ref[...] + st_ref[...]
    o_ref[...] = jnp.maximum(r + s, 0.0)


# --------------------------- tiling / VMEM budget ----------------------------

@functools.lru_cache(maxsize=None)
def _vmem_capacity():
    try:
        cap = getattr(pltpu.get_tpu_info(), "vmem_capacity_bytes", None)
        if cap:
            return int(cap)
    except Exception:
        pass
    return 64 * 1024 * 1024          # conservative default (v7x-sized)


def _vmem_limit_bytes():
    cap = _vmem_capacity()
    return int(min(max(cap * 3 // 4, 32 * 1024 * 1024), 128 * 1024 * 1024))


def _largest_tile(dim, cap, quantum):
    """Largest divisor of `dim` <= cap that is a multiple of `quantum`;
    falls back to the full extent (always legal, may be VMEM-hungry)."""
    cap = min(cap, dim)
    for t in range(cap, 0, -1):
        if dim % t == 0 and t % quantum == 0:
            return t
    return dim


def _matmul_tiles(m, kdim, c, x_bytes):
    budget = max(_vmem_capacity() // 6, 4 * 1024 * 1024)
    tn = _largest_tile(c, 512, LANE)
    tk = _largest_tile(kdim, 512, LANE)
    tm = _largest_tile(m, 1024, SUBLANE)

    def need(tm_):
        # double-buffered x / w / y blocks + f32 accumulator scratch
        return (2 * (tm_ * tk * x_bytes + tk * tn * 2 + tm_ * tn * 4)
                + tm_ * tn * 4)

    while need(tm) > budget:
        nxt = _largest_tile(m, tm // 2, SUBLANE)
        if nxt >= tm:
            break
        tm = nxt
    return tm, tk, tn


# ------------------------------ kernel wrappers ------------------------------

def conv_matmul(x2d, w2d, scale=None, shift=None):
    """y = act(x2d) @ w2d with act = relu(x*scale+shift) when scale is given.

    Returns the raw f32 output (m, c) and per-M-tile BN stats (m//tm, 2, c).
    """
    m, kdim = x2d.shape
    c = w2d.shape[1]
    tm, tk, tn = _matmul_tiles(m, kdim, c, x2d.dtype.itemsize)
    grid = (m // tm, c // tn, kdim // tk)
    fused = scale is not None

    in_specs = [pl.BlockSpec((tm, tk), lambda i, j, kk: (i, kk))]
    inputs = [x2d]
    if fused:
        in_specs += [pl.BlockSpec((1, tk), lambda i, j, kk: (0, kk)),
                     pl.BlockSpec((1, tk), lambda i, j, kk: (0, kk))]
        inputs += [scale.reshape(1, kdim), shift.reshape(1, kdim)]
    in_specs.append(pl.BlockSpec((tk, tn), lambda i, j, kk: (kk, j)))
    inputs.append(w2d)

    y, stats = pl.pallas_call(
        functools.partial(matmul_bn_kernel, input_affine=fused),
        out_shape=(jax.ShapeDtypeStruct((m, c), jnp.float32),
                   jax.ShapeDtypeStruct((m // tm, 2, c), jnp.float32)),
        grid_spec=pltpu.PrefetchScalarGridSpec(
            num_scalar_prefetch=0,
            grid=grid,
            in_specs=in_specs,
            out_specs=(pl.BlockSpec((tm, tn), lambda i, j, kk: (i, j)),
                       pl.BlockSpec((None, 2, tn), lambda i, j, kk: (i, 0, j))),
            scratch_shapes=[pltpu.VMEM((tm, tn), jnp.float32)]),
        compiler_params=pltpu.CompilerParams(
            dimension_semantics=("parallel", "parallel", "arbitrary"),
            vmem_limit_bytes=_vmem_limit_bytes()),
    )(*inputs)
    return y, stats


def conv3x3_fused(y1_img, scale, shift, w2d):
    """3x3 stride-1 pad-1 conv with the previous BN affine+ReLU fused in."""
    n, h, w, c = y1_img.shape
    co = w2d.shape[1]
    y2, stats = pl.pallas_call(
        functools.partial(conv3x3_s1_kernel, H=h, W=w, C=c),
        out_shape=(jax.ShapeDtypeStruct((n * h * w, co), jnp.float32),
                   jax.ShapeDtypeStruct((n, 2, co), jnp.float32)),
        grid_spec=pltpu.PrefetchScalarGridSpec(
            num_scalar_prefetch=0,
            grid=(n,),
            in_specs=[pl.BlockSpec((None, h, w, c), lambda b: (b, 0, 0, 0)),
                      pl.BlockSpec((1, c), lambda b: (0, 0)),
                      pl.BlockSpec((1, c), lambda b: (0, 0)),
                      pl.BlockSpec((9 * c, co), lambda b: (0, 0))],
            out_specs=(pl.BlockSpec((h * w, co), lambda b: (b, 0)),
                       pl.BlockSpec((None, 2, co), lambda b: (b, 0, 0))),
            scratch_shapes=[pltpu.VMEM((h + 2, w + 2, c), jnp.float32),
                            pltpu.VMEM((h * w, co), jnp.float32)]),
        compiler_params=pltpu.CompilerParams(
            dimension_semantics=("parallel",),
            vmem_limit_bytes=_vmem_limit_bytes()),
    )(y1_img, scale.reshape(1, c), shift.reshape(1, c), w2d)
    return y2, stats


def residual_epilogue(y3, s3, t3, y4, s4, t4):
    m, c = y3.shape
    tm = _largest_tile(m, 512, SUBLANE)
    tn = _largest_tile(c, 512, LANE)
    return pl.pallas_call(
        residual_kernel,
        out_shape=jax.ShapeDtypeStruct((m, c), jnp.float32),
        grid_spec=pltpu.PrefetchScalarGridSpec(
            num_scalar_prefetch=0,
            grid=(m // tm, c // tn),
            in_specs=[pl.BlockSpec((tm, tn), lambda i, j: (i, j)),
                      pl.BlockSpec((1, tn), lambda i, j: (0, j)),
                      pl.BlockSpec((1, tn), lambda i, j: (0, j)),
                      pl.BlockSpec((tm, tn), lambda i, j: (i, j)),
                      pl.BlockSpec((1, tn), lambda i, j: (0, j)),
                      pl.BlockSpec((1, tn), lambda i, j: (0, j))],
            out_specs=pl.BlockSpec((tm, tn), lambda i, j: (i, j))),
        compiler_params=pltpu.CompilerParams(
            dimension_semantics=("parallel", "parallel"),
            vmem_limit_bytes=_vmem_limit_bytes()),
    )(y3, s3.reshape(1, c), t3.reshape(1, c),
      y4, s4.reshape(1, c), t4.reshape(1, c))


# --------------------------- glue / host-side math ---------------------------

def _rup(x, m):
    return ((x + m - 1) // m) * m


def _pad_vec(v, cp, fill):
    return jnp.pad(v.astype(jnp.float32), (0, cp - v.shape[0]),
                   constant_values=fill)


def conv_w2d(w_oihw, k_pad, n_pad):
    """OIHW conv weight -> (KH*KW*k_pad, n_pad) bf16 matrix (tap-major kh,kw,ci)."""
    co, ci, kh, kw = w_oihw.shape
    w = jnp.transpose(w_oihw, (2, 3, 1, 0))                   # (kh, kw, ci, co)
    w = jnp.pad(w, ((0, 0), (0, 0), (0, k_pad - ci), (0, n_pad - co)))
    return w.reshape(kh * kw * k_pad, n_pad).astype(jnp.bfloat16)


def bn_scale_shift(stats, gamma, beta, count):
    """Training-mode BatchNorm2d: batch mean / biased var -> y*scale + shift."""
    s = jnp.sum(stats, axis=0)                                # (2, C)
    mean = s[0] / count
    # NOTE: single-pass E[y^2]-E[y]^2 in f32; adequate for conv outputs whose
    # mean is small vs. their std (true here). A two-pass / Welford variant
    # would be needed for extreme-mean activations.
    var = jnp.maximum(s[1] / count - mean * mean, 0.0)
    scale = gamma / jnp.sqrt(var + EPS)
    shift = beta - mean * scale
    return scale, shift


def im2col_3x3(x_nhwc, stride):
    """(N,H,W,C) -> (N*Ho*Wo, 9*C) patch matrix for a 3x3, pad=1 conv."""
    n, h, w, c = x_nhwc.shape
    ho = (h - 1) // stride + 1
    wo = (w - 1) // stride + 1
    xp = jnp.pad(x_nhwc, ((0, 0), (1, 1), (1, 1), (0, 0)))
    cols = []
    for kh in range(3):
        for kw in range(3):
            cols.append(xp[:, kh:kh + (ho - 1) * stride + 1:stride,
                           kw:kw + (wo - 1) * stride + 1:stride, :])
    patches = jnp.stack(cols, axis=3)                         # (N,Ho,Wo,9,C)
    return patches.reshape(n * ho * wo, 9 * c)


def bottleneck_forward(x_nchw, params, stride=1):
    n, cin, h, w = x_nchw.shape
    cmid = params["w1"].shape[0]
    cexp = params["w3"].shape[0]
    cp_in, cp_mid, cp_exp = _rup(cin, LANE), _rup(cmid, LANE), _rup(cexp, LANE)
    ho = (h - 1) // stride + 1
    wo = (w - 1) // stride + 1
    m1, m2 = n * h * w, n * ho * wo

    # NHWC, lane-dense (128-padded) channels, bf16 activations for the MXU.
    x = jnp.transpose(x_nchw, (0, 2, 3, 1)).astype(jnp.float32)
    x = jnp.pad(x, ((0, 0), (0, 0), (0, 0), (0, cp_in - cin))).astype(jnp.bfloat16)

    w1 = conv_w2d(params["w1"], cp_in, cp_mid)
    w2 = conv_w2d(params["w2"], cp_mid, cp_mid)
    w3 = conv_w2d(params["w3"], cp_mid, cp_exp)
    w4 = conv_w2d(params["w4"], cp_in, cp_exp)
    g1, b1 = _pad_vec(params["g1"], cp_mid, 1.0), _pad_vec(params["b1"], cp_mid, 0.0)
    g2, b2 = _pad_vec(params["g2"], cp_mid, 1.0), _pad_vec(params["b2"], cp_mid, 0.0)
    g3, b3 = _pad_vec(params["g3"], cp_exp, 1.0), _pad_vec(params["b3"], cp_exp, 0.0)
    g4, b4 = _pad_vec(params["g4"], cp_exp, 1.0), _pad_vec(params["b4"], cp_exp, 0.0)

    # ---- stage 1: 1x1 conv (raw output + fused BN stats) ----
    y1, st1 = conv_matmul(x.reshape(m1, cp_in), w1)
    s1, t1 = bn_scale_shift(st1, g1, b1, m1)

    # ---- stage 2: 3x3 conv, stride `stride`, pad 1 ----
    if stride == 1 and (h * w) % SUBLANE == 0:
        y2, st2 = conv3x3_fused(y1.reshape(n, h, w, cp_mid), s1, t1, w2)
    else:
        # TODO(synk): strided 3x3 falls back to an im2col matmul (affine+ReLU in
        # XLA); in-kernel shifted-window accumulation only covers stride=1.
        a1 = jnp.maximum(y1 * s1[None, :] + t1[None, :], 0.0).astype(jnp.bfloat16)
        y2, st2 = conv_matmul(im2col_3x3(a1.reshape(n, h, w, cp_mid), stride), w2)
    s2, t2 = bn_scale_shift(st2, g2, b2, m2)

    # ---- stage 3: 1x1 conv with fused input BN affine + ReLU ----
    y3, st3 = conv_matmul(y2, w3, scale=s2, shift=t2)
    s3, t3 = bn_scale_shift(st3, g3, b3, m2)

    # ---- shortcut: strided 1x1 conv + BN ----
    xs = x[:, ::stride, ::stride, :].reshape(m2, cp_in)
    y4, st4 = conv_matmul(xs, w4)
    s4, t4 = bn_scale_shift(st4, g4, b4, m2)

    # ---- fused epilogue: affine(r) + affine(s) -> add -> ReLU ----
    out = residual_epilogue(y3, s3, t3, y4, s4, t4)
    out = out.reshape(n, ho, wo, cp_exp)[..., :cexp]
    return jnp.transpose(out, (0, 3, 1, 2))


# --------------------------- pure-JAX reference -------------------------------
# Convs cast their operands to bf16 (mirroring the kernels' bf16 MXU inputs)
# while accumulating in f32; BatchNorm runs in training mode in f32.

def ref_forward(x_nchw, params, stride=1):
    x = jnp.transpose(x_nchw, (0, 2, 3, 1)).astype(jnp.float32)

    def conv(v, w_oihw, st, pad):
        v = v.astype(jnp.bfloat16).astype(jnp.float32)
        w = jnp.transpose(w_oihw, (2, 3, 1, 0)).astype(jnp.bfloat16).astype(jnp.float32)
        return lax.conv_general_dilated(
            v, w, (st, st), [(pad, pad), (pad, pad)],
            dimension_numbers=("NHWC", "HWIO", "NHWC"),
            precision=lax.Precision.HIGHEST)

    def bn(y, g, b):
        mean = jnp.mean(y, axis=(0, 1, 2))
        var = jnp.mean((y - mean) ** 2, axis=(0, 1, 2))
        return (y - mean) / jnp.sqrt(var + EPS) * g + b

    r = jax.nn.relu(bn(conv(x, params["w1"], 1, 0), params["g1"], params["b1"]))
    r = jax.nn.relu(bn(conv(r, params["w2"], stride, 1), params["g2"], params["b2"]))
    r = bn(conv(r, params["w3"], 1, 0), params["g3"], params["b3"])
    s = bn(conv(x, params["w4"], stride, 0), params["g4"], params["b4"])
    return jnp.transpose(jax.nn.relu(r + s), (0, 3, 1, 2))


# ---------------------------------- main --------------------------------------

def make_params(key, in_channels, out_channels):
    cexp = out_channels * EXPANSION
    ks = jax.random.split(key, 12)
    f32 = jnp.float32
    return {
        "w1": 0.3 * jax.random.normal(ks[0], (out_channels, in_channels, 1, 1), f32),
        "w2": 0.2 * jax.random.normal(ks[1], (out_channels, out_channels, 3, 3), f32),
        "w3": 0.3 * jax.random.normal(ks[2], (cexp, out_channels, 1, 1), f32),
        "w4": 0.3 * jax.random.normal(ks[3], (cexp, in_channels, 1, 1), f32),
        "g1": 1.0 + 0.1 * jax.random.normal(ks[4], (out_channels,), f32),
        "b1": 0.1 * jax.random.normal(ks[5], (out_channels,), f32),
        "g2": 1.0 + 0.1 * jax.random.normal(ks[6], (out_channels,), f32),
        "b2": 0.1 * jax.random.normal(ks[7], (out_channels,), f32),
        "g3": 1.0 + 0.1 * jax.random.normal(ks[8], (cexp,), f32),
        "b3": 0.1 * jax.random.normal(ks[9], (cexp,), f32),
        "g4": 1.0 + 0.1 * jax.random.normal(ks[10], (cexp,), f32),
        "b4": 0.1 * jax.random.normal(ks[11], (cexp,), f32),
    }


if __name__ == "__main__":
    kx1, kp1, kx2, kp2 = jax.random.split(jax.random.PRNGKey(0), 4)

    # --- config 1: stride-1 bottleneck, active 1x1 shortcut (Cin != Cout*4) ---
    N, Cin, H, W, Cout, stride = 2, 4, 16, 16, 4, 1
    x = jax.random.normal(kx1, (N, Cin, H, W), jnp.float32)
    params = make_params(kp1, Cin, Cout)
    fwd = jax.jit(functools.partial(bottleneck_forward, stride=stride))
    out = jax.block_until_ready(fwd(x, params))
    assert out.shape == (N, Cout * EXPANSION, H, W)
    ref = jax.block_until_ready(ref_forward(x, params, stride=stride))
    np.testing.assert_allclose(np.asarray(out), np.asarray(ref),
                               rtol=2e-3, atol=2e-3)

    # --- config 2: stride-2 downsampling block (strided / im2col path) ---
    N2, Cin2, H2, W2, Cout2, stride2 = 2, 16, 16, 16, 8, 2
    x2 = jax.random.normal(kx2, (N2, Cin2, H2, W2), jnp.float32)
    params2 = make_params(kp2, Cin2, Cout2)
    fwd2 = jax.jit(functools.partial(bottleneck_forward, stride=stride2))
    out2 = jax.block_until_ready(fwd2(x2, params2))
    assert out2.shape == (N2, Cout2 * EXPANSION, H2 // 2, W2 // 2)
    ref2 = jax.block_until_ready(ref_forward(x2, params2, stride=stride2))
    np.testing.assert_allclose(np.asarray(out2), np.asarray(ref2),
                               rtol=2e-3, atol=2e-3)

    print("KERNEL_OK")
</pallas_src>

<mosaic_0001>
module attributes {stable_mosaic.version = 11 : i64} {
  func.func @matmul_bn_kernel(%arg0: i32, %arg1: i32, %arg2: i32, %arg3: memref<512x128xbf16, #tpu.memory_space<vmem>>, %arg4: memref<128x128xbf16, #tpu.memory_space<vmem>>, %arg5: memref<512x128xf32, #tpu.memory_space<vmem>>, %arg6: memref<1x2x128xf32, #tpu.memory_space<vmem>>, %arg7: memref<512x128xf32, #tpu.memory_space<vmem>>) attributes {dimension_semantics = [#tpu.dimension_semantics<parallel>, #tpu.dimension_semantics<parallel>, #tpu.dimension_semantics<arbitrary>], iteration_bounds = array<i64: 1, 1, 1>, scalar_prefetch = 0 : i64, scratch_operands = 1 : i64, tpu.core_type = #tpu.core_type<tc>, window_params = [{transform_indices = @transform_0, window_bounds = array<i64: 512, 128>}, {transform_indices = @transform_1, window_bounds = array<i64: 128, 128>}, {transform_indices = @transform_2, window_bounds = array<i64: 512, 128>}, {transform_indices = @transform_3, window_bounds = array<i64: 1, 2, 128>}]} {
    %c0_i32 = arith.constant 0 : i32
    %0 = arith.cmpi eq, %arg2, %c0_i32 : i32
    %1 = arith.extui %0 : i1 to i32
    %c0_i32_0 = arith.constant 0 : i32
    %2 = arith.cmpi ne, %1, %c0_i32_0 : i32
    scf.if %2 {
      %cst_10 = arith.constant 0.000000e+00 : f32
      %12 = vector.broadcast %cst_10 : f32 to vector<512x128xf32>
      %c0_11 = arith.constant 0 : index
      %c0_12 = arith.constant 0 : index
      %13 = vector.load %arg7[%c0_11, %c0_12] : memref<512x128xf32, #tpu.memory_space<vmem>>, vector<512x128xf32>
      tpu.vector_store %arg7[%c0_11, %c0_12], %12 {strides = array<i32>} : memref<512x128xf32, #tpu.memory_space<vmem>>, vector<512x128xf32>,
    } else {
    }
    %c0 = arith.constant 0 : index
    %c0_1 = arith.constant 0 : index
    %3 = vector.load %arg3[%c0, %c0_1] : memref<512x128xbf16, #tpu.memory_space<vmem>>, vector<512x128xbf16>
    %c0_2 = arith.constant 0 : index
    %c0_3 = arith.constant 0 : index
    %4 = vector.load %arg7[%c0_2, %c0_3] : memref<512x128xf32, #tpu.memory_space<vmem>>, vector<512x128xf32>
    %c0_4 = arith.constant 0 : index
    %c0_5 = arith.constant 0 : index
    %5 = vector.load %arg4[%c0_4, %c0_5] : memref<128x128xbf16, #tpu.memory_space<vmem>>, vector<128x128xbf16>
    %cst = arith.constant dense<0.000000e+00> : vector<512x128xf32>
    %6 = tpu.matmul %3, %5, %cst {dimension_numbers = #tpu.dot_dimension_numbers<[1], [0], [0], [1], [0, 0, 1, 1], [], []>} : vector<512x128xbf16>, vector<128x128xbf16>, vector<512x128xf32> -> vector<512x128xf32>
    %7 = arith.addf %4, %6 : vector<512x128xf32>
    %c0_6 = arith.constant 0 : index
    %c0_7 = arith.constant 0 : index
    %8 = vector.load %arg7[%c0_6, %c0_7] : memref<512x128xf32, #tpu.memory_space<vmem>>, vector<512x128xf32>
    tpu.vector_store %arg7[%c0_6, %c0_7], %7 {strides = array<i32>} : memref<512x128xf32, #tpu.memory_space<vmem>>, vector<512x128xf32>,
    %c0_i32_8 = arith.constant 0 : i32
    %9 = arith.cmpi eq, %arg2, %c0_i32_8 : i32
    %10 = arith.extui %9 : i1 to i32
    %c0_i32_9 = arith.constant 0 : i32
    %11 = arith.cmpi ne, %10, %c0_i32_9 : i32
    scf.if %11 {
      %c0_10 = arith.constant 0 : index
      %c0_11 = arith.constant 0 : index
      %12 = vector.load %arg7[%c0_10, %c0_11] : memref<512x128xf32, #tpu.memory_space<vmem>>, vector<512x128xf32>
      %c0_12 = arith.constant 0 : index
      %c0_13 = arith.constant 0 : index
      %13 = vector.load %arg5[%c0_12, %c0_13] : memref<512x128xf32, #tpu.memory_space<vmem>>, vector<512x128xf32>
      tpu.vector_store %arg5[%c0_12, %c0_13], %12 {strides = array<i32>} : memref<512x128xf32, #tpu.memory_space<vmem>>, vector<512x128xf32>,
      %cst_14 = arith.constant dense<0.000000e+00> : vector<128xf32>
      %14 = vector.multi_reduction <add>, %12, %cst_14 [0] : vector<512x128xf32> to vector<128xf32>
      %15 = vector.shape_cast %14 : vector<128xf32> to vector<1x128xf32>
      %c0_15 = arith.constant 0 : index
      %c0_16 = arith.constant 0 : index
      %c0_17 = arith.constant 0 : index
      %16 = vector.load %arg6[%c0_15, %c0_16, %c0_17] : memref<1x2x128xf32, #tpu.memory_space<vmem>>, vector<1x1x128xf32>
      %17 = vector.shape_cast %16 : vector<1x1x128xf32> to vector<1x128xf32>
      %18 = vector.shape_cast %15 : vector<1x128xf32> to vector<1x1x128xf32>
      tpu.vector_store %arg6[%c0_15, %c0_16, %c0_17], %18 {strides = array<i32>} : memref<1x2x128xf32, #tpu.memory_space<vmem>>, vector<1x1x128xf32>,
      %19 = arith.mulf %12, %12 : vector<512x128xf32>
      %cst_18 = arith.constant dense<0.000000e+00> : vector<128xf32>
      %20 = vector.multi_reduction <add>, %19, %cst_18 [0] : vector<512x128xf32> to vector<128xf32>
      %21 = vector.shape_cast %20 : vector<128xf32> to vector<1x128xf32>
      %c0_19 = arith.constant 0 : index
      %c1 = arith.constant 1 : index
      %c0_20 = arith.constant 0 : index
      %22 = vector.load %arg6[%c0_19, %c1, %c0_20] : memref<1x2x128xf32, #tpu.memory_space<vmem>>, vector<1x1x128xf32>
      %23 = vector.shape_cast %22 : vector<1x1x128xf32> to vector<1x128xf32>
      %24 = vector.shape_cast %21 : vector<1x128xf32> to vector<1x1x128xf32>
      tpu.vector_store %arg6[%c0_19, %c1, %c0_20], %24 {strides = array<i32>} : memref<1x2x128xf32, #tpu.memory_space<vmem>>, vector<1x1x128xf32>,
    } else {
    }
    return
  }
  func.func @transform_0(%arg0: i32, %arg1: i32, %arg2: i32) -> (i32, i32) {
    %c0_i32 = arith.constant 0 : i32
    return %arg0, %arg2 : i32, i32
  }
  func.func @transform_1(%arg0: i32, %arg1: i32, %arg2: i32) -> (i32, i32) {
    %c0_i32 = arith.constant 0 : i32
    return %arg2, %arg1 : i32, i32
  }
  func.func @transform_2(%arg0: i32, %arg1: i32, %arg2: i32) -> (i32, i32) {
    %c0_i32 = arith.constant 0 : i32
    return %arg0, %arg1 : i32, i32
  }
  func.func @transform_3(%arg0: i32, %arg1: i32, %arg2: i32) -> (i32, i32, i32) {
    %c0_i32 = arith.constant 0 : i32
    %c0_i32_0 = arith.constant 0 : i32
    return %arg0, %c0_i32, %arg1 : i32, i32, i32
  }
}

module attributes {stable_mosaic.version = 11 : i64} {
  func.func @conv3x3_s1_kernel(%arg0: i32, %arg1: memref<1x16x16x128xf32, #tpu.memory_space<vmem>>, %arg2: memref<1x128xf32, #tpu.memory_space<vmem>>, %arg3: memref<1x128xf32, #tpu.memory_space<vmem>>, %arg4: memref<1152x128xbf16, #tpu.memory_space<vmem>>, %arg5: memref<256x128xf32, #tpu.memory_space<vmem>>, %arg6: memref<1x2x128xf32, #tpu.memory_space<vmem>>, %arg7: memref<18x18x128xf32, #tpu.memory_space<vmem>>, %arg8: memref<256x128xf32, #tpu.memory_space<vmem>>) attributes {dimension_semantics = [#tpu.dimension_semantics<parallel>], iteration_bounds = array<i64: 2>, scalar_prefetch = 0 : i64, scratch_operands = 2 : i64, tpu.core_type = #tpu.core_type<tc>, window_params = [{transform_indices = @transform_0, window_bounds = array<i64: 1, 16, 16, 128>}, {pipeline_mode = #tpu.pipeline_mode<synchronous>, transform_indices = @transform_1, window_bounds = array<i64: 1, 128>}, {pipeline_mode = #tpu.pipeline_mode<synchronous>, transform_indices = @transform_2, window_bounds = array<i64: 1, 128>}, {pipeline_mode = #tpu.pipeline_mode<synchronous>, transform_indices = @transform_3, window_bounds = array<i64: 1152, 128>}, {transform_indices = @transform_4, window_bounds = array<i64: 256, 128>}, {transform_indices = @transform_5, window_bounds = array<i64: 1, 2, 128>}]} {
    %c0 = arith.constant 0 : index
    %c0_0 = arith.constant 0 : index
    %c0_1 = arith.constant 0 : index
    %c0_2 = arith.constant 0 : index
    %0 = vector.load %arg1[%c0, %c0_0, %c0_1, %c0_2] : memref<1x16x16x128xf32, #tpu.memory_space<vmem>>, vector<1x16x16x128xf32>
    %1 = vector.shape_cast %0 : vector<1x16x16x128xf32> to vector<16x16x128xf32>
    %c0_3 = arith.constant 0 : index
    %c0_4 = arith.constant 0 : index
    %2 = vector.load %arg2[%c0_3, %c0_4] : memref<1x128xf32, #tpu.memory_space<vmem>>, vector<1x128xf32>
    %3 = vector.shape_cast %2 : vector<1x128xf32> to vector<1x1x128xf32>
    %4 = vector.broadcast %3 : vector<1x1x128xf32> to vector<16x16x128xf32>
    %5 = arith.mulf %1, %4 : vector<16x16x128xf32>
    %c0_5 = arith.constant 0 : index
    %c0_6 = arith.constant 0 : index
    %6 = vector.load %arg3[%c0_5, %c0_6] : memref<1x128xf32, #tpu.memory_space<vmem>>, vector<1x128xf32>
    %7 = vector.shape_cast %6 : vector<1x128xf32> to vector<1x1x128xf32>
    %8 = vector.broadcast %7 : vector<1x1x128xf32> to vector<16x16x128xf32>
    %9 = arith.addf %5, %8 : vector<16x16x128xf32>
    %cst = arith.constant 0.000000e+00 : f32
    %10 = vector.broadcast %cst : f32 to vector<16x16x128xf32>
    %11 = arith.maximumf %9, %10 : vector<16x16x128xf32>
    %cst_7 = arith.constant 0.000000e+00 : f32
    %12 = vector.broadcast %cst_7 : f32 to vector<18x18x128xf32>
    %c0_8 = arith.constant 0 : index
    %c0_9 = arith.constant 0 : index
    %c0_10 = arith.constant 0 : index
    %13 = vector.load %arg7[%c0_8, %c0_9, %c0_10] : memref<18x18x128xf32, #tpu.memory_space<vmem>>, vector<18x18x128xf32>
    tpu.vector_store %arg7[%c0_8, %c0_9, %c0_10], %12 {strides = array<i32>} : memref<18x18x128xf32, #tpu.memory_space<vmem>>, vector<18x18x128xf32>,
    %c1 = arith.constant 1 : index
    %c1_11 = arith.constant 1 : index
    %c0_12 = arith.constant 0 : index
    %14 = vector.load %arg7[%c1, %c1_11, %c0_12] : memref<18x18x128xf32, #tpu.memory_space<vmem>>, vector<16x16x128xf32>
    tpu.vector_store %arg7[%c1, %c1_11, %c0_12], %11 {strides = array<i32>} : memref<18x18x128xf32, #tpu.memory_space<vmem>>, vector<16x16x128xf32>,
    %cst_13 = arith.constant 0.000000e+00 : f32
    %15 = vector.broadcast %cst_13 : f32 to vector<256x128xf32>
    %c0_14 = arith.constant 0 : index
    %c0_15 = arith.constant 0 : index
    %16 = vector.load %arg8[%c0_14, %c0_15] : memref<256x128xf32, #tpu.memory_space<vmem>>, vector<256x128xf32>
    tpu.vector_store %arg8[%c0_14, %c0_15], %15 {strides = array<i32>} : memref<256x128xf32, #tpu.memory_space<vmem>>, vector<256x128xf32>,
    %c0_16 = arith.constant 0 : index
    %c0_17 = arith.constant 0 : index
    %c0_18 = arith.constant 0 : index
    %17 = vector.load %arg7[%c0_16, %c0_17, %c0_18] : memref<18x18x128xf32, #tpu.memory_space<vmem>>, vector<16x16x128xf32>
    %c0_19 = arith.constant 0 : index
    %c0_20 = arith.constant 0 : index
    %18 = vector.load %arg8[%c0_19, %c0_20] : memref<256x128xf32, #tpu.memory_space<vmem>>, vector<256x128xf32>
    %19 = vector.shape_cast %17 : vector<16x16x128xf32> to vector<256x128xf32>
    %20 = arith.truncf %19 : vector<256x128xf32> to vector<256x128xbf16>
    %c0_21 = arith.constant 0 : index
    %c0_22 = arith.constant 0 : index
    %21 = vector.load %arg4[%c0_21, %c0_22] : memref<1152x128xbf16, #tpu.memory_space<vmem>>, vector<128x128xbf16>
    %cst_23 = arith.constant dense<0.000000e+00> : vector<256x128xf32>
    %22 = tpu.matmul %20, %21, %cst_23 {dimension_numbers = #tpu.dot_dimension_numbers<[1], [0], [0], [1], [0, 0, 1, 1], [], []>} : vector<256x128xbf16>, vector<128x128xbf16>, vector<256x128xf32> -> vector<256x128xf32>
    %23 = arith.addf %18, %22 : vector<256x128xf32>
    %c0_24 = arith.constant 0 : index
    %c0_25 = arith.constant 0 : index
    %24 = vector.load %arg8[%c0_24, %c0_25] : memref<256x128xf32, #tpu.memory_space<vmem>>, vector<256x128xf32>
    tpu.vector_store %arg8[%c0_24, %c0_25], %23 {strides = array<i32>} : memref<256x128xf32, #tpu.memory_space<vmem>>, vector<256x128xf32>,
    %c0_26 = arith.constant 0 : index
    %c1_27 = arith.constant 1 : index
    %c0_28 = arith.constant 0 : index
    %25 = vector.load %arg7[%c0_26, %c1_27, %c0_28] : memref<18x18x128xf32, #tpu.memory_space<vmem>>, vector<16x16x128xf32>
    %c0_29 = arith.constant 0 : index
    %c0_30 = arith.constant 0 : index
    %26 = vector.load %arg8[%c0_29, %c0_30] : memref<256x128xf32, #tpu.memory_space<vmem>>, vector<256x128xf32>
    %27 = vector.shape_cast %25 : vector<16x16x128xf32> to vector<256x128xf32>
    %28 = arith.truncf %27 : vector<256x128xf32> to vector<256x128xbf16>
    %c128 = arith.constant 128 : index
    %c0_31 = arith.constant 0 : index
    %29 = vector.load %arg4[%c128, %c0_31] : memref<1152x128xbf16, #tpu.memory_space<vmem>>, vector<128x128xbf16>
    %cst_32 = arith.constant dense<0.000000e+00> : vector<256x128xf32>
    %30 = tpu.matmul %28, %29, %cst_32 {dimension_numbers = #tpu.dot_dimension_numbers<[1], [0], [0], [1], [0, 0, 1, 1], [], []>} : vector<256x128xbf16>, vector<128x128xbf16>, vector<256x128xf32> -> vector<256x128xf32>
    %31 = arith.addf %26, %30 : vector<256x128xf32>
    %c0_33 = arith.constant 0 : index
    %c0_34 = arith.constant 0 : index
    %32 = vector.load %arg8[%c0_33, %c0_34] : memref<256x128xf32, #tpu.memory_space<vmem>>, vector<256x128xf32>
    tpu.vector_store %arg8[%c0_33, %c0_34], %31 {strides = array<i32>} : memref<256x128xf32, #tpu.memory_space<vmem>>, vector<256x128xf32>,
    %c0_35 = arith.constant 0 : index
    %c2 = arith.constant 2 : index
    %c0_36 = arith.constant 0 : index
    %33 = vector.load %arg7[%c0_35, %c2, %c0_36] : memref<18x18x128xf32, #tpu.memory_space<vmem>>, vector<16x16x128xf32>
    %c0_37 = arith.constant 0 : index
    %c0_38 = arith.constant 0 : index
    %34 = vector.load %arg8[%c0_37, %c0_38] : memref<256x128xf32, #tpu.memory_space<vmem>>, vector<256x128xf32>
    %35 = vector.shape_cast %33 : vector<16x16x128xf32> to vector<256x128xf32>
    %36 = arith.truncf %35 : vector<256x128xf32> to vector<256x128xbf16>
    %c256 = arith.constant 256 : index
    %c0_39 = arith.constant 0 : index
    %37 = vector.load %arg4[%c256, %c0_39] : memref<1152x128xbf16, #tpu.memory_space<vmem>>, vector<128x128xbf16>
    %cst_40 = arith.constant dense<0.000000e+00> : vector<256x128xf32>
    %38 = tpu.matmul %36, %37, %cst_40 {dimension_numbers = #tpu.dot_dimension_numbers<[1], [0], [0], [1], [0, 0, 1, 1], [], []>} : vector<256x128xbf16>, vector<128x128xbf16>, vector<256x128xf32> -> vector<256x128xf32>
    %39 = arith.addf %34, %38 : vector<256x128xf32>
    %c0_41 = arith.constant 0 : index
    %c0_42 = arith.constant 0 : index
    %40 = vector.load %arg8[%c0_41, %c0_42] : memref<256x128xf32, #tpu.memory_space<vmem>>, vector<256x128xf32>
    tpu.vector_store %arg8[%c0_41, %c0_42], %39 {strides = array<i32>} : memref<256x128xf32, #tpu.memory_space<vmem>>, vector<256x128xf32>,
    %c1_43 = arith.constant 1 : index
    %c0_44 = arith.constant 0 : index
    %c0_45 = arith.constant 0 : index
    %41 = vector.load %arg7[%c1_43, %c0_44, %c0_45] : memref<18x18x128xf32, #tpu.memory_space<vmem>>, vector<16x16x128xf32>
    %c0_46 = arith.constant 0 : index
    %c0_47 = arith.constant 0 : index
    %42 = vector.load %arg8[%c0_46, %c0_47] : memref<256x128xf32, #tpu.memory_space<vmem>>, vector<256x128xf32>
    %43 = vector.shape_cast %41 : vector<16x16x128xf32> to vector<256x128xf32>
    %44 = arith.truncf %43 : vector<256x128xf32> to vector<256x128xbf16>
    %c384 = arith.constant 384 : index
    %c0_48 = arith.constant 0 : index
    %45 = vector.load %arg4[%c384, %c0_48] : memref<1152x128xbf16, #tpu.memory_space<vmem>>, vector<128x128xbf16>
    %cst_49 = arith.constant dense<0.000000e+00> : vector<256x128xf32>
    %46 = tpu.matmul %44, %45, %cst_49 {dimension_numbers = #tpu.dot_dimension_numbers<[1], [0], [0], [1], [0, 0, 1, 1], [], []>} : vector<256x128xbf16>, vector<128x128xbf16>, vector<256x128xf32> -> vector<256x128xf32>
    %47 = arith.addf %42, %46 : vector<256x128xf32>
    %c0_50 = arith.constant 0 : index
    %c0_51 = arith.constant 0 : index
    %48 = vector.load %arg8[%c0_50, %c0_51] : memref<256x128xf32, #tpu.memory_space<vmem>>, vector<256x128xf32>
    tpu.vector_store %arg8[%c0_50, %c0_51], %47 {strides = array<i32>} : memref<256x128xf32, #tpu.memory_space<vmem>>, vector<256x128xf32>,
    %c1_52 = arith.constant 1 : index
    %c1_53 = arith.constant 1 : index
    %c0_54 = arith.constant 0 : index
    %49 = vector.load %arg7[%c1_52, %c1_53, %c0_54] : memref<18x18x128xf32, #tpu.memory_space<vmem>>, vector<16x16x128xf32>
    %c0_55 = arith.constant 0 : index
    %c0_56 = arith.constant 0 : index
    %50 = vector.load %arg8[%c0_55, %c0_56] : memref<256x128xf32, #tpu.memory_space<vmem>>, vector<256x128xf32>
    %51 = vector.shape_cast %49 : vector<16x16x128xf32> to vector<256x128xf32>
    %52 = arith.truncf %51 : vector<256x128xf32> to vector<256x128xbf16>
    %c512 = arith.constant 512 : index
    %c0_57 = arith.constant 0 : index
    %53 = vector.load %arg4[%c512, %c0_57] : memref<1152x128xbf16, #tpu.memory_space<vmem>>, vector<128x128xbf16>
    %cst_58 = arith.constant dense<0.000000e+00> : vector<256x128xf32>
    %54 = tpu.matmul %52, %53, %cst_58 {dimension_numbers = #tpu.dot_dimension_numbers<[1], [0], [0], [1], [0, 0, 1, 1], [], []>} : vector<256x128xbf16>, vector<128x128xbf16>, vector<256x128xf32> -> vector<256x128xf32>
    %55 = arith.addf %50, %54 : vector<256x128xf32>
    %c0_59 = arith.constant 0 : index
    %c0_60 = arith.constant 0 : index
    %56 = vector.load %arg8[%c0_59, %c0_60] : memref<256x128xf32, #tpu.memory_space<vmem>>, vector<256x128xf32>
    tpu.vector_store %arg8[%c0_59, %c0_60], %55 {strides = array<i32>} : memref<256x128xf32, #tpu.memory_space<vmem>>, vector<256x128xf32>,
    %c1_61 = arith.constant 1 : index
    %c2_62 = arith.constant 2 : index
    %c0_63 = arith.constant 0 : index
    %57 = vector.load %arg7[%c1_61, %c2_62, %c0_63] : memref<18x18x128xf32, #tpu.memory_space<vmem>>, vector<16x16x128xf32>
    %c0_64 = arith.constant 0 : index
    %c0_65 = arith.constant 0 : index
    %58 = vector.load %arg8[%c0_64, %c0_65] : memref<256x128xf32, #tpu.memory_space<vmem>>, vector<256x128xf32>
    %59 = vector.shape_cast %57 : vector<16x16x128xf32> to vector<256x128xf32>
    %60 = arith.truncf %59 : vector<256x128xf32> to vector<256x128xbf16>
    %c640 = arith.constant 640 : index
    %c0_66 = arith.constant 0 : index
    %61 = vector.load %arg4[%c640, %c0_66] : memref<1152x128xbf16, #tpu.memory_space<vmem>>, vector<128x128xbf16>
    %cst_67 = arith.constant dense<0.000000e+00> : vector<256x128xf32>
    %62 = tpu.matmul %60, %61, %cst_67 {dimension_numbers = #tpu.dot_dimension_numbers<[1], [0], [0], [1], [0, 0, 1, 1], [], []>} : vector<256x128xbf16>, vector<128x128xbf16>, vector<256x128xf32> -> vector<256x128xf32>
    %63 = arith.addf %58, %62 : vector<256x128xf32>
    %c0_68 = arith.constant 0 : index
    %c0_69 = arith.constant 0 : index
    %64 = vector.load %arg8[%c0_68, %c0_69] : memref<256x128xf32, #tpu.memory_space<vmem>>, vector<256x128xf32>
    tpu.vector_store %arg8[%c0_68, %c0_69], %63 {strides = array<i32>} : memref<256x128xf32, #tpu.memory_space<vmem>>, vector<256x128xf32>,
    %c2_70 = arith.constant 2 : index
    %c0_71 = arith.constant 0 : index
    %c0_72 = arith.constant 0 : index
    %65 = vector.load %arg7[%c2_70, %c0_71, %c0_72] : memref<18x18x128xf32, #tpu.memory_space<vmem>>, vector<16x16x128xf32>
    %c0_73 = arith.constant 0 : index
    %c0_74 = arith.constant 0 : index
    %66 = vector.load %arg8[%c0_73, %c0_74] : memref<256x128xf32, #tpu.memory_space<vmem>>, vector<256x128xf32>
    %67 = vector.shape_cast %65 : vector<16x16x128xf32> to vector<256x128xf32>
    %68 = arith.truncf %67 : vector<256x128xf32> to vector<256x128xbf16>
    %c768 = arith.constant 768 : index
    %c0_75 = arith.constant 0 : index
    %69 = vector.load %arg4[%c768, %c0_75] : memref<1152x128xbf16, #tpu.memory_space<vmem>>, vector<128x128xbf16>
    %cst_76 = arith.constant dense<0.000000e+00> : vector<256x128xf32>
    %70 = tpu.matmul %68, %69, %cst_76 {dimension_numbers = #tpu.dot_dimension_numbers<[1], [0], [0], [1], [0, 0, 1, 1], [], []>} : vector<256x128xbf16>, vector<128x128xbf16>, vector<256x128xf32> -> vector<256x128xf32>
    %71 = arith.addf %66, %70 : vector<256x128xf32>
    %c0_77 = arith.constant 0 : index
    %c0_78 = arith.constant 0 : index
    %72 = vector.load %arg8[%c0_77, %c0_78] : memref<256x128xf32, #tpu.memory_space<vmem>>, vector<256x128xf32>
    tpu.vector_store %arg8[%c0_77, %c0_78], %71 {strides = array<i32>} : memref<256x128xf32, #tpu.memory_space<vmem>>, vector<256x128xf32>,
    %c2_79 = arith.constant 2 : index
    %c1_80 = arith.constant 1 : index
    %c0_81 = arith.constant 0 : index
    %73 = vector.load %arg7[%c2_79, %c1_80, %c0_81] : memref<18x18x128xf32, #tpu.memory_space<vmem>>, vector<16x16x128xf32>
    %c0_82 = arith.constant 0 : index
    %c0_83 = arith.constant 0 : index
    %74 = vector.load %arg8[%c0_82, %c0_83] : memref<256x128xf32, #tpu.memory_space<vmem>>, vector<256x128xf32>
    %75 = vector.shape_cast %73 : vector<16x16x128xf32> to vector<256x128xf32>
    %76 = arith.truncf %75 : vector<256x128xf32> to vector<256x128xbf16>
    %c896 = arith.constant 896 : index
    %c0_84 = arith.constant 0 : index
    %77 = vector.load %arg4[%c896, %c0_84] : memref<1152x128xbf16, #tpu.memory_space<vmem>>, vector<128x128xbf16>
    %cst_85 = arith.constant dense<0.000000e+00> : vector<256x128xf32>
    %78 = tpu.matmul %76, %77, %cst_85 {dimension_numbers = #tpu.dot_dimension_numbers<[1], [0], [0], [1], [0, 0, 1, 1], [], []>} : vector<256x128xbf16>, vector<128x128xbf16>, vector<256x128xf32> -> vector<256x128xf32>
    %79 = arith.addf %74, %78 : vector<256x128xf32>
    %c0_86 = arith.constant 0 : index
    %c0_87 = arith.constant 0 : index
    %80 = vector.load %arg8[%c0_86, %c0_87] : memref<256x128xf32, #tpu.memory_space<vmem>>, vector<256x128xf32>
    tpu.vector_store %arg8[%c0_86, %c0_87], %79 {strides = array<i32>} : memref<256x128xf32, #tpu.memory_space<vmem>>, vector<256x128xf32>,
    %c2_88 = arith.constant 2 : index
    %c2_89 = arith.constant 2 : index
    %c0_90 = arith.constant 0 : index
    %81 = vector.load %arg7[%c2_88, %c2_89, %c0_90] : memref<18x18x128xf32, #tpu.memory_space<vmem>>, vector<16x16x128xf32>
    %c0_91 = arith.constant 0 : index
    %c0_92 = arith.constant 0 : index
    %82 = vector.load %arg8[%c0_91, %c0_92] : memref<256x128xf32, #tpu.memory_space<vmem>>, vector<256x128xf32>
    %83 = vector.shape_cast %81 : vector<16x16x128xf32> to vector<256x128xf32>
    %84 = arith.truncf %83 : vector<256x128xf32> to vector<256x128xbf16>
    %c1024 = arith.constant 1024 : index
    %c0_93 = arith.constant 0 : index
    %85 = vector.load %arg4[%c1024, %c0_93] : memref<1152x128xbf16, #tpu.memory_space<vmem>>, vector<128x128xbf16>
    %cst_94 = arith.constant dense<0.000000e+00> : vector<256x128xf32>
    %86 = tpu.matmul %84, %85, %cst_94 {dimension_numbers = #tpu.dot_dimension_numbers<[1], [0], [0], [1], [0, 0, 1, 1], [], []>} : vector<256x128xbf16>, vector<128x128xbf16>, vector<256x128xf32> -> vector<256x128xf32>
    %87 = arith.addf %82, %86 : vector<256x128xf32>
    %c0_95 = arith.constant 0 : index
    %c0_96 = arith.constant 0 : index
    %88 = vector.load %arg8[%c0_95, %c0_96] : memref<256x128xf32, #tpu.memory_space<vmem>>, vector<256x128xf32>
    tpu.vector_store %arg8[%c0_95, %c0_96], %87 {strides = array<i32>} : memref<256x128xf32, #tpu.memory_space<vmem>>, vector<256x128xf32>,
    %c0_97 = arith.constant 0 : index
    %c0_98 = arith.constant 0 : index
    %89 = vector.load %arg8[%c0_97, %c0_98] : memref<256x128xf32, #tpu.memory_space<vmem>>, vector<256x128xf32>
    %c0_99 = arith.constant 0 : index
    %c0_100 = arith.constant 0 : index
    %90 = vector.load %arg5[%c0_99, %c0_100] : memref<256x128xf32, #tpu.memory_space<vmem>>, vector<256x128xf32>
    tpu.vector_store %arg5[%c0_99, %c0_100], %89 {strides = array<i32>} : memref<256x128xf32, #tpu.memory_space<vmem>>, vector<256x128xf32>,
    %cst_101 = arith.constant dense<0.000000e+00> : vector<128xf32>
    %91 = vector.multi_reduction <add>, %89, %cst_101 [0] : vector<256x128xf32> to vector<128xf32>
    %92 = vector.shape_cast %91 : vector<128xf32> to vector<1x128xf32>
    %c0_102 = arith.constant 0 : index
    %c0_103 = arith.constant 0 : index
    %c0_104 = arith.constant 0 : index
    %93 = vector.load %arg6[%c0_102, %c0_103, %c0_104] : memref<1x2x128xf32, #tpu.memory_space<vmem>>, vector<1x1x128xf32>
    %94 = vector.shape_cast %93 : vector<1x1x128xf32> to vector<1x128xf32>
    %95 = vector.shape_cast %92 : vector<1x128xf32> to vector<1x1x128xf32>
    tpu.vector_store %arg6[%c0_102, %c0_103, %c0_104], %95 {strides = array<i32>} : memref<1x2x128xf32, #tpu.memory_space<vmem>>, vector<1x1x128xf32>,
    %96 = arith.mulf %89, %89 : vector<256x128xf32>
    %cst_105 = arith.constant dense<0.000000e+00> : vector<128xf32>
    %97 = vector.multi_reduction <add>, %96, %cst_105 [0] : vector<256x128xf32> to vector<128xf32>
    %98 = vector.shape_cast %97 : vector<128xf32> to vector<1x128xf32>
    %c0_106 = arith.constant 0 : index
    %c1_107 = arith.constant 1 : index
    %c0_108 = arith.constant 0 : index
    %99 = vector.load %arg6[%c0_106, %c1_107, %c0_108] : memref<1x2x128xf32, #tpu.memory_space<vmem>>, vector<1x1x128xf32>
    %100 = vector.shape_cast %99 : vector<1x1x128xf32> to vector<1x128xf32>
    %101 = vector.shape_cast %98 : vector<1x128xf32> to vector<1x1x128xf32>
    tpu.vector_store %arg6[%c0_106, %c1_107, %c0_108], %101 {strides = array<i32>} : memref<1x2x128xf32, #tpu.memory_space<vmem>>, vector<1x1x128xf32>,
    return
  }
  func.func @transform_0(%arg0: i32) -> (i32, i32, i32, i32) {
    %c0_i32 = arith.constant 0 : i32
    %c0_i32_0 = arith.constant 0 : i32
    %c0_i32_1 = arith.constant 0 : i32
    %c0_i32_2 = arith.constant 0 : i32
    return %arg0, %c0_i32, %c0_i32_0, %c0_i32_1 : i32, i32, i32, i32
  }
  func.func @transform_1(%arg0: i32) -> (i32, i32) {
    %c0_i32 = arith.constant 0 : i32
    %c0_i32_0 = arith.constant 0 : i32
    %c0_i32_1 = arith.constant 0 : i32
    return %c0_i32, %c0_i32_0 : i32, i32
  }
  func.func @transform_2(%arg0: i32) -> (i32, i32) {
    %c0_i32 = arith.constant 0 : i32
    %c0_i32_0 = arith.constant 0 : i32
    %c0_i32_1 = arith.constant 0 : i32
    return %c0_i32, %c0_i32_0 : i32, i32
  }
  func.func @transform_3(%arg0: i32) -> (i32, i32) {
    %c0_i32 = arith.constant 0 : i32
    %c0_i32_0 = arith.constant 0 : i32
    %c0_i32_1 = arith.constant 0 : i32
    return %c0_i32, %c0_i32_0 : i32, i32
  }
  func.func @transform_4(%arg0: i32) -> (i32, i32) {
    %c0_i32 = arith.constant 0 : i32
    %c0_i32_0 = arith.constant 0 : i32
    return %arg0, %c0_i32 : i32, i32
  }
  func.func @transform_5(%arg0: i32) -> (i32, i32, i32) {
    %c0_i32 = arith.constant 0 : i32
    %c0_i32_0 = arith.constant 0 : i32
    %c0_i32_1 = arith.constant 0 : i32
    return %arg0, %c0_i32, %c0_i32_0 : i32, i32, i32
  }
}

module attributes {stable_mosaic.version = 11 : i64} {
  func.func @matmul_bn_kernel(%arg0: i32, %arg1: i32, %arg2: i32, %arg3: memref<512x128xf32, #tpu.memory_space<vmem>>, %arg4: memref<1x128xf32, #tpu.memory_space<vmem>>, %arg5: memref<1x128xf32, #tpu.memory_space<vmem>>, %arg6: memref<128x128xbf16, #tpu.memory_space<vmem>>, %arg7: memref<512x128xf32, #tpu.memory_space<vmem>>, %arg8: memref<1x2x128xf32, #tpu.memory_space<vmem>>, %arg9: memref<512x128xf32, #tpu.memory_space<vmem>>) attributes {dimension_semantics = [#tpu.dimension_semantics<parallel>, #tpu.dimension_semantics<parallel>, #tpu.dimension_semantics<arbitrary>], iteration_bounds = array<i64: 1, 1, 1>, scalar_prefetch = 0 : i64, scratch_operands = 1 : i64, tpu.core_type = #tpu.core_type<tc>, window_params = [{transform_indices = @transform_0, window_bounds = array<i64: 512, 128>}, {transform_indices = @transform_1, window_bounds = array<i64: 1, 128>}, {transform_indices = @transform_2, window_bounds = array<i64: 1, 128>}, {transform_indices = @transform_3, window_bounds = array<i64: 128, 128>}, {transform_indices = @transform_4, window_bounds = array<i64: 512, 128>}, {transform_indices = @transform_5, window_bounds = array<i64: 1, 2, 128>}]} {
    %c0_i32 = arith.constant 0 : i32
    %0 = arith.cmpi eq, %arg2, %c0_i32 : i32
    %1 = arith.extui %0 : i1 to i32
    %c0_i32_0 = arith.constant 0 : i32
    %2 = arith.cmpi ne, %1, %c0_i32_0 : i32
    scf.if %2 {
      %cst_15 = arith.constant 0.000000e+00 : f32
      %21 = vector.broadcast %cst_15 : f32 to vector<512x128xf32>
      %c0_16 = arith.constant 0 : index
      %c0_17 = arith.constant 0 : index
      %22 = vector.load %arg9[%c0_16, %c0_17] : memref<512x128xf32, #tpu.memory_space<vmem>>, vector<512x128xf32>
      tpu.vector_store %arg9[%c0_16, %c0_17], %21 {strides = array<i32>} : memref<512x128xf32, #tpu.memory_space<vmem>>, vector<512x128xf32>,
    } else {
    }
    %c0 = arith.constant 0 : index
    %c0_1 = arith.constant 0 : index
    %3 = vector.load %arg3[%c0, %c0_1] : memref<512x128xf32, #tpu.memory_space<vmem>>, vector<512x128xf32>
    %c0_2 = arith.constant 0 : index
    %c0_3 = arith.constant 0 : index
    %4 = vector.load %arg4[%c0_2, %c0_3] : memref<1x128xf32, #tpu.memory_space<vmem>>, vector<1x128xf32>
    %5 = vector.broadcast %4 : vector<1x128xf32> to vector<512x128xf32>
    %6 = arith.mulf %3, %5 : vector<512x128xf32>
    %c0_4 = arith.constant 0 : index
    %c0_5 = arith.constant 0 : index
    %7 = vector.load %arg5[%c0_4, %c0_5] : memref<1x128xf32, #tpu.memory_space<vmem>>, vector<1x128xf32>
    %8 = vector.broadcast %7 : vector<1x128xf32> to vector<512x128xf32>
    %9 = arith.addf %6, %8 : vector<512x128xf32>
    %cst = arith.constant 0.000000e+00 : f32
    %10 = vector.broadcast %cst : f32 to vector<512x128xf32>
    %11 = arith.maximumf %9, %10 : vector<512x128xf32>
    %c0_6 = arith.constant 0 : index
    %c0_7 = arith.constant 0 : index
    %12 = vector.load %arg9[%c0_6, %c0_7] : memref<512x128xf32, #tpu.memory_space<vmem>>, vector<512x128xf32>
    %13 = arith.truncf %11 : vector<512x128xf32> to vector<512x128xbf16>
    %c0_8 = arith.constant 0 : index
    %c0_9 = arith.constant 0 : index
    %14 = vector.load %arg6[%c0_8, %c0_9] : memref<128x128xbf16, #tpu.memory_space<vmem>>, vector<128x128xbf16>
    %cst_10 = arith.constant dense<0.000000e+00> : vector<512x128xf32>
    %15 = tpu.matmul %13, %14, %cst_10 {dimension_numbers = #tpu.dot_dimension_numbers<[1], [0], [0], [1], [0, 0, 1, 1], [], []>} : vector<512x128xbf16>, vector<128x128xbf16>, vector<512x128xf32> -> vector<512x128xf32>
    %16 = arith.addf %12, %15 : vector<512x128xf32>
    %c0_11 = arith.constant 0 : index
    %c0_12 = arith.constant 0 : index
    %17 = vector.load %arg9[%c0_11, %c0_12] : memref<512x128xf32, #tpu.memory_space<vmem>>, vector<512x128xf32>
    tpu.vector_store %arg9[%c0_11, %c0_12], %16 {strides = array<i32>} : memref<512x128xf32, #tpu.memory_space<vmem>>, vector<512x128xf32>,
    %c0_i32_13 = arith.constant 0 : i32
    %18 = arith.cmpi eq, %arg2, %c0_i32_13 : i32
    %19 = arith.extui %18 : i1 to i32
    %c0_i32_14 = arith.constant 0 : i32
    %20 = arith.cmpi ne, %19, %c0_i32_14 : i32
    scf.if %20 {
      %c0_15 = arith.constant 0 : index
      %c0_16 = arith.constant 0 : index
      %21 = vector.load %arg9[%c0_15, %c0_16] : memref<512x128xf32, #tpu.memory_space<vmem>>, vector<512x128xf32>
      %c0_17 = arith.constant 0 : index
      %c0_18 = arith.constant 0 : index
      %22 = vector.load %arg7[%c0_17, %c0_18] : memref<512x128xf32, #tpu.memory_space<vmem>>, vector<512x128xf32>
      tpu.vector_store %arg7[%c0_17, %c0_18], %21 {strides = array<i32>} : memref<512x128xf32, #tpu.memory_space<vmem>>, vector<512x128xf32>,
      %cst_19 = arith.constant dense<0.000000e+00> : vector<128xf32>
      %23 = vector.multi_reduction <add>, %21, %cst_19 [0] : vector<512x128xf32> to vector<128xf32>
      %24 = vector.shape_cast %23 : vector<128xf32> to vector<1x128xf32>
      %c0_20 = arith.constant 0 : index
      %c0_21 = arith.constant 0 : index
      %c0_22 = arith.constant 0 : index
      %25 = vector.load %arg8[%c0_20, %c0_21, %c0_22] : memref<1x2x128xf32, #tpu.memory_space<vmem>>, vector<1x1x128xf32>
      %26 = vector.shape_cast %25 : vector<1x1x128xf32> to vector<1x128xf32>
      %27 = vector.shape_cast %24 : vector<1x128xf32> to vector<1x1x128xf32>
      tpu.vector_store %arg8[%c0_20, %c0_21, %c0_22], %27 {strides = array<i32>} : memref<1x2x128xf32, #tpu.memory_space<vmem>>, vector<1x1x128xf32>,
      %28 = arith.mulf %21, %21 : vector<512x128xf32>
      %cst_23 = arith.constant dense<0.000000e+00> : vector<128xf32>
      %29 = vector.multi_reduction <add>, %28, %cst_23 [0] : vector<512x128xf32> to vector<128xf32>
      %30 = vector.shape_cast %29 : vector<128xf32> to vector<1x128xf32>
      %c0_24 = arith.constant 0 : index
      %c1 = arith.constant 1 : index
      %c0_25 = arith.constant 0 : index
      %31 = vector.load %arg8[%c0_24, %c1, %c0_25] : memref<1x2x128xf32, #tpu.memory_space<vmem>>, vector<1x1x128xf32>
      %32 = vector.shape_cast %31 : vector<1x1x128xf32> to vector<1x128xf32>
      %33 = vector.shape_cast %30 : vector<1x128xf32> to vector<1x1x128xf32>
      tpu.vector_store %arg8[%c0_24, %c1, %c0_25], %33 {strides = array<i32>} : memref<1x2x128xf32, #tpu.memory_space<vmem>>, vector<1x1x128xf32>,
    } else {
    }
    return
  }
  func.func @transform_0(%arg0: i32, %arg1: i32, %arg2: i32) -> (i32, i32) {
    %c0_i32 = arith.constant 0 : i32
    return %arg0, %arg2 : i32, i32
  }
  func.func @transform_1(%arg0: i32, %arg1: i32, %arg2: i32) -> (i32, i32) {
    %c0_i32 = arith.constant 0 : i32
    %c0_i32_0 = arith.constant 0 : i32
    return %c0_i32, %arg2 : i32, i32
  }
  func.func @transform_2(%arg0: i32, %arg1: i32, %arg2: i32) -> (i32, i32) {
    %c0_i32 = arith.constant 0 : i32
    %c0_i32_0 = arith.constant 0 : i32
    return %c0_i32, %arg2 : i32, i32
  }
  func.func @transform_3(%arg0: i32, %arg1: i32, %arg2: i32) -> (i32, i32) {
    %c0_i32 = arith.constant 0 : i32
    return %arg2, %arg1 : i32, i32
  }
  func.func @transform_4(%arg0: i32, %arg1: i32, %arg2: i32) -> (i32, i32) {
    %c0_i32 = arith.constant 0 : i32
    return %arg0, %arg1 : i32, i32
  }
  func.func @transform_5(%arg0: i32, %arg1: i32, %arg2: i32) -> (i32, i32, i32) {
    %c0_i32 = arith.constant 0 : i32
    %c0_i32_0 = arith.constant 0 : i32
    return %arg0, %c0_i32, %arg1 : i32, i32, i32
  }
}

module attributes {stable_mosaic.version = 11 : i64} {
  func.func @residual_kernel(%arg0: i32, %arg1: i32, %arg2: memref<512x128xf32, #tpu.memory_space<vmem>>, %arg3: memref<1x128xf32, #tpu.memory_space<vmem>>, %arg4: memref<1x128xf32, #tpu.memory_space<vmem>>, %arg5: memref<512x128xf32, #tpu.memory_space<vmem>>, %arg6: memref<1x128xf32, #tpu.memory_space<vmem>>, %arg7: memref<1x128xf32, #tpu.memory_space<vmem>>, %arg8: memref<512x128xf32, #tpu.memory_space<vmem>>) attributes {dimension_semantics = [#tpu.dimension_semantics<parallel>, #tpu.dimension_semantics<parallel>], iteration_bounds = array<i64: 1, 1>, scalar_prefetch = 0 : i64, scratch_operands = 0 : i64, tpu.core_type = #tpu.core_type<tc>, window_params = [{transform_indices = @transform_0, window_bounds = array<i64: 512, 128>}, {transform_indices = @transform_1, window_bounds = array<i64: 1, 128>}, {transform_indices = @transform_2, window_bounds = array<i64: 1, 128>}, {transform_indices = @transform_3, window_bounds = array<i64: 512, 128>}, {transform_indices = @transform_4, window_bounds = array<i64: 1, 128>}, {transform_indices = @transform_5, window_bounds = array<i64: 1, 128>}, {transform_indices = @transform_6, window_bounds = array<i64: 512, 128>}]} {
    %c0 = arith.constant 0 : index
    %c0_0 = arith.constant 0 : index
    %0 = vector.load %arg2[%c0, %c0_0] : memref<512x128xf32, #tpu.memory_space<vmem>>, vector<512x128xf32>
    %c0_1 = arith.constant 0 : index
    %c0_2 = arith.constant 0 : index
    %1 = vector.load %arg3[%c0_1, %c0_2] : memref<1x128xf32, #tpu.memory_space<vmem>>, vector<1x128xf32>
    %2 = vector.broadcast %1 : vector<1x128xf32> to vector<512x128xf32>
    %3 = arith.mulf %0, %2 : vector<512x128xf32>
    %c0_3 = arith.constant 0 : index
    %c0_4 = arith.constant 0 : index
    %4 = vector.load %arg4[%c0_3, %c0_4] : memref<1x128xf32, #tpu.memory_space<vmem>>, vector<1x128xf32>
    %5 = vector.broadcast %4 : vector<1x128xf32> to vector<512x128xf32>
    %6 = arith.addf %3, %5 : vector<512x128xf32>
    %c0_5 = arith.constant 0 : index
    %c0_6 = arith.constant 0 : index
    %7 = vector.load %arg5[%c0_5, %c0_6] : memref<512x128xf32, #tpu.memory_space<vmem>>, vector<512x128xf32>
    %c0_7 = arith.constant 0 : index
    %c0_8 = arith.constant 0 : index
    %8 = vector.load %arg6[%c0_7, %c0_8] : memref<1x128xf32, #tpu.memory_space<vmem>>, vector<1x128xf32>
    %9 = vector.broadcast %8 : vector<1x128xf32> to vector<512x128xf32>
    %10 = arith.mulf %7, %9 : vector<512x128xf32>
    %c0_9 = arith.constant 0 : index
    %c0_10 = arith.constant 0 : index
    %11 = vector.load %arg7[%c0_9, %c0_10] : memref<1x128xf32, #tpu.memory_space<vmem>>, vector<1x128xf32>
    %12 = vector.broadcast %11 : vector<1x128xf32> to vector<512x128xf32>
    %13 = arith.addf %10, %12 : vector<512x128xf32>
    %14 = arith.addf %6, %13 : vector<512x128xf32>
    %cst = arith.constant 0.000000e+00 : f32
    %15 = vector.broadcast %cst : f32 to vector<512x128xf32>
    %16 = arith.maximumf %14, %15 : vector<512x128xf32>
    %c0_11 = arith.constant 0 : index
    %c0_12 = arith.constant 0 : index
    %17 = vector.load %arg8[%c0_11, %c0_12] : memref<512x128xf32, #tpu.memory_space<vmem>>, vector<512x128xf32>
    tpu.vector_store %arg8[%c0_11, %c0_12], %16 {strides = array<i32>} : memref<512x128xf32, #tpu.memory_space<vmem>>, vector<512x128xf32>,
    return
  }
  func.func @transform_0(%arg0: i32, %arg1: i32) -> (i32, i32) {
    %c0_i32 = arith.constant 0 : i32
    return %arg0, %arg1 : i32, i32
  }
  func.func @transform_1(%arg0: i32, %arg1: i32) -> (i32, i32) {
    %c0_i32 = arith.constant 0 : i32
    %c0_i32_0 = arith.constant 0 : i32
    return %c0_i32, %arg1 : i32, i32
  }
  func.func @transform_2(%arg0: i32, %arg1: i32) -> (i32, i32) {
    %c0_i32 = arith.constant 0 : i32
    %c0_i32_0 = arith.constant 0 : i32
    return %c0_i32, %arg1 : i32, i32
  }
  func.func @transform_3(%arg0: i32, %arg1: i32) -> (i32, i32) {
    %c0_i32 = arith.constant 0 : i32
    return %arg0, %arg1 : i32, i32
  }
  func.func @transform_4(%arg0: i32, %arg1: i32) -> (i32, i32) {
    %c0_i32 = arith.constant 0 : i32
    %c0_i32_0 = arith.constant 0 : i32
    return %c0_i32, %arg1 : i32, i32
  }
  func.func @transform_5(%arg0: i32, %arg1: i32) -> (i32, i32) {
    %c0_i32 = arith.constant 0 : i32
    %c0_i32_0 = arith.constant 0 : i32
    return %c0_i32, %arg1 : i32, i32
  }
  func.func @transform_6(%arg0: i32, %arg1: i32) -> (i32, i32) {
    %c0_i32 = arith.constant 0 : i32
    return %arg0, %arg1 : i32, i32
  }
}

</mosaic_0001>

<bundles_post_ra>
// kernel: bottleneck_forward.5
= control target key start
LH: loop header
LB: loop body
LE: loop exit
PB: predicated region body
PF: predicated region fallthrough
CT: control target
= control target key end

     0   :  { %s1972_s1 = inlined_call_operand.vmem [shape: bf16[128,128], index: 1, kind: input, shape index: {}]   ;;  %s1973_s0 = inlined_call_operand.vmem [shape: bf16[512,128], index: 0, kind: input, shape index: {}]   ;;  %s1974_s2 = inlined_call_operand.vmem [shape: f32[512,128], index: 2, kind: output, shape index: {0}]   ;;  %s1975_s3 = inlined_call_operand.vmem [shape: f32[1,2,128], index: 3, kind: output, shape index: {1}]  }
   0x1   :  { %v1402_v0 = vld [vmem:[%s1972_s1 + $0x38] sm:$0xff]   ;;  %v1403_v1 = vld [vmem:[%s1972_s1 + $0x30] sm:$0xff]   ;;  %v1404_v2 = vld [vmem:[%s1972_s1 + $0x28] sm:$0xff]  }
   0x2   :  { %1306 = vmatprep.subr.bf16.mxu0 %v1402_v0  ;;  %1386 = vmatprep.subr.bf16.mxu1 %v1402_v0  ;;  %v1405_v3 = vld [vmem:[%s1972_s1 + $0x20] sm:$0xff]   ;;  %v1406_v5 = vld [vmem:[%s1972_s1 + $0x18] sm:$0xff]   ;;  %v1407_v6 = vld [vmem:[%s1972_s1 + $0x10] sm:$0xff]  }
   0x3   :  { %1307 = vmatpush3.bf16.msra.mxu0 %v1402_v0  ;;  %1394 = vmatpush3.bf16.msra.mxu1 %v1402_v0  ;;  %v1410_v4 = vld [vmem:[%s1973_s0] sm:$0xff]   ;;  %v1408_v7 = vld [vmem:[%s1972_s1 + $0x8] sm:$0xff]   ;;  %v1412_v11 = vld [vmem:[%s1973_s0 + $0x10] sm:$0xff]  }
   0x4   :  { %1308 = vmatprep.subr.bf16.mxu0 %v1403_v1  ;;  %1387 = vmatprep.subr.bf16.mxu1 %v1403_v1  ;;  %v1409_v8 = vld [vmem:[%s1972_s1] sm:$0xff]   ;;  %v1411_v10 = vld [vmem:[%s1973_s0 + $0x8] sm:$0xff]   ;;  %v1428_v13 = vld [vmem:[%s1973_s0 + $0x90] sm:$0xff]  }
   0x5   :  { %1322 = vmatprep.mubr.bf16.mxu0 %v1410_v4  ;;  %v1426_v9 = vld [vmem:[%s1973_s0 + $0x80] sm:$0xff]   ;;  %v1427_v12 = vld [vmem:[%s1973_s0 + $0x88] sm:$0xff]   ;;  %v1413_v14 = vld [vmem:[%s1973_s0 + $0x18] sm:$0xff]  }
   0x6   :  { %1354 = vmatprep.mubr.bf16.mxu1 %v1426_v9  ;;  %v1414_v15 = vld [vmem:[%s1973_s0 + $0x20] sm:$0xff]   ;;  %v1429_v16 = vld [vmem:[%s1973_s0 + $0x98] sm:$0xff]   ;;  %v1415_v18 = vld [vmem:[%s1973_s0 + $0x28] sm:$0xff]  }
   0x7   :  { %1309 = vmatpush3.bf16.msra.mxu0 %v1403_v1  ;;  %1395 = vmatpush3.bf16.msra.mxu1 %v1403_v1  ;;  %v1430_v17 = vld [vmem:[%s1973_s0 + $0xa0] sm:$0xff]   ;;  %v1431_v19 = vld [vmem:[%s1973_s0 + $0xa8] sm:$0xff]   ;;  %v1416_v20 = vld [vmem:[%s1973_s0 + $0x30] sm:$0xff]  }
   0x8   :  { %1310 = vmatprep.subr.bf16.mxu0 %v1404_v2  ;;  %1388 = vmatprep.subr.bf16.mxu1 %v1404_v2  ;;  %v1432_v21 = vld [vmem:[%s1973_s0 + $0xb0] sm:$0xff]   ;;  %v1417_v22 = vld [vmem:[%s1973_s0 + $0x38] sm:$0xff]   ;;  %v1418_v24 = vld [vmem:[%s1973_s0 + $0x40] sm:$0xff]  }
   0x9   :  { %v1433_v23 = vld [vmem:[%s1973_s0 + $0xb8] sm:$0xff]   ;;  %v1434_v25 = vld [vmem:[%s1973_s0 + $0xc0] sm:$0xff]   ;;  %v1419_v26 = vld [vmem:[%s1973_s0 + $0x48] sm:$0xff]  }
   0xa   :  { %v1435_v27 = vld [vmem:[%s1973_s0 + $0xc8] sm:$0xff]   ;;  %v1420_v28 = vld [vmem:[%s1973_s0 + $0x50] sm:$0xff]   ;;  %v1421_v30 = vld [vmem:[%s1973_s0 + $0x58] sm:$0xff]  }
   0xb   :  { %1311 = vmatpush3.bf16.msra.mxu0 %v1404_v2  ;;  %1396 = vmatpush3.bf16.msra.mxu1 %v1404_v2  ;;  %v1436_v29 = vld [vmem:[%s1973_s0 + $0xd0] sm:$0xff]   ;;  %v1437_v31 = vld [vmem:[%s1973_s0 + $0xd8] sm:$0xff]   ;;  %v1422_v32 = vld [vmem:[%s1973_s0 + $0x60] sm:$0xff]  }
   0xc   :  { %1312 = vmatprep.subr.bf16.mxu0 %v1405_v3  ;;  %1389 = vmatprep.subr.bf16.mxu1 %v1405_v3  ;;  %v1438_v33 = vld [vmem:[%s1973_s0 + $0xe0] sm:$0xff]   ;;  %v1423_v34 = vld [vmem:[%s1973_s0 + $0x68] sm:$0xff]   ;;  %v1424_v36 = vld [vmem:[%s1973_s0 + $0x70] sm:$0xff]  }
   0xd   :  { %v1439_v35 = vld [vmem:[%s1973_s0 + $0xe8] sm:$0xff]   ;;  %v1440_v37 = vld [vmem:[%s1973_s0 + $0xf0] sm:$0xff]   ;;  %v1425_v38 = vld [vmem:[%s1973_s0 + $0x78] sm:$0xff]  }
   0xe   :  { %v1441_v39 = vld [vmem:[%s1973_s0 + $0xf8] sm:$0xff]  }
   0xf   :  { %1313 = vmatpush3.bf16.msra.mxu0 %v1405_v3  ;;  %1397 = vmatpush3.bf16.msra.mxu1 %v1405_v3 }
  0x10   :  { %1314 = vmatprep.subr.bf16.mxu0 %v1406_v5  ;;  %1390 = vmatprep.subr.bf16.mxu1 %v1406_v5 }
  0x13   :  { %1315 = vmatpush3.bf16.msra.mxu0 %v1406_v5  ;;  %1398 = vmatpush3.bf16.msra.mxu1 %v1406_v5 }
  0x14   :  { %1316 = vmatprep.subr.bf16.mxu0 %v1407_v6  ;;  %1391 = vmatprep.subr.bf16.mxu1 %v1407_v6 }
  0x17   :  { %1317 = vmatpush3.bf16.msra.mxu0 %v1407_v6  ;;  %1399 = vmatpush3.bf16.msra.mxu1 %v1407_v6 }
  0x18   :  { %1318 = vmatprep.subr.bf16.mxu0 %v1408_v7  ;;  %1392 = vmatprep.subr.bf16.mxu1 %v1408_v7 }
  0x1b   :  { %1319 = vmatpush3.bf16.msra.mxu0 %v1408_v7  ;;  %1400 = vmatpush3.bf16.msra.mxu1 %v1408_v7 }
  0x1c   :  { %1320 = vmatprep.subr.bf16.mxu0 %v1409_v8  ;;  %1393 = vmatprep.subr.bf16.mxu1 %v1409_v8 }
  0x1f   :  { %1321 = vmatpush3.bf16.msra.mxu0 %v1409_v8  ;;  %1401 = vmatpush3.bf16.msra.mxu1 %v1409_v8 }
  0x22   :  { %1323 = vmatmul.mubr.bf16.vlgmr.msra.gmra.mxu0 %v1411_v10  ;;  %1355 = vmatmul.mubr.bf16.vlgmr.msra.gmra.mxu1 %v1427_v12 }
  0x23   :  { %1326 = vmatprep.mubr.bf16.mxu0 %v1412_v11  ;;  %1358 = vmatprep.mubr.bf16.mxu1 %v1428_v13 }
  0x2a   :  { %1327 = vmatmul.mubr.bf16.gmra.mxu0 %v1413_v14  ;;  %1359 = vmatmul.mubr.bf16.gmra.mxu1 %v1429_v16 }
  0x2b   :  { %1330 = vmatprep.mubr.bf16.mxu0 %v1414_v15  ;;  %1362 = vmatprep.mubr.bf16.mxu1 %v1430_v17 }
  0x32   :  { %1331 = vmatmul.mubr.bf16.gmra.mxu0 %v1415_v18  ;;  %1363 = vmatmul.mubr.bf16.gmra.mxu1 %v1431_v19 }
  0x33   :  { %1334 = vmatprep.mubr.bf16.mxu0 %v1416_v20  ;;  %1366 = vmatprep.mubr.bf16.mxu1 %v1432_v21 }
  0x3a   :  { %1335 = vmatmul.mubr.bf16.gmra.mxu0 %v1417_v22  ;;  %1367 = vmatmul.mubr.bf16.gmra.mxu1 %v1433_v23 }
  0x3b   :  { %1338 = vmatprep.mubr.bf16.mxu0 %v1418_v24  ;;  %1370 = vmatprep.mubr.bf16.mxu1 %v1434_v25 }
  0x42   :  { %1339 = vmatmul.mubr.bf16.gmra.mxu0 %v1419_v26  ;;  %1371 = vmatmul.mubr.bf16.gmra.mxu1 %v1435_v27 }
  0x43   :  { %1342 = vmatprep.mubr.bf16.mxu0 %v1420_v28  ;;  %1374 = vmatprep.mubr.bf16.mxu1 %v1436_v29 }
  0x4a   :  { %1343 = vmatmul.mubr.bf16.gmra.mxu0 %v1421_v30  ;;  %1375 = vmatmul.mubr.bf16.gmra.mxu1 %v1437_v31 }
  0x4b   :  { %1346 = vmatprep.mubr.bf16.mxu0 %v1422_v32  ;;  %1378 = vmatprep.mubr.bf16.mxu1 %v1438_v33 }
  0x52   :  { %1347 = vmatmul.mubr.bf16.gmra.mxu0 %v1423_v34  ;;  %1379 = vmatmul.mubr.bf16.gmra.mxu1 %v1439_v35 }
  0x53   :  { %1350 = vmatprep.mubr.bf16.mxu0 %v1424_v36  ;;  %1382 = vmatprep.mubr.bf16.mxu1 %v1440_v37 }
  0x5a   :  { %1351 = vmatmul.mubr.bf16.gmra.mxu0 %v1425_v38  ;;  %1383 = vmatmul.mubr.bf16.gmra.mxu1 %v1441_v39 }
  0xe2   :  { %v1324_v40 = vpop.f32.mrf.mxu0  ;;  %v1582_v41 = vpop.f32.mrf.mxu1 }
  0xe3   :  { %952 = vst [vmem:[%s1974_s2 + $0x10] sm:$0xff] %v1324_v40  ;;  %984 = vst [vmem:[%s1974_s2 + $0x110] sm:$0xff] %v1582_v41  ;;  %v1086_v53 = vmul.f32 %v1324_v40, %v1324_v40 }
  0xe4   :  { %v500_v42 = vpop.f32.mrf.mxu0  ;;  %v1591_v43 = vpop.f32.mrf.mxu1 }
  0xe5   :  { %950 = vst [vmem:[%s1974_s2] sm:$0xff] %v500_v42  ;;  %982 = vst [vmem:[%s1974_s2 + $0x100] sm:$0xff] %v1591_v43  ;;  %v1084_v48 = vmul.f32 %v500_v42, %v500_v42 }
  0xe6   :  { %v1325_v44 = vpop.f32.mrf.mxu0  ;;  %v1600_v45 = vpop.f32.mrf.mxu1 }
  0xe7   :  { %953 = vst [vmem:[%s1974_s2 + $0x18] sm:$0xff] %v1325_v44  ;;  %985 = vst [vmem:[%s1974_s2 + $0x118] sm:$0xff] %v1600_v45  ;;  %v1087_v58 = vmul.f32 %v1325_v44, %v1325_v44 }
  0xe8   :  { %v503_v46 = vpop.f32.mrf.mxu0  ;;  %v1609_v47 = vpop.f32.mrf.mxu1 }
  0xe9   :  { %951 = vst [vmem:[%s1974_s2 + $0x8] sm:$0xff] %v503_v46  ;;  %v1014_v49 = vadd.f32 %v503_v46, %v500_v42  ;;  %v1085_v50 = vmul.f32 %v503_v46, %v503_v46  ;;  %983 = vst [vmem:[%s1974_s2 + $0x108] sm:$0xff] %v1609_v47 }
  0xea   :  { %v1328_v51 = vpop.f32.mrf.mxu0  ;;  %v1618_v52 = vpop.f32.mrf.mxu1 }
  0xeb   :  { %v1015_v54 = vadd.f32 %v1324_v40, %v1014_v49  ;;  %v1148_v55 = vadd.f32 %v1085_v50, %v1084_v48  ;;  %956 = vst [vmem:[%s1974_s2 + $0x30] sm:$0xff] %v1328_v51  ;;  %988 = vst [vmem:[%s1974_s2 + $0x130] sm:$0xff] %v1618_v52  ;;  %v1090_v9 = vmul.f32 %v1328_v51, %v1328_v51 }
  0xec   :  { %v516_v56 = vpop.f32.mrf.mxu0  ;;  %v1627_v57 = vpop.f32.mrf.mxu1 }
  0xed   :  { %v1149_v59 = vadd.f32 %v1148_v55, %v1086_v53  ;;  %954 = vst [vmem:[%s1974_s2 + $0x20] sm:$0xff] %v516_v56  ;;  %v1016_v60 = vadd.f32 %v1325_v44, %v1015_v54  ;;  %986 = vst [vmem:[%s1974_s2 + $0x120] sm:$0xff] %v1627_v57  ;;  %v1088_v0 = vmul.f32 %v516_v56, %v516_v56 }
  0xee   :  { %v1329_v61 = vpop.f32.mrf.mxu0  ;;  %v1636_v62 = vpop.f32.mrf.mxu1 }
  0xef   :  { %v1017_v63 = vadd.f32 %v1016_v60, %v516_v56  ;;  %v1150_v1 = vadd.f32 %v1149_v59, %v1087_v58  ;;  %957 = vst [vmem:[%s1974_s2 + $0x38] sm:$0xff] %v1329_v61  ;;  %989 = vst [vmem:[%s1974_s2 + $0x138] sm:$0xff] %v1636_v62  ;;  %v1091_v14 = vmul.f32 %v1329_v61, %v1329_v61 }
  0xf0   :  { %v519_v2 = vpop.f32.mrf.mxu0  ;;  %v1645_v3 = vpop.f32.mrf.mxu1 }
  0xf1   :  { %v1151_v4 = vadd.f32 %v1150_v1, %v1088_v0  ;;  %955 = vst [vmem:[%s1974_s2 + $0x28] sm:$0xff] %v519_v2  ;;  %v1018_v5 = vadd.f32 %v1017_v63, %v519_v2  ;;  %v1089_v6 = vmul.f32 %v519_v2, %v519_v2  ;;  %987 = vst [vmem:[%s1974_s2 + $0x128] sm:$0xff] %v1645_v3 }
  0xf2   :  { %v1332_v7 = vpop.f32.mrf.mxu0  ;;  %v1654_v8 = vpop.f32.mrf.mxu1 }
  0xf3   :  { %v1019_v10 = vadd.f32 %v1328_v51, %v1018_v5  ;;  %v1152_v11 = vadd.f32 %v1151_v4, %v1089_v6  ;;  %960 = vst [vmem:[%s1974_s2 + $0x50] sm:$0xff] %v1332_v7  ;;  %992 = vst [vmem:[%s1974_s2 + $0x150] sm:$0xff] %v1654_v8  ;;  %v1094_v29 = vmul.f32 %v1332_v7, %v1332_v7 }
  0xf4   :  { %v532_v12 = vpop.f32.mrf.mxu0  ;;  %v1663_v13 = vpop.f32.mrf.mxu1 }
  0xf5   :  { %v1153_v15 = vadd.f32 %v1152_v11, %v1090_v9  ;;  %958 = vst [vmem:[%s1974_s2 + $0x40] sm:$0xff] %v532_v12  ;;  %v1020_v16 = vadd.f32 %v1329_v61, %v1019_v10  ;;  %990 = vst [vmem:[%s1974_s2 + $0x140] sm:$0xff] %v1663_v13  ;;  %v1092_v20 = vmul.f32 %v532_v12, %v532_v12 }
  0xf6   :  { %v1333_v17 = vpop.f32.mrf.mxu0  ;;  %v1672_v18 = vpop.f32.mrf.mxu1 }
  0xf7   :  { %v1021_v19 = vadd.f32 %v1020_v16, %v532_v12  ;;  %v1154_v21 = vadd.f32 %v1153_v15, %v1091_v14  ;;  %961 = vst [vmem:[%s1974_s2 + $0x58] sm:$0xff] %v1333_v17  ;;  %993 = vst [vmem:[%s1974_s2 + $0x158] sm:$0xff] %v1672_v18  ;;  %v1095_v34 = vmul.f32 %v1333_v17, %v1333_v17 }
  0xf8   :  { %v535_v22 = vpop.f32.mrf.mxu0  ;;  %v1681_v23 = vpop.f32.mrf.mxu1 }
  0xf9   :  { %v1155_v24 = vadd.f32 %v1154_v21, %v1092_v20  ;;  %959 = vst [vmem:[%s1974_s2 + $0x48] sm:$0xff] %v535_v22  ;;  %v1022_v25 = vadd.f32 %v1021_v19, %v535_v22  ;;  %v1093_v26 = vmul.f32 %v535_v22, %v535_v22  ;;  %991 = vst [vmem:[%s1974_s2 + $0x148] sm:$0xff] %v1681_v23 }
  0xfa   :  { %v1336_v27 = vpop.f32.mrf.mxu0  ;;  %v1690_v28 = vpop.f32.mrf.mxu1 }
  0xfb   :  { %v1023_v30 = vadd.f32 %v1332_v7, %v1022_v25  ;;  %v1156_v31 = vadd.f32 %v1155_v24, %v1093_v26  ;;  %964 = vst [vmem:[%s1974_s2 + $0x70] sm:$0xff] %v1336_v27  ;;  %996 = vst [vmem:[%s1974_s2 + $0x170] sm:$0xff] %v1690_v28  ;;  %v1098_v54 = vmul.f32 %v1336_v27, %v1336_v27 }
  0xfc   :  { %v548_v32 = vpop.f32.mrf.mxu0  ;;  %v1699_v33 = vpop.f32.mrf.mxu1 }
  0xfd   :  { %v1157_v35 = vadd.f32 %v1156_v31, %v1094_v29  ;;  %962 = vst [vmem:[%s1974_s2 + $0x60] sm:$0xff] %v548_v32  ;;  %v1024_v36 = vadd.f32 %v1333_v17, %v1023_v30  ;;  %994 = vst [vmem:[%s1974_s2 + $0x160] sm:$0xff] %v1699_v33  ;;  %v1096_v40 = vmul.f32 %v548_v32, %v548_v32 }
  0xfe   :  { %v1337_v37 = vpop.f32.mrf.mxu0  ;;  %v1708_v38 = vpop.f32.mrf.mxu1 }
  0xff   :  { %v1025_v39 = vadd.f32 %v1024_v36, %v548_v32  ;;  %v1158_v42 = vadd.f32 %v1157_v35, %v1095_v34  ;;  %965 = vst [vmem:[%s1974_s2 + $0x78] sm:$0xff] %v1337_v37  ;;  %997 = vst [vmem:[%s1974_s2 + $0x178] sm:$0xff] %v1708_v38  ;;  %v1099_v60 = vmul.f32 %v1337_v37, %v1337_v37 }
 0x100   :  { %v551_v44 = vpop.f32.mrf.mxu0  ;;  %v1717_v46 = vpop.f32.mrf.mxu1 }
 0x101   :  { %v1159_v48 = vadd.f32 %v1158_v42, %v1096_v40  ;;  %963 = vst [vmem:[%s1974_s2 + $0x68] sm:$0xff] %v551_v44  ;;  %v1026_v49 = vadd.f32 %v1025_v39, %v551_v44  ;;  %v1097_v50 = vmul.f32 %v551_v44, %v551_v44  ;;  %995 = vst [vmem:[%s1974_s2 + $0x168] sm:$0xff] %v1717_v46 }
 0x102   :  { %v1340_v51 = vpop.f32.mrf.mxu0  ;;  %v1726_v53 = vpop.f32.mrf.mxu1 }
 0x103   :  { %v1027_v55 = vadd.f32 %v1336_v27, %v1026_v49  ;;  %v1160_v56 = vadd.f32 %v1159_v48, %v1097_v50  ;;  %968 = vst [vmem:[%s1974_s2 + $0x90] sm:$0xff] %v1340_v51  ;;  %1000 = vst [vmem:[%s1974_s2 + $0x190] sm:$0xff] %v1726_v53  ;;  %v1102_v15 = vmul.f32 %v1340_v51, %v1340_v51 }
 0x104   :  { %v564_v58 = vpop.f32.mrf.mxu0  ;;  %v1735_v59 = vpop.f32.mrf.mxu1 }
 0x105   :  { %v1161_v61 = vadd.f32 %v1160_v56, %v1098_v54  ;;  %966 = vst [vmem:[%s1974_s2 + $0x80] sm:$0xff] %v564_v58  ;;  %v1028_v63 = vadd.f32 %v1337_v37, %v1027_v55  ;;  %998 = vst [vmem:[%s1974_s2 + $0x180] sm:$0xff] %v1735_v59  ;;  %v1100_v4 = vmul.f32 %v564_v58, %v564_v58 }
 0x106   :  { %v1341_v0 = vpop.f32.mrf.mxu0  ;;  %v1744_v1 = vpop.f32.mrf.mxu1 }
 0x107   :  { %v1029_v2 = vadd.f32 %v1028_v63, %v564_v58  ;;  %v1162_v5 = vadd.f32 %v1161_v61, %v1099_v60  ;;  %969 = vst [vmem:[%s1974_s2 + $0x98] sm:$0xff] %v1341_v0  ;;  %1001 = vst [vmem:[%s1974_s2 + $0x198] sm:$0xff] %v1744_v1  ;;  %v1103_v21 = vmul.f32 %v1341_v0, %v1341_v0 }
 0x108   :  { %v567_v6 = vpop.f32.mrf.mxu0  ;;  %v1753_v7 = vpop.f32.mrf.mxu1 }
 0x109   :  { %v1163_v9 = vadd.f32 %v1162_v5, %v1100_v4  ;;  %967 = vst [vmem:[%s1974_s2 + $0x88] sm:$0xff] %v567_v6  ;;  %v1030_v10 = vadd.f32 %v1029_v2, %v567_v6  ;;  %v1101_v11 = vmul.f32 %v567_v6, %v567_v6  ;;  %999 = vst [vmem:[%s1974_s2 + $0x188] sm:$0xff] %v1753_v7 }
 0x10a   :  { %v1344_v12 = vpop.f32.mrf.mxu0  ;;  %v1762_v14 = vpop.f32.mrf.mxu1 }
 0x10b   :  { %v1031_v16 = vadd.f32 %v1340_v51, %v1030_v10  ;;  %v1164_v17 = vadd.f32 %v1163_v9, %v1101_v11  ;;  %972 = vst [vmem:[%s1974_s2 + $0xb0] sm:$0xff] %v1344_v12  ;;  %1004 = vst [vmem:[%s1974_s2 + $0x1b0] sm:$0xff] %v1762_v14  ;;  %v1106_v40 = vmul.f32 %v1344_v12, %v1344_v12 }
 0x10c   :  { %v580_v19 = vpop.f32.mrf.mxu0  ;;  %v1771_v20 = vpop.f32.mrf.mxu1 }
 0x10d   :  { %v1165_v22 = vadd.f32 %v1164_v17, %v1102_v15  ;;  %970 = vst [vmem:[%s1974_s2 + $0xa0] sm:$0xff] %v580_v19  ;;  %v1032_v24 = vadd.f32 %v1341_v0, %v1031_v16  ;;  %1002 = vst [vmem:[%s1974_s2 + $0x1a0] sm:$0xff] %v1771_v20  ;;  %v1104_v29 = vmul.f32 %v580_v19, %v580_v19 }
 0x10e   :  { %v1345_v25 = vpop.f32.mrf.mxu0  ;;  %v1780_v26 = vpop.f32.mrf.mxu1 }
 0x10f   :  { %v1033_v27 = vadd.f32 %v1032_v24, %v580_v19  ;;  %v1166_v30 = vadd.f32 %v1165_v22, %v1103_v21  ;;  %973 = vst [vmem:[%s1974_s2 + $0xb8] sm:$0xff] %v1345_v25  ;;  %1005 = vst [vmem:[%s1974_s2 + $0x1b8] sm:$0xff] %v1780_v26  ;;  %v1107_v50 = vmul.f32 %v1345_v25, %v1345_v25 }
 0x110   :  { %v583_v31 = vpop.f32.mrf.mxu0  ;;  %v1789_v32 = vpop.f32.mrf.mxu1 }
 0x111   :  { %v1167_v34 = vadd.f32 %v1166_v30, %v1104_v29  ;;  %971 = vst [vmem:[%s1974_s2 + $0xa8] sm:$0xff] %v583_v31  ;;  %v1034_v35 = vadd.f32 %v1033_v27, %v583_v31  ;;  %v1105_v36 = vmul.f32 %v583_v31, %v583_v31  ;;  %1003 = vst [vmem:[%s1974_s2 + $0x1a8] sm:$0xff] %v1789_v32 }
 0x112   :  { %v1348_v37 = vpop.f32.mrf.mxu0  ;;  %v1798_v39 = vpop.f32.mrf.mxu1 }
 0x113   :  { %v1035_v42 = vadd.f32 %v1344_v12, %v1034_v35  ;;  %v1168_v44 = vadd.f32 %v1167_v34, %v1105_v36  ;;  %976 = vst [vmem:[%s1974_s2 + $0xd0] sm:$0xff] %v1348_v37  ;;  %1008 = vst [vmem:[%s1974_s2 + $0x1d0] sm:$0xff] %v1798_v39  ;;  %v1110_v10 = vmul.f32 %v1348_v37, %v1348_v37 }
 0x114   :  { %v596_v48 = vpop.f32.mrf.mxu0  ;;  %v1807_v49 = vpop.f32.mrf.mxu1 }
 0x115   :  { %v1169_v51 = vadd.f32 %v1168_v44, %v1106_v40  ;;  %974 = vst [vmem:[%s1974_s2 + $0xc0] sm:$0xff] %v596_v48  ;;  %v1036_v54 = vadd.f32 %v1345_v25, %v1035_v42  ;;  %1006 = vst [vmem:[%s1974_s2 + $0x1c0] sm:$0xff] %v1807_v49  ;;  %v1108_v60 = vmul.f32 %v596_v48, %v596_v48 }
 0x116   :  { %v1349_v55 = vpop.f32.mrf.mxu0  ;;  %v1816_v56 = vpop.f32.mrf.mxu1 }
 0x117   :  { %v1037_v58 = vadd.f32 %v1036_v54, %v596_v48  ;;  %v1170_v61 = vadd.f32 %v1169_v51, %v1107_v50  ;;  %977 = vst [vmem:[%s1974_s2 + $0xd8] sm:$0xff] %v1349_v55  ;;  %1009 = vst [vmem:[%s1974_s2 + $0x1d8] sm:$0xff] %v1816_v56  ;;  %v1111_v17 = vmul.f32 %v1349_v55, %v1349_v55 }
 0x118   :  { %v599_v63 = vpop.f32.mrf.mxu0  ;;  %v1825_v0 = vpop.f32.mrf.mxu1  ;;  %v1116_v51 = vmul.f32 %v1591_v43, %v1591_v43 }
 0x119   :  { %v1171_v2 = vadd.f32 %v1170_v61, %v1108_v60  ;;  %975 = vst [vmem:[%s1974_s2 + $0xc8] sm:$0xff] %v599_v63  ;;  %v1038_v4 = vadd.f32 %v1037_v58, %v599_v63  ;;  %v1109_v5 = vmul.f32 %v599_v63, %v599_v63  ;;  %1007 = vst [vmem:[%s1974_s2 + $0x1c8] sm:$0xff] %v1825_v0 }
 0x11a   :  { %v1352_v6 = vpop.f32.mrf.mxu0  ;;  %v1834_v9 = vpop.f32.mrf.mxu1  ;;  %v1117_v60 = vmul.f32 %v1609_v47, %v1609_v47  ;;  %v1118_v63 = vmul.f32 %v1582_v41, %v1582_v41 }
 0x11b   :  { %v1039_v11 = vadd.f32 %v1348_v37, %v1038_v4  ;;  %v1172_v12 = vadd.f32 %v1171_v2, %v1109_v5  ;;  %980 = vst [vmem:[%s1974_s2 + $0xf0] sm:$0xff] %v1352_v6  ;;  %1012 = vst [vmem:[%s1974_s2 + $0x1f0] sm:$0xff] %v1834_v9  ;;  %v1114_v37 = vmul.f32 %v1352_v6, %v1352_v6 }
 0x11c   :  { %v612_v15 = vpop.f32.mrf.mxu0  ;;  %v1843_v16 = vpop.f32.mrf.mxu1  ;;  %v1119_v5 = vmul.f32 %v1600_v45, %v1600_v45 }
 0x11d   :  { %v1173_v19 = vadd.f32 %v1172_v12, %v1110_v10  ;;  %978 = vst [vmem:[%s1974_s2 + $0xe0] sm:$0xff] %v612_v15  ;;  %v1040_v21 = vadd.f32 %v1349_v55, %v1039_v11  ;;  %1010 = vst [vmem:[%s1974_s2 + $0x1e0] sm:$0xff] %v1843_v16  ;;  %v1112_v27 = vmul.f32 %v612_v15, %v612_v15 }
 0x11e   :  { %v1353_v22 = vpop.f32.mrf.mxu0  ;;  %v1852_v24 = vpop.f32.mrf.mxu1  ;;  %v1120_v11 = vmul.f32 %v1627_v57, %v1627_v57 }
 0x11f   :  { %v1041_v25 = vadd.f32 %v1040_v21, %v612_v15  ;;  %v1174_v29 = vadd.f32 %v1173_v19, %v1111_v17  ;;  %981 = vst [vmem:[%s1974_s2 + $0xf8] sm:$0xff] %v1353_v22  ;;  %1013 = vst [vmem:[%s1974_s2 + $0x1f8] sm:$0xff] %v1852_v24  ;;  %v1115_v44 = vmul.f32 %v1353_v22, %v1353_v22 }
 0x120   :  { %v615_v30 = vpop.f32.mrf.mxu0  ;;  %v1861_v31 = vpop.f32.mrf.mxu1  ;;  %v1121_v17 = vmul.f32 %v1645_v3, %v1645_v3 }
 0x121   :  { %v1175_v34 = vadd.f32 %v1174_v29, %v1112_v27  ;;  %979 = vst [vmem:[%s1974_s2 + $0xe8] sm:$0xff] %v615_v30  ;;  %v1042_v35 = vadd.f32 %v1041_v25, %v615_v30  ;;  %v1113_v36 = vmul.f32 %v615_v30, %v615_v30  ;;  %1011 = vst [vmem:[%s1974_s2 + $0x1e8] sm:$0xff] %v1861_v31 }
 0x122   :  { %v1124_v27 = vmul.f32 %v1663_v13, %v1663_v13 }
 0x123   :  { %v1043_v40 = vadd.f32 %v1352_v6, %v1042_v35  ;;  %v1176_v42 = vadd.f32 %v1175_v34, %v1113_v36  ;;  %v1125_v34 = vmul.f32 %v1681_v23, %v1681_v23 }
 0x125   :  { %v1044_v48 = vadd.f32 %v1353_v22, %v1043_v40  ;;  %v1177_v50 = vadd.f32 %v1176_v42, %v1114_v37  ;;  %v1128_v42 = vmul.f32 %v1699_v33, %v1699_v33 }
 0x127   :  { %v1178_v54 = vadd.f32 %v1177_v50, %v1115_v44  ;;  %v1045_v55 = vadd.f32 %v1044_v48, %v1591_v43  ;;  %v1129_v50 = vmul.f32 %v1717_v46, %v1717_v46 }
 0x129   :  { %v1046_v58 = vadd.f32 %v1045_v55, %v1609_v47  ;;  %v1179_v61 = vadd.f32 %v1178_v54, %v1116_v51 }
 0x12b   :  { %v1047_v2 = vadd.f32 %v1582_v41, %v1046_v58  ;;  %v1180_v4 = vadd.f32 %v1179_v61, %v1117_v60  ;;  %v1122_v41 = vmul.f32 %v1618_v52, %v1618_v52  ;;  %v1132_v60 = vmul.f32 %v1735_v59, %v1735_v59 }
 0x12d   :  { %v1181_v6 = vadd.f32 %v1180_v4, %v1118_v63  ;;  %v1048_v10 = vadd.f32 %v1600_v45, %v1047_v2  ;;  %v1123_v45 = vmul.f32 %v1636_v62, %v1636_v62  ;;  %v1133_v2 = vmul.f32 %v1753_v7, %v1753_v7 }
 0x12f   :  { %v1049_v43 = vadd.f32 %v1048_v10, %v1627_v57  ;;  %v1182_v12 = vadd.f32 %v1181_v6, %v1119_v5 }
 0x131   :  { %v1183_v47 = vadd.f32 %v1182_v12, %v1120_v11  ;;  %v1050_v15 = vadd.f32 %v1049_v43, %v1645_v3  ;;  %v1136_v43 = vmul.f32 %v1771_v20, %v1771_v20 }
 0x133   :  { %v1051_v19 = vadd.f32 %v1618_v52, %v1050_v15  ;;  %v1184_v21 = vadd.f32 %v1183_v47, %v1121_v17  ;;  %v1126_v52 = vmul.f32 %v1654_v8, %v1654_v8  ;;  %v1137_v47 = vmul.f32 %v1789_v32, %v1789_v32 }
 0x135   :  { %v1185_v22 = vadd.f32 %v1184_v21, %v1122_v41  ;;  %v1052_v25 = vadd.f32 %v1636_v62, %v1051_v19  ;;  %v1127_v62 = vmul.f32 %v1672_v18, %v1672_v18  ;;  %v1140_v21 = vmul.f32 %v1807_v49, %v1807_v49 }
 0x137   :  { %v1053_v57 = vadd.f32 %v1052_v25, %v1663_v13  ;;  %v1186_v29 = vadd.f32 %v1185_v22, %v1123_v45  ;;  %v1141_v25 = vmul.f32 %v1825_v0, %v1825_v0 }
 0x139   :  { %v1187_v30 = vadd.f32 %v1186_v29, %v1124_v27  ;;  %v1054_v3 = vadd.f32 %v1053_v57, %v1681_v23 }
 0x13b   :  { %v1055_v35 = vadd.f32 %v1654_v8, %v1054_v3  ;;  %v1188_v36 = vadd.f32 %v1187_v30, %v1125_v34  ;;  %v1130_v8 = vmul.f32 %v1690_v28, %v1690_v28  ;;  %v1144_v3 = vmul.f32 %v1843_v16, %v1843_v16 }
 0x13d   :  { %v1189_v37 = vadd.f32 %v1188_v36, %v1126_v52  ;;  %v1056_v40 = vadd.f32 %v1672_v18, %v1055_v35  ;;  %v1131_v18 = vmul.f32 %v1708_v38, %v1708_v38  ;;  %v1145_v35 = vmul.f32 %v1861_v31, %v1861_v31 }
 0x13f   :  { %v1057_v13 = vadd.f32 %v1056_v40, %v1699_v33  ;;  %v1190_v44 = vadd.f32 %v1189_v37, %v1127_v62 }
 0x141   :  { %v1191_v48 = vadd.f32 %v1190_v44, %v1128_v42  ;;  %v1058_v23 = vadd.f32 %v1057_v13, %v1717_v46 }
 0x143   :  { %v1059_v51 = vadd.f32 %v1690_v28, %v1058_v23  ;;  %v1192_v54 = vadd.f32 %v1191_v48, %v1129_v50  ;;  %v1134_v28 = vmul.f32 %v1726_v53, %v1726_v53 }
 0x145   :  { %v1193_v55 = vadd.f32 %v1192_v54, %v1130_v8  ;;  %v1060_v58 = vadd.f32 %v1708_v38, %v1059_v51  ;;  %v1135_v38 = vmul.f32 %v1744_v1, %v1744_v1 }
 0x147   :  { %v1061_v33 = vadd.f32 %v1060_v58, %v1735_v59  ;;  %v1194_v61 = vadd.f32 %v1193_v55, %v1131_v18 }
 0x149   :  { %v1195_v63 = vadd.f32 %v1194_v61, %v1132_v60  ;;  %v1062_v46 = vadd.f32 %v1061_v33, %v1753_v7 }
 0x14b   :  { %v1063_v4 = vadd.f32 %v1726_v53, %v1062_v46  ;;  %v1196_v5 = vadd.f32 %v1195_v63, %v1133_v2  ;;  %v1138_v53 = vmul.f32 %v1762_v14, %v1762_v14 }
 0x14d   :  { %v1197_v6 = vadd.f32 %v1196_v5, %v1134_v28  ;;  %v1064_v10 = vadd.f32 %v1744_v1, %v1063_v4  ;;  %v1139_v1 = vmul.f32 %v1780_v26, %v1780_v26 }
 0x14f   :  { %v1065_v59 = vadd.f32 %v1064_v10, %v1771_v20  ;;  %v1198_v11 = vadd.f32 %v1197_v6, %v1135_v38 }
 0x151   :  { %v1199_v12 = vadd.f32 %v1198_v11, %v1136_v43  ;;  %v1066_v7 = vadd.f32 %v1065_v59, %v1789_v32 }
 0x153   :  { %v1067_v15 = vadd.f32 %v1762_v14, %v1066_v7  ;;  %v1200_v17 = vadd.f32 %v1199_v12, %v1137_v47  ;;  %v1142_v14 = vmul.f32 %v1798_v39, %v1798_v39 }
 0x155   :  { %v1201_v41 = vadd.f32 %v1200_v17, %v1138_v53  ;;  %v1068_v19 = vadd.f32 %v1780_v26, %v1067_v15  ;;  %v1143_v26 = vmul.f32 %v1816_v56, %v1816_v56 }
 0x157   :  { %v1069_v20 = vadd.f32 %v1068_v19, %v1807_v49  ;;  %v1202_v45 = vadd.f32 %v1201_v41, %v1139_v1 }
 0x159   :  { %v1203_v22 = vadd.f32 %v1202_v45, %v1140_v21  ;;  %v1070_v32 = vadd.f32 %v1069_v20, %v1825_v0 }
 0x15b   :  { %v1071_v57 = vadd.f32 %v1798_v39, %v1070_v32  ;;  %v1204_v27 = vadd.f32 %v1203_v22, %v1141_v25  ;;  %v1146_v39 = vmul.f32 %v1834_v9, %v1834_v9 }
 0x15d   :  { %v1205_v29 = vadd.f32 %v1204_v27, %v1142_v14  ;;  %v1072_v30 = vadd.f32 %v1816_v56, %v1071_v57  ;;  %v1147_v56 = vmul.f32 %v1852_v24, %v1852_v24 }
 0x15f   :  { %v1073_v49 = vadd.f32 %v1072_v30, %v1843_v16  ;;  %v1206_v34 = vadd.f32 %v1205_v29, %v1143_v26 }
 0x161   :  { %v1207_v52 = vadd.f32 %v1206_v34, %v1144_v3  ;;  %v1074_v0 = vadd.f32 %v1073_v49, %v1861_v31 }
 0x163   :  { %v1075_v36 = vadd.f32 %v1834_v9, %v1074_v0  ;;  %v1208_v62 = vadd.f32 %v1207_v52, %v1145_v35 }
 0x165   :  { %v1076_v37 = vadd.f32 %v1852_v24, %v1075_v36  ;;  %v1209_v40 = vadd.f32 %v1208_v62, %v1146_v39 }
 0x167   :  { %v1077_v16 = vrot.slane %v1076_v37, 4  ;;  %v1210_v13 = vadd.f32 %v1209_v40, %v1147_v56 }
 0x169   :  { %v1078_v42 = vadd.f32 %v1077_v16, %v1076_v37  ;;  %v1211_v44 = vrot.slane %v1210_v13, 4 }
 0x16b   :  { %v1079_v48 = vrot.slane %v1078_v42, 2  ;;  %v1212_v23 = vadd.f32 %v1211_v44, %v1210_v13 }
 0x16d   :  { %v1080_v50 = vadd.f32 %v1079_v48, %v1078_v42  ;;  %v1213_v31 = vrot.slane %v1212_v23, 2 }
 0x16f   :  { %v1081_v8 = vrot.slane %v1080_v50, 1  ;;  %v1214_v51 = vadd.f32 %v1213_v31, %v1212_v23 }
 0x171   :  { %v1082_v54 = vadd.f32 %v1081_v8, %v1080_v50  ;;  %v1215_v18 = vrot.slane %v1214_v51, 1 }
 0x173   :  { %1083 = vst [vmem:[%s1975_s3] sm:$0x1] %v1082_v54  ;;  %v1216_v9 = vadd.f32 %v1215_v18, %v1214_v51 }
 0x175   :  { %1217 = vst [vmem:[%s1975_s3 + $0x1] sm:$0x1] %v1216_v9 }

// kernel: bottleneck_forward.9
= control target key start
LH: loop header
LB: loop body
LE: loop exit
PB: predicated region body
PF: predicated region fallthrough
CT: control target
= control target key end

     0   :  { %s1511_s0 = inlined_call_operand.vmem [shape: f32[512,128], index: 0, kind: input, shape index: {}]   ;;  %s1512_s1 = inlined_call_operand.vmem [shape: f32[1,128], index: 1, kind: input, shape index: {}]   ;;  %s1513_s2 = inlined_call_operand.vmem [shape: f32[1,128], index: 2, kind: input, shape index: {}]   ;;  %s1514_s3 = inlined_call_operand.vmem [shape: f32[512,128], index: 3, kind: input, shape index: {}]   ;;  %s1515_s4 = inlined_call_operand.vmem [shape: f32[1,128], index: 4, kind: input, shape index: {}]   ;;  %s1516_s5 = inlined_call_operand.vmem [shape: f32[1,128], index: 5, kind: input, shape index: {}]   ;;  %s1517_s6 = inlined_call_operand.vmem [shape: f32[512,128], index: 6, kind: output, shape index: {}]  }
   0x1   :  { %v23_v0 = vld [vmem:[%s1511_s0] sm:$0xff]  ;;  %v24_v8 = vld [vmem:[%s1511_s0 + $0x8] sm:$0xff]  ;;  %v25_v10 = vld [vmem:[%s1511_s0 + $0x10] sm:$0xff] }
   0x2   :  { %v680_v1 = vld [vmem:[%s1512_s1] ss:$0 sm:$0xff]  ;;  %v230_v9 = vld [vmem:[%s1514_s3 + $0x8] sm:$0xff]  ;;  %v231_v15 = vld [vmem:[%s1514_s3 + $0x10] sm:$0xff] }
   0x3   :  { %v685_v2 = vld [vmem:[%s1513_s2] ss:$0 sm:$0xff]  ;;  %v94_v3 = vmul.f32 %v680_v1, %v23_v0  ;;  %v95_v12 = vmul.f32 %v680_v1, %v24_v8  ;;  %v96_v14 = vmul.f32 %v680_v1, %v25_v10  ;;  %v26_v16 = vld [vmem:[%s1511_s0 + $0x18] sm:$0xff]  ;;  %v28_v24 = vld [vmem:[%s1511_s0 + $0x28] sm:$0xff] }
   0x4   :  { %v229_v4 = vld [vmem:[%s1514_s3] sm:$0xff]  ;;  %v232_v17 = vld [vmem:[%s1514_s3 + $0x18] sm:$0xff]  ;;  %v97_v20 = vmul.f32 %v680_v1, %v26_v16  ;;  %v234_v29 = vld [vmem:[%s1514_s3 + $0x28] sm:$0xff]  ;;  %v99_v38 = vmul.f32 %v680_v1, %v28_v24 }
   0x5   :  { %v694_v5 = vld [vmem:[%s1515_s4] ss:$0 sm:$0xff]  ;;  %v165_v11 = vadd.f32 %v685_v2, %v94_v3  ;;  %v166_v25 = vadd.f32 %v685_v2, %v95_v12  ;;  %v167_v27 = vadd.f32 %v685_v2, %v96_v14  ;;  %v29_v34 = vld [vmem:[%s1511_s0 + $0x30] sm:$0xff]  ;;  %v30_v44 = vld [vmem:[%s1511_s0 + $0x38] sm:$0xff] }
   0x6   :  { %v699_v6 = vld [vmem:[%s1516_s5] ss:$0 sm:$0xff]  ;;  %v300_v7 = vmul.f32 %v694_v5, %v229_v4  ;;  %v301_v13 = vmul.f32 %v694_v5, %v230_v9  ;;  %v302_v19 = vmul.f32 %v694_v5, %v231_v15  ;;  %v303_v21 = vmul.f32 %v694_v5, %v232_v17  ;;  %v235_v39 = vld [vmem:[%s1514_s3 + $0x30] sm:$0xff]  ;;  %v236_v45 = vld [vmem:[%s1514_s3 + $0x38] sm:$0xff] }
   0x7   :  { %v27_v22 = vld [vmem:[%s1511_s0 + $0x20] sm:$0xff]  ;;  %v168_v32 = vadd.f32 %v685_v2, %v97_v20  ;;  %v305_v43 = vmul.f32 %v694_v5, %v234_v29  ;;  %v170_v48 = vadd.f32 %v685_v2, %v99_v38  ;;  %v100_v49 = vmul.f32 %v680_v1, %v29_v34  ;;  %v32_v56 = vld [vmem:[%s1511_s0 + $0x48] sm:$0xff]  ;;  %v33_v4 = vld [vmem:[%s1511_s0 + $0x50] sm:$0xff] }
   0x8   :  { %v371_v18 = vadd.f32 %v699_v6, %v300_v7  ;;  %v233_v23 = vld [vmem:[%s1514_s3 + $0x20] sm:$0xff]  ;;  %v372_v26 = vadd.f32 %v699_v6, %v301_v13  ;;  %v98_v28 = vmul.f32 %v680_v1, %v27_v22  ;;  %v373_v31 = vadd.f32 %v699_v6, %v302_v19  ;;  %v238_v3 = vld [vmem:[%s1514_s3 + $0x48] sm:$0xff]  ;;  %v34_v12 = vld [vmem:[%s1511_s0 + $0x58] sm:$0xff] }
   0x9   :  { %v374_v33 = vadd.f32 %v699_v6, %v303_v21  ;;  %v304_v37 = vmul.f32 %v694_v5, %v233_v23  ;;  %v31_v50 = vld [vmem:[%s1511_s0 + $0x40] sm:$0xff]  ;;  %v376_v54 = vadd.f32 %v699_v6, %v305_v43  ;;  %v306_v55 = vmul.f32 %v694_v5, %v235_v39  ;;  %v240_v17 = vld [vmem:[%s1514_s3 + $0x58] sm:$0xff]  ;;  %v37_v34 = vld [vmem:[%s1511_s0 + $0x70] sm:$0xff] }
   0xa   :  { %v435_v30 = vadd.f32 %v371_v18, %v165_v11  ;;  %v436_v35 = vadd.f32 %v372_v26, %v166_v25  ;;  %v169_v36 = vadd.f32 %v685_v2, %v98_v28  ;;  %v437_v41 = vadd.f32 %v373_v31, %v167_v27  ;;  %v237_v51 = vld [vmem:[%s1514_s3 + $0x40] sm:$0xff]  ;;  %v239_v11 = vld [vmem:[%s1514_s3 + $0x50] sm:$0xff]  ;;  %v36_v28 = vld [vmem:[%s1511_s0 + $0x68] sm:$0xff] }
   0xb   :  { %v438_v42 = vadd.f32 %v374_v33, %v168_v32  ;;  %v375_v47 = vadd.f32 %v699_v6, %v304_v37  ;;  %v171_v58 = vadd.f32 %v685_v2, %v100_v49  ;;  %v101_v59 = vmul.f32 %v680_v1, %v30_v44  ;;  %v35_v22 = vld [vmem:[%s1511_s0 + $0x60] sm:$0xff]  ;;  %v242_v33 = vld [vmem:[%s1514_s3 + $0x68] sm:$0xff]  ;;  %v243_v43 = vld [vmem:[%s1514_s3 + $0x70] sm:$0xff] }
   0xc   :  { %v499_v40 = vmax.f32 %v435_v30, 0.0  ;;  %v500_v46 = vmax.f32 %v436_v35, 0.0  ;;  %v501_v52 = vmax.f32 %v437_v41, 0.0  ;;  %v307_v60 = vmul.f32 %v694_v5, %v236_v45  ;;  %v241_v27 = vld [vmem:[%s1514_s3 + $0x60] sm:$0xff]  ;;  %v244_v49 = vld [vmem:[%s1514_s3 + $0x78] sm:$0xff] }
   0xd   :  { %v502_v53 = vmax.f32 %v438_v42, 0.0  ;;  %v439_v57 = vadd.f32 %v375_v47, %v169_v36  ;;  %v440_v61 = vadd.f32 %v376_v54, %v170_v48  ;;  %v377_v62 = vadd.f32 %v699_v6, %v306_v55  ;;  %v38_v48 = vld [vmem:[%s1511_s0 + $0x78] sm:$0xff]  ;;  %v39_v54 = vld [vmem:[%s1511_s0 + $0x80] sm:$0xff] }
   0xe   :  { %563 = vst [vmem:[%s1517_s6] sm:$0xff] %v499_v40  ;;  %564 = vst [vmem:[%s1517_s6 + $0x8] sm:$0xff] %v500_v46  ;;  %v102_v63 = vmul.f32 %v680_v1, %v31_v50  ;;  %v308_v0 = vmul.f32 %v694_v5, %v237_v51  ;;  %v172_v8 = vadd.f32 %v685_v2, %v101_v59  ;;  %v245_v55 = vld [vmem:[%s1514_s3 + $0x80] sm:$0xff] }
   0xf   :  { %565 = vst [vmem:[%s1517_s6 + $0x10] sm:$0xff] %v501_v52  ;;  %566 = vst [vmem:[%s1517_s6 + $0x18] sm:$0xff] %v502_v53  ;;  %v503_v7 = vmax.f32 %v439_v57, 0.0  ;;  %v378_v9 = vadd.f32 %v699_v6, %v307_v60  ;;  %v103_v10 = vmul.f32 %v680_v1, %v32_v56  ;;  %v504_v13 = vmax.f32 %v440_v61, 0.0  ;;  %v40_v60 = vld [vmem:[%s1511_s0 + $0x88] sm:$0xff] }
  0x10   :  { %v441_v14 = vadd.f32 %v377_v62, %v171_v58  ;;  %v173_v15 = vadd.f32 %v685_v2, %v102_v63  ;;  %v379_v16 = vadd.f32 %v699_v6, %v308_v0  ;;  %v309_v20 = vmul.f32 %v694_v5, %v238_v3 }
  0x11   :  { %567 = vst [vmem:[%s1517_s6 + $0x20] sm:$0xff] %v503_v7  ;;  %v442_v18 = vadd.f32 %v378_v9, %v172_v8  ;;  %v174_v19 = vadd.f32 %v685_v2, %v103_v10  ;;  %v104_v21 = vmul.f32 %v680_v1, %v33_v4  ;;  %568 = vst [vmem:[%s1517_s6 + $0x28] sm:$0xff] %v504_v13  ;;  %v246_v9 = vld [vmem:[%s1514_s3 + $0x88] sm:$0xff]  ;;  %v41_v10 = vld [vmem:[%s1511_s0 + $0x90] sm:$0xff] }
  0x12   :  { %v505_v23 = vmax.f32 %v441_v14, 0.0  ;;  %v443_v24 = vadd.f32 %v379_v16, %v173_v15  ;;  %v310_v25 = vmul.f32 %v694_v5, %v239_v11  ;;  %v105_v26 = vmul.f32 %v680_v1, %v34_v12  ;;  %v247_v15 = vld [vmem:[%s1514_s3 + $0x90] sm:$0xff]  ;;  %v42_v16 = vld [vmem:[%s1511_s0 + $0x98] sm:$0xff] }
  0x13   :  { %v506_v29 = vmax.f32 %v442_v18, 0.0  ;;  %v380_v30 = vadd.f32 %v699_v6, %v309_v20  ;;  %v175_v31 = vadd.f32 %v685_v2, %v104_v21  ;;  %v311_v32 = vmul.f32 %v694_v5, %v240_v17  ;;  %v248_v21 = vld [vmem:[%s1514_s3 + $0x98] sm:$0xff] }
  0x14   :  { %569 = vst [vmem:[%s1517_s6 + $0x30] sm:$0xff] %v505_v23  ;;  %v507_v35 = vmax.f32 %v443_v24, 0.0  ;;  %v381_v36 = vadd.f32 %v699_v6, %v310_v25  ;;  %v176_v37 = vadd.f32 %v685_v2, %v105_v26  ;;  %v106_v38 = vmul.f32 %v680_v1, %v35_v22  ;;  %v43_v26 = vld [vmem:[%s1511_s0 + $0xa0] sm:$0xff] }
  0x15   :  { %570 = vst [vmem:[%s1517_s6 + $0x38] sm:$0xff] %v506_v29  ;;  %v444_v39 = vadd.f32 %v380_v30, %v174_v19  ;;  %v382_v40 = vadd.f32 %v699_v6, %v311_v32  ;;  %v312_v41 = vmul.f32 %v694_v5, %v241_v27  ;;  %v107_v42 = vmul.f32 %v680_v1, %v36_v28  ;;  %v44_v32 = vld [vmem:[%s1511_s0 + $0xa8] sm:$0xff] }
  0x16   :  { %571 = vst [vmem:[%s1517_s6 + $0x40] sm:$0xff] %v507_v35  ;;  %v445_v44 = vadd.f32 %v381_v36, %v175_v31  ;;  %v177_v45 = vadd.f32 %v685_v2, %v106_v38  ;;  %v313_v46 = vmul.f32 %v694_v5, %v242_v33  ;;  %v108_v47 = vmul.f32 %v680_v1, %v37_v34  ;;  %v249_v31 = vld [vmem:[%s1514_s3 + $0xa0] sm:$0xff]  ;;  %v45_v38 = vld [vmem:[%s1511_s0 + $0xb0] sm:$0xff] }
  0x17   :  { %v508_v50 = vmax.f32 %v444_v39, 0.0  ;;  %v446_v51 = vadd.f32 %v382_v40, %v176_v37  ;;  %v383_v52 = vadd.f32 %v699_v6, %v312_v41  ;;  %v178_v53 = vadd.f32 %v685_v2, %v107_v42  ;;  %v250_v37 = vld [vmem:[%s1514_s3 + $0xa8] sm:$0xff] }
  0x18   :  { %v509_v56 = vmax.f32 %v445_v44, 0.0  ;;  %v384_v57 = vadd.f32 %v699_v6, %v313_v46  ;;  %v179_v58 = vadd.f32 %v685_v2, %v108_v47  ;;  %v314_v59 = vmul.f32 %v694_v5, %v243_v43  ;;  %v251_v47 = vld [vmem:[%s1514_s3 + $0xb0] sm:$0xff] }
  0x19   :  { %572 = vst [vmem:[%s1517_s6 + $0x48] sm:$0xff] %v508_v50  ;;  %v510_v61 = vmax.f32 %v446_v51, 0.0  ;;  %v447_v62 = vadd.f32 %v383_v52, %v177_v45  ;;  %v109_v63 = vmul.f32 %v680_v1, %v38_v48  ;;  %v315_v0 = vmul.f32 %v694_v5, %v244_v49  ;;  %v46_v52 = vld [vmem:[%s1511_s0 + $0xb8] sm:$0xff] }
  0x1a   :  { %573 = vst [vmem:[%s1517_s6 + $0x50] sm:$0xff] %v509_v56  ;;  %v448_v3 = vadd.f32 %v384_v57, %v178_v53  ;;  %v385_v4 = vadd.f32 %v699_v6, %v314_v59  ;;  %v110_v7 = vmul.f32 %v680_v1, %v39_v54  ;;  %v316_v8 = vmul.f32 %v694_v5, %v245_v55  ;;  %v252_v53 = vld [vmem:[%s1514_s3 + $0xb8] sm:$0xff]  ;;  %v253_v59 = vld [vmem:[%s1514_s3 + $0xc0] sm:$0xff] }
  0x1b   :  { %574 = vst [vmem:[%s1517_s6 + $0x58] sm:$0xff] %v510_v61  ;;  %v511_v11 = vmax.f32 %v447_v62, 0.0  ;;  %v180_v12 = vadd.f32 %v685_v2, %v109_v63  ;;  %v386_v13 = vadd.f32 %v699_v6, %v315_v0  ;;  %v111_v14 = vmul.f32 %v680_v1, %v40_v60  ;;  %v48_v0 = vld [vmem:[%s1511_s0 + $0xc8] sm:$0xff] }
  0x1c   :  { %v512_v17 = vmax.f32 %v448_v3, 0.0  ;;  %v449_v18 = vadd.f32 %v385_v4, %v179_v58  ;;  %v181_v19 = vadd.f32 %v685_v2, %v110_v7  ;;  %v387_v20 = vadd.f32 %v699_v6, %v316_v8  ;;  %v47_v58 = vld [vmem:[%s1511_s0 + $0xc0] sm:$0xff] }
  0x1d   :  { %575 = vst [vmem:[%s1517_s6 + $0x60] sm:$0xff] %v511_v11  ;;  %v450_v22 = vadd.f32 %v386_v13, %v180_v12  ;;  %v182_v23 = vadd.f32 %v685_v2, %v111_v14  ;;  %v317_v24 = vmul.f32 %v694_v5, %v246_v9  ;;  %v112_v25 = vmul.f32 %v680_v1, %v41_v10  ;;  %v254_v13 = vld [vmem:[%s1514_s3 + $0xc8] sm:$0xff]  ;;  %v49_v14 = vld [vmem:[%s1511_s0 + $0xd0] sm:$0xff] }
  0x1e   :  { %576 = vst [vmem:[%s1517_s6 + $0x68] sm:$0xff] %v512_v17  ;;  %v513_v27 = vmax.f32 %v449_v18, 0.0  ;;  %v451_v28 = vadd.f32 %v387_v20, %v181_v19  ;;  %v318_v29 = vmul.f32 %v694_v5, %v247_v15  ;;  %v113_v30 = vmul.f32 %v680_v1, %v42_v16  ;;  %v255_v19 = vld [vmem:[%s1514_s3 + $0xd0] sm:$0xff]  ;;  %v50_v20 = vld [vmem:[%s1511_s0 + $0xd8] sm:$0xff] }
  0x1f   :  { %v514_v33 = vmax.f32 %v450_v22, 0.0  ;;  %v388_v34 = vadd.f32 %v699_v6, %v317_v24  ;;  %v183_v35 = vadd.f32 %v685_v2, %v112_v25  ;;  %v319_v36 = vmul.f32 %v694_v5, %v248_v21  ;;  %v256_v25 = vld [vmem:[%s1514_s3 + $0xd8] sm:$0xff] }
  0x20   :  { %577 = vst [vmem:[%s1517_s6 + $0x70] sm:$0xff] %v513_v27  ;;  %v515_v39 = vmax.f32 %v451_v28, 0.0  ;;  %v389_v40 = vadd.f32 %v699_v6, %v318_v29  ;;  %v184_v41 = vadd.f32 %v685_v2, %v113_v30  ;;  %v114_v42 = vmul.f32 %v680_v1, %v43_v26  ;;  %v51_v30 = vld [vmem:[%s1511_s0 + $0xe0] sm:$0xff] }
  0x21   :  { %578 = vst [vmem:[%s1517_s6 + $0x78] sm:$0xff] %v514_v33  ;;  %v452_v43 = vadd.f32 %v388_v34, %v182_v23  ;;  %v390_v44 = vadd.f32 %v699_v6, %v319_v36  ;;  %v320_v45 = vmul.f32 %v694_v5, %v249_v31  ;;  %v115_v46 = vmul.f32 %v680_v1, %v44_v32  ;;  %v52_v36 = vld [vmem:[%s1511_s0 + $0xe8] sm:$0xff] }
  0x22   :  { %579 = vst [vmem:[%s1517_s6 + $0x80] sm:$0xff] %v515_v39  ;;  %v453_v48 = vadd.f32 %v389_v40, %v183_v35  ;;  %v185_v49 = vadd.f32 %v685_v2, %v114_v42  ;;  %v321_v50 = vmul.f32 %v694_v5, %v250_v37  ;;  %v116_v51 = vmul.f32 %v680_v1, %v45_v38  ;;  %v257_v35 = vld [vmem:[%s1514_s3 + $0xe0] sm:$0xff]  ;;  %v53_v42 = vld [vmem:[%s1511_s0 + $0xf0] sm:$0xff] }
  0x23   :  { %v516_v54 = vmax.f32 %v452_v43, 0.0  ;;  %v454_v55 = vadd.f32 %v390_v44, %v184_v41  ;;  %v391_v56 = vadd.f32 %v699_v6, %v320_v45  ;;  %v186_v57 = vadd.f32 %v685_v2, %v115_v46  ;;  %v258_v41 = vld [vmem:[%s1514_s3 + $0xe8] sm:$0xff] }
  0x24   :  { %v517_v60 = vmax.f32 %v453_v48, 0.0  ;;  %v392_v61 = vadd.f32 %v699_v6, %v321_v50  ;;  %v187_v62 = vadd.f32 %v685_v2, %v116_v51  ;;  %v322_v63 = vmul.f32 %v694_v5, %v251_v47  ;;  %v259_v51 = vld [vmem:[%s1514_s3 + $0xf0] sm:$0xff] }
  0x25   :  { %580 = vst [vmem:[%s1517_s6 + $0x88] sm:$0xff] %v516_v54  ;;  %v518_v3 = vmax.f32 %v454_v55, 0.0  ;;  %v455_v4 = vadd.f32 %v391_v56, %v185_v49  ;;  %v117_v7 = vmul.f32 %v680_v1, %v46_v52  ;;  %v323_v8 = vmul.f32 %v694_v5, %v252_v53  ;;  %v54_v56 = vld [vmem:[%s1511_s0 + $0xf8] sm:$0xff] }
  0x26   :  { %581 = vst [vmem:[%s1517_s6 + $0x90] sm:$0xff] %v517_v60  ;;  %v456_v9 = vadd.f32 %v392_v61, %v186_v57  ;;  %v393_v10 = vadd.f32 %v699_v6, %v322_v63  ;;  %v118_v11 = vmul.f32 %v680_v1, %v47_v58  ;;  %v324_v12 = vmul.f32 %v694_v5, %v253_v59  ;;  %v260_v57 = vld [vmem:[%s1514_s3 + $0xf8] sm:$0xff]  ;;  %v261_v63 = vld [vmem:[%s1514_s3 + $0x100] sm:$0xff] }
  0x27   :  { %582 = vst [vmem:[%s1517_s6 + $0x98] sm:$0xff] %v518_v3  ;;  %v519_v15 = vmax.f32 %v455_v4, 0.0  ;;  %v188_v16 = vadd.f32 %v685_v2, %v117_v7  ;;  %v394_v17 = vadd.f32 %v699_v6, %v323_v8  ;;  %v119_v18 = vmul.f32 %v680_v1, %v48_v0  ;;  %v56_v8 = vld [vmem:[%s1511_s0 + $0x108] sm:$0xff] }
  0x28   :  { %v520_v21 = vmax.f32 %v456_v9, 0.0  ;;  %v457_v22 = vadd.f32 %v393_v10, %v187_v62  ;;  %v189_v23 = vadd.f32 %v685_v2, %v118_v11  ;;  %v395_v24 = vadd.f32 %v699_v6, %v324_v12  ;;  %v55_v62 = vld [vmem:[%s1511_s0 + $0x100] sm:$0xff] }
  0x29   :  { %583 = vst [vmem:[%s1517_s6 + $0xa0] sm:$0xff] %v519_v15  ;;  %v458_v26 = vadd.f32 %v394_v17, %v188_v16  ;;  %v190_v27 = vadd.f32 %v685_v2, %v119_v18  ;;  %v325_v28 = vmul.f32 %v694_v5, %v254_v13  ;;  %v120_v29 = vmul.f32 %v680_v1, %v49_v14  ;;  %v262_v17 = vld [vmem:[%s1514_s3 + $0x108] sm:$0xff]  ;;  %v57_v18 = vld [vmem:[%s1511_s0 + $0x110] sm:$0xff] }
  0x2a   :  { %584 = vst [vmem:[%s1517_s6 + $0xa8] sm:$0xff] %v520_v21  ;;  %v521_v31 = vmax.f32 %v457_v22, 0.0  ;;  %v459_v32 = vadd.f32 %v395_v24, %v189_v23  ;;  %v326_v33 = vmul.f32 %v694_v5, %v255_v19  ;;  %v121_v34 = vmul.f32 %v680_v1, %v50_v20  ;;  %v263_v23 = vld [vmem:[%s1514_s3 + $0x110] sm:$0xff]  ;;  %v58_v24 = vld [vmem:[%s1511_s0 + $0x118] sm:$0xff] }
  0x2b   :  { %v522_v37 = vmax.f32 %v458_v26, 0.0  ;;  %v396_v38 = vadd.f32 %v699_v6, %v325_v28  ;;  %v191_v39 = vadd.f32 %v685_v2, %v120_v29  ;;  %v327_v40 = vmul.f32 %v694_v5, %v256_v25  ;;  %v264_v29 = vld [vmem:[%s1514_s3 + $0x118] sm:$0xff] }
  0x2c   :  { %585 = vst [vmem:[%s1517_s6 + $0xb0] sm:$0xff] %v521_v31  ;;  %v523_v43 = vmax.f32 %v459_v32, 0.0  ;;  %v397_v44 = vadd.f32 %v699_v6, %v326_v33  ;;  %v192_v45 = vadd.f32 %v685_v2, %v121_v34  ;;  %v122_v46 = vmul.f32 %v680_v1, %v51_v30  ;;  %v59_v34 = vld [vmem:[%s1511_s0 + $0x120] sm:$0xff] }
  0x2d   :  { %586 = vst [vmem:[%s1517_s6 + $0xb8] sm:$0xff] %v522_v37  ;;  %v460_v47 = vadd.f32 %v396_v38, %v190_v27  ;;  %v398_v48 = vadd.f32 %v699_v6, %v327_v40  ;;  %v328_v49 = vmul.f32 %v694_v5, %v257_v35  ;;  %v123_v50 = vmul.f32 %v680_v1, %v52_v36  ;;  %v60_v40 = vld [vmem:[%s1511_s0 + $0x128] sm:$0xff] }
  0x2e   :  { %587 = vst [vmem:[%s1517_s6 + $0xc0] sm:$0xff] %v523_v43  ;;  %v461_v52 = vadd.f32 %v397_v44, %v191_v39  ;;  %v193_v53 = vadd.f32 %v685_v2, %v122_v46  ;;  %v329_v54 = vmul.f32 %v694_v5, %v258_v41  ;;  %v124_v55 = vmul.f32 %v680_v1, %v53_v42  ;;  %v265_v39 = vld [vmem:[%s1514_s3 + $0x120] sm:$0xff]  ;;  %v61_v46 = vld [vmem:[%s1511_s0 + $0x130] sm:$0xff] }
  0x2f   :  { %v524_v58 = vmax.f32 %v460_v47, 0.0  ;;  %v462_v59 = vadd.f32 %v398_v48, %v192_v45  ;;  %v399_v60 = vadd.f32 %v699_v6, %v328_v49  ;;  %v194_v61 = vadd.f32 %v685_v2, %v123_v50  ;;  %v266_v45 = vld [vmem:[%s1514_s3 + $0x128] sm:$0xff] }
  0x30   :  { %v525_v0 = vmax.f32 %v461_v52, 0.0  ;;  %v400_v3 = vadd.f32 %v699_v6, %v329_v54  ;;  %v195_v4 = vadd.f32 %v685_v2, %v124_v55  ;;  %v330_v7 = vmul.f32 %v694_v5, %v259_v51  ;;  %v267_v55 = vld [vmem:[%s1514_s3 + $0x130] sm:$0xff] }
  0x31   :  { %588 = vst [vmem:[%s1517_s6 + $0xc8] sm:$0xff] %v524_v58  ;;  %v526_v9 = vmax.f32 %v462_v59, 0.0  ;;  %v463_v10 = vadd.f32 %v399_v60, %v193_v53  ;;  %v125_v11 = vmul.f32 %v680_v1, %v54_v56  ;;  %v331_v12 = vmul.f32 %v694_v5, %v260_v57  ;;  %v62_v60 = vld [vmem:[%s1511_s0 + $0x138] sm:$0xff] }
  0x32   :  { %589 = vst [vmem:[%s1517_s6 + $0xd0] sm:$0xff] %v525_v0  ;;  %v464_v13 = vadd.f32 %v400_v3, %v194_v61  ;;  %v401_v14 = vadd.f32 %v699_v6, %v330_v7  ;;  %v126_v15 = vmul.f32 %v680_v1, %v55_v62  ;;  %v332_v16 = vmul.f32 %v694_v5, %v261_v63  ;;  %v268_v61 = vld [vmem:[%s1514_s3 + $0x138] sm:$0xff]  ;;  %v269_v7 = vld [vmem:[%s1514_s3 + $0x140] sm:$0xff] }
  0x33   :  { %590 = vst [vmem:[%s1517_s6 + $0xd8] sm:$0xff] %v526_v9  ;;  %v527_v19 = vmax.f32 %v463_v10, 0.0  ;;  %v196_v20 = vadd.f32 %v685_v2, %v125_v11  ;;  %v402_v21 = vadd.f32 %v699_v6, %v331_v12  ;;  %v127_v22 = vmul.f32 %v680_v1, %v56_v8  ;;  %v64_v12 = vld [vmem:[%s1511_s0 + $0x148] sm:$0xff] }
  0x34   :  { %v528_v25 = vmax.f32 %v464_v13, 0.0  ;;  %v465_v26 = vadd.f32 %v401_v14, %v195_v4  ;;  %v197_v27 = vadd.f32 %v685_v2, %v126_v15  ;;  %v403_v28 = vadd.f32 %v699_v6, %v332_v16  ;;  %v63_v4 = vld [vmem:[%s1511_s0 + $0x140] sm:$0xff] }
  0x35   :  { %591 = vst [vmem:[%s1517_s6 + $0xe0] sm:$0xff] %v527_v19  ;;  %v466_v30 = vadd.f32 %v402_v21, %v196_v20  ;;  %v198_v31 = vadd.f32 %v685_v2, %v127_v22  ;;  %v333_v32 = vmul.f32 %v694_v5, %v262_v17  ;;  %v128_v33 = vmul.f32 %v680_v1, %v57_v18  ;;  %v270_v21 = vld [vmem:[%s1514_s3 + $0x148] sm:$0xff]  ;;  %v65_v22 = vld [vmem:[%s1511_s0 + $0x150] sm:$0xff] }
  0x36   :  { %592 = vst [vmem:[%s1517_s6 + $0xe8] sm:$0xff] %v528_v25  ;;  %v529_v35 = vmax.f32 %v465_v26, 0.0  ;;  %v467_v36 = vadd.f32 %v403_v28, %v197_v27  ;;  %v334_v37 = vmul.f32 %v694_v5, %v263_v23  ;;  %v129_v38 = vmul.f32 %v680_v1, %v58_v24  ;;  %v271_v27 = vld [vmem:[%s1514_s3 + $0x150] sm:$0xff]  ;;  %v66_v28 = vld [vmem:[%s1511_s0 + $0x158] sm:$0xff] }
  0x37   :  { %v530_v41 = vmax.f32 %v466_v30, 0.0  ;;  %v404_v42 = vadd.f32 %v699_v6, %v333_v32  ;;  %v199_v43 = vadd.f32 %v685_v2, %v128_v33  ;;  %v335_v44 = vmul.f32 %v694_v5, %v264_v29  ;;  %v272_v33 = vld [vmem:[%s1514_s3 + $0x158] sm:$0xff] }
  0x38   :  { %593 = vst [vmem:[%s1517_s6 + $0xf0] sm:$0xff] %v529_v35  ;;  %v531_v47 = vmax.f32 %v467_v36, 0.0  ;;  %v405_v48 = vadd.f32 %v699_v6, %v334_v37  ;;  %v200_v49 = vadd.f32 %v685_v2, %v129_v38  ;;  %v130_v50 = vmul.f32 %v680_v1, %v59_v34  ;;  %v67_v38 = vld [vmem:[%s1511_s0 + $0x160] sm:$0xff] }
  0x39   :  { %594 = vst [vmem:[%s1517_s6 + $0xf8] sm:$0xff] %v530_v41  ;;  %v468_v51 = vadd.f32 %v404_v42, %v198_v31  ;;  %v406_v52 = vadd.f32 %v699_v6, %v335_v44  ;;  %v336_v53 = vmul.f32 %v694_v5, %v265_v39  ;;  %v131_v54 = vmul.f32 %v680_v1, %v60_v40  ;;  %v68_v44 = vld [vmem:[%s1511_s0 + $0x168] sm:$0xff] }
  0x3a   :  { %595 = vst [vmem:[%s1517_s6 + $0x100] sm:$0xff] %v531_v47  ;;  %v469_v56 = vadd.f32 %v405_v48, %v199_v43  ;;  %v201_v57 = vadd.f32 %v685_v2, %v130_v50  ;;  %v337_v58 = vmul.f32 %v694_v5, %v266_v45  ;;  %v132_v59 = vmul.f32 %v680_v1, %v61_v46  ;;  %v273_v43 = vld [vmem:[%s1514_s3 + $0x160] sm:$0xff]  ;;  %v69_v50 = vld [vmem:[%s1511_s0 + $0x170] sm:$0xff] }
  0x3b   :  { %v532_v62 = vmax.f32 %v468_v51, 0.0  ;;  %v470_v63 = vadd.f32 %v406_v52, %v200_v49  ;;  %v407_v0 = vadd.f32 %v699_v6, %v336_v53  ;;  %v202_v3 = vadd.f32 %v685_v2, %v131_v54  ;;  %v274_v49 = vld [vmem:[%s1514_s3 + $0x168] sm:$0xff] }
  0x3c   :  { %v533_v8 = vmax.f32 %v469_v56, 0.0  ;;  %v408_v9 = vadd.f32 %v699_v6, %v337_v58  ;;  %v203_v10 = vadd.f32 %v685_v2, %v132_v59  ;;  %v338_v11 = vmul.f32 %v694_v5, %v267_v55  ;;  %v275_v59 = vld [vmem:[%s1514_s3 + $0x170] sm:$0xff] }
  0x3d   :  { %596 = vst [vmem:[%s1517_s6 + $0x108] sm:$0xff] %v532_v62  ;;  %v534_v13 = vmax.f32 %v470_v63, 0.0  ;;  %v471_v14 = vadd.f32 %v407_v0, %v201_v57  ;;  %v133_v15 = vmul.f32 %v680_v1, %v62_v60  ;;  %v339_v16 = vmul.f32 %v694_v5, %v268_v61  ;;  %v70_v0 = vld [vmem:[%s1511_s0 + $0x178] sm:$0xff] }
  0x3e   :  { %597 = vst [vmem:[%s1517_s6 + $0x110] sm:$0xff] %v533_v8  ;;  %v472_v17 = vadd.f32 %v408_v9, %v202_v3  ;;  %v409_v18 = vadd.f32 %v699_v6, %v338_v11  ;;  %v134_v19 = vmul.f32 %v680_v1, %v63_v4  ;;  %v340_v20 = vmul.f32 %v694_v5, %v269_v7  ;;  %v276_v3 = vld [vmem:[%s1514_s3 + $0x178] sm:$0xff]  ;;  %v277_v11 = vld [vmem:[%s1514_s3 + $0x180] sm:$0xff] }
  0x3f   :  { %598 = vst [vmem:[%s1517_s6 + $0x118] sm:$0xff] %v534_v13  ;;  %v535_v23 = vmax.f32 %v471_v14, 0.0  ;;  %v204_v24 = vadd.f32 %v685_v2, %v133_v15  ;;  %v410_v25 = vadd.f32 %v699_v6, %v339_v16  ;;  %v135_v26 = vmul.f32 %v680_v1, %v64_v12  ;;  %v72_v16 = vld [vmem:[%s1511_s0 + $0x188] sm:$0xff] }
  0x40   :  { %v536_v29 = vmax.f32 %v472_v17, 0.0  ;;  %v473_v30 = vadd.f32 %v409_v18, %v203_v10  ;;  %v205_v31 = vadd.f32 %v685_v2, %v134_v19  ;;  %v411_v32 = vadd.f32 %v699_v6, %v340_v20  ;;  %v71_v10 = vld [vmem:[%s1511_s0 + $0x180] sm:$0xff] }
  0x41   :  { %599 = vst [vmem:[%s1517_s6 + $0x120] sm:$0xff] %v535_v23  ;;  %v474_v34 = vadd.f32 %v410_v25, %v204_v24  ;;  %v206_v35 = vadd.f32 %v685_v2, %v135_v26  ;;  %v341_v36 = vmul.f32 %v694_v5, %v270_v21  ;;  %v136_v37 = vmul.f32 %v680_v1, %v65_v22  ;;  %v278_v25 = vld [vmem:[%s1514_s3 + $0x188] sm:$0xff]  ;;  %v73_v26 = vld [vmem:[%s1511_s0 + $0x190] sm:$0xff] }
  0x42   :  { %600 = vst [vmem:[%s1517_s6 + $0x128] sm:$0xff] %v536_v29  ;;  %v537_v39 = vmax.f32 %v473_v30, 0.0  ;;  %v475_v40 = vadd.f32 %v411_v32, %v205_v31  ;;  %v342_v41 = vmul.f32 %v694_v5, %v271_v27  ;;  %v137_v42 = vmul.f32 %v680_v1, %v66_v28  ;;  %v279_v31 = vld [vmem:[%s1514_s3 + $0x190] sm:$0xff]  ;;  %v74_v32 = vld [vmem:[%s1511_s0 + $0x198] sm:$0xff] }
  0x43   :  { %v538_v45 = vmax.f32 %v474_v34, 0.0  ;;  %v412_v46 = vadd.f32 %v699_v6, %v341_v36  ;;  %v207_v47 = vadd.f32 %v685_v2, %v136_v37  ;;  %v343_v48 = vmul.f32 %v694_v5, %v272_v33  ;;  %v280_v37 = vld [vmem:[%s1514_s3 + $0x198] sm:$0xff] }
  0x44   :  { %601 = vst [vmem:[%s1517_s6 + $0x130] sm:$0xff] %v537_v39  ;;  %v539_v51 = vmax.f32 %v475_v40, 0.0  ;;  %v413_v52 = vadd.f32 %v699_v6, %v342_v41  ;;  %v208_v53 = vadd.f32 %v685_v2, %v137_v42  ;;  %v138_v54 = vmul.f32 %v680_v1, %v67_v38  ;;  %v75_v42 = vld [vmem:[%s1511_s0 + $0x1a0] sm:$0xff] }
  0x45   :  { %602 = vst [vmem:[%s1517_s6 + $0x138] sm:$0xff] %v538_v45  ;;  %v476_v55 = vadd.f32 %v412_v46, %v206_v35  ;;  %v414_v56 = vadd.f32 %v699_v6, %v343_v48  ;;  %v344_v57 = vmul.f32 %v694_v5, %v273_v43  ;;  %v139_v58 = vmul.f32 %v680_v1, %v68_v44  ;;  %v76_v48 = vld [vmem:[%s1511_s0 + $0x1a8] sm:$0xff] }
  0x46   :  { %603 = vst [vmem:[%s1517_s6 + $0x140] sm:$0xff] %v539_v51  ;;  %v477_v60 = vadd.f32 %v413_v52, %v207_v47  ;;  %v209_v61 = vadd.f32 %v685_v2, %v138_v54  ;;  %v345_v62 = vmul.f32 %v694_v5, %v274_v49  ;;  %v140_v63 = vmul.f32 %v680_v1, %v69_v50  ;;  %v281_v47 = vld [vmem:[%s1514_s3 + $0x1a0] sm:$0xff]  ;;  %v77_v54 = vld [vmem:[%s1511_s0 + $0x1b0] sm:$0xff] }
  0x47   :  { %v540_v4 = vmax.f32 %v476_v55, 0.0  ;;  %v478_v7 = vadd.f32 %v414_v56, %v208_v53  ;;  %v415_v8 = vadd.f32 %v699_v6, %v344_v57  ;;  %v210_v9 = vadd.f32 %v685_v2, %v139_v58  ;;  %v282_v53 = vld [vmem:[%s1514_s3 + $0x1a8] sm:$0xff] }
  0x48   :  { %v541_v12 = vmax.f32 %v477_v60, 0.0  ;;  %v416_v13 = vadd.f32 %v699_v6, %v345_v62  ;;  %v211_v14 = vadd.f32 %v685_v2, %v140_v63  ;;  %v346_v15 = vmul.f32 %v694_v5, %v275_v59  ;;  %v283_v63 = vld [vmem:[%s1514_s3 + $0x1b0] sm:$0xff] }
  0x49   :  { %604 = vst [vmem:[%s1517_s6 + $0x148] sm:$0xff] %v540_v4  ;;  %v542_v17 = vmax.f32 %v478_v7, 0.0  ;;  %v479_v18 = vadd.f32 %v415_v8, %v209_v61  ;;  %v141_v19 = vmul.f32 %v680_v1, %v70_v0  ;;  %v347_v20 = vmul.f32 %v694_v5, %v276_v3  ;;  %v78_v8 = vld [vmem:[%s1511_s0 + $0x1b8] sm:$0xff] }
  0x4a   :  { %605 = vst [vmem:[%s1517_s6 + $0x150] sm:$0xff] %v541_v12  ;;  %v480_v21 = vadd.f32 %v416_v13, %v210_v9  ;;  %v417_v22 = vadd.f32 %v699_v6, %v346_v15  ;;  %v142_v23 = vmul.f32 %v680_v1, %v71_v10  ;;  %v348_v24 = vmul.f32 %v694_v5, %v277_v11  ;;  %v284_v9 = vld [vmem:[%s1514_s3 + $0x1b8] sm:$0xff]  ;;  %v285_v15 = vld [vmem:[%s1514_s3 + $0x1c0] sm:$0xff] }
  0x4b   :  { %606 = vst [vmem:[%s1517_s6 + $0x158] sm:$0xff] %v542_v17  ;;  %v543_v27 = vmax.f32 %v479_v18, 0.0  ;;  %v212_v28 = vadd.f32 %v685_v2, %v141_v19  ;;  %v418_v29 = vadd.f32 %v699_v6, %v347_v20  ;;  %v143_v30 = vmul.f32 %v680_v1, %v72_v16  ;;  %v80_v20 = vld [vmem:[%s1511_s0 + $0x1c8] sm:$0xff] }
  0x4c   :  { %v544_v33 = vmax.f32 %v480_v21, 0.0  ;;  %v481_v34 = vadd.f32 %v417_v22, %v211_v14  ;;  %v213_v35 = vadd.f32 %v685_v2, %v142_v23  ;;  %v419_v36 = vadd.f32 %v699_v6, %v348_v24  ;;  %v79_v14 = vld [vmem:[%s1511_s0 + $0x1c0] sm:$0xff] }
  0x4d   :  { %607 = vst [vmem:[%s1517_s6 + $0x160] sm:$0xff] %v543_v27  ;;  %v482_v38 = vadd.f32 %v418_v29, %v212_v28  ;;  %v214_v39 = vadd.f32 %v685_v2, %v143_v30  ;;  %v349_v40 = vmul.f32 %v694_v5, %v278_v25  ;;  %v144_v41 = vmul.f32 %v680_v1, %v73_v26  ;;  %v286_v29 = vld [vmem:[%s1514_s3 + $0x1c8] sm:$0xff]  ;;  %v81_v30 = vld [vmem:[%s1511_s0 + $0x1d0] sm:$0xff] }
  0x4e   :  { %608 = vst [vmem:[%s1517_s6 + $0x168] sm:$0xff] %v544_v33  ;;  %v545_v43 = vmax.f32 %v481_v34, 0.0  ;;  %v483_v44 = vadd.f32 %v419_v36, %v213_v35  ;;  %v350_v45 = vmul.f32 %v694_v5, %v279_v31  ;;  %v145_v46 = vmul.f32 %v680_v1, %v74_v32  ;;  %v82_v35 = vld [vmem:[%s1511_s0 + $0x1d8] sm:$0xff] }
  0x4f   :  { %v546_v49 = vmax.f32 %v482_v38, 0.0  ;;  %v420_v50 = vadd.f32 %v699_v6, %v349_v40  ;;  %v215_v51 = vadd.f32 %v685_v2, %v144_v41  ;;  %v351_v52 = vmul.f32 %v694_v5, %v280_v37  ;;  %v288_v40 = vld [vmem:[%s1514_s3 + $0x1d8] sm:$0xff]  ;;  %v635_v41 = vld [vmem:[%s1513_s2] ss:$0 sm:$0xff] }
  0x50   :  { %609 = vst [vmem:[%s1517_s6 + $0x170] sm:$0xff] %v545_v43  ;;  %v547_v55 = vmax.f32 %v483_v44, 0.0  ;;  %v421_v56 = vadd.f32 %v699_v6, %v350_v45  ;;  %v216_v57 = vadd.f32 %v685_v2, %v145_v46  ;;  %v146_v58 = vmul.f32 %v680_v1, %v75_v42  ;;  %v83_v45 = vld [vmem:[%s1511_s0 + $0x1e0] sm:$0xff] }
  0x51   :  { %610 = vst [vmem:[%s1517_s6 + $0x178] sm:$0xff] %v546_v49  ;;  %v484_v59 = vadd.f32 %v420_v50, %v214_v39  ;;  %v422_v60 = vadd.f32 %v699_v6, %v351_v52  ;;  %v352_v61 = vmul.f32 %v694_v5, %v281_v47  ;;  %v147_v62 = vmul.f32 %v680_v1, %v76_v48  ;;  %v289_v50 = vld [vmem:[%s1514_s3 + $0x1e0] sm:$0xff] }
  0x52   :  { %611 = vst [vmem:[%s1517_s6 + $0x180] sm:$0xff] %v547_v55  ;;  %v485_v0 = vadd.f32 %v421_v56, %v215_v51  ;;  %v217_v3 = vadd.f32 %v685_v2, %v146_v58  ;;  %v353_v4 = vmul.f32 %v694_v5, %v282_v53  ;;  %v148_v7 = vmul.f32 %v680_v1, %v77_v54  ;;  %v84_v51 = vld [vmem:[%s1511_s0 + $0x1e8] sm:$0xff]  ;;  %v638_v53 = vld [vmem:[%s1516_s5] ss:$0 sm:$0xff]  ;;  %v85_v58 = vld [vmem:[%s1511_s0 + $0x1f0] sm:$0xff] }
  0x53   :  { %v548_v10 = vmax.f32 %v484_v59, 0.0  ;;  %v486_v11 = vadd.f32 %v422_v60, %v216_v57  ;;  %v423_v12 = vadd.f32 %v699_v6, %v352_v61  ;;  %v218_v13 = vadd.f32 %v685_v2, %v147_v62  ;;  %v290_v57 = vld [vmem:[%s1514_s3 + $0x1e8] sm:$0xff] }
  0x54   :  { %v549_v16 = vmax.f32 %v485_v0, 0.0  ;;  %v424_v17 = vadd.f32 %v699_v6, %v353_v4  ;;  %v219_v18 = vadd.f32 %v685_v2, %v148_v7  ;;  %v354_v19 = vmul.f32 %v694_v5, %v283_v63  ;;  %v291_v7 = vld [vmem:[%s1514_s3 + $0x1f0] sm:$0xff] }
  0x55   :  { %612 = vst [vmem:[%s1517_s6 + $0x188] sm:$0xff] %v548_v10  ;;  %v550_v21 = vmax.f32 %v486_v11, 0.0  ;;  %v487_v22 = vadd.f32 %v423_v12, %v217_v3  ;;  %v149_v23 = vmul.f32 %v680_v1, %v78_v8  ;;  %v355_v24 = vmul.f32 %v694_v5, %v284_v9  ;;  %v86_v12 = vld [vmem:[%s1511_s0 + $0x1f8] sm:$0xff] }
  0x56   :  { %613 = vst [vmem:[%s1517_s6 + $0x190] sm:$0xff] %v549_v16  ;;  %v488_v25 = vadd.f32 %v424_v17, %v218_v13  ;;  %v425_v26 = vadd.f32 %v699_v6, %v354_v19  ;;  %v150_v27 = vmul.f32 %v680_v1, %v79_v14  ;;  %v356_v28 = vmul.f32 %v694_v5, %v285_v15  ;;  %v287_v5 = vld [vmem:[%s1514_s3 + $0x1d0] sm:$0xff]  ;;  %v292_v13 = vld [vmem:[%s1514_s3 + $0x1f8] sm:$0xff] }
  0x57   :  { %614 = vst [vmem:[%s1517_s6 + $0x198] sm:$0xff] %v550_v21  ;;  %v551_v31 = vmax.f32 %v487_v22, 0.0  ;;  %v220_v32 = vadd.f32 %v685_v2, %v149_v23  ;;  %v426_v33 = vadd.f32 %v699_v6, %v355_v24  ;;  %v151_v34 = vmul.f32 %v680_v1, %v80_v20 }
  0x58   :  { %v552_v36 = vmax.f32 %v488_v25, 0.0  ;;  %v489_v37 = vadd.f32 %v425_v26, %v219_v18  ;;  %v221_v38 = vadd.f32 %v685_v2, %v150_v27  ;;  %v427_v39 = vadd.f32 %v699_v6, %v356_v28  ;;  %v636_v2 = vld [vmem:[%s1515_s4] ss:$0 sm:$0xff] }
  0x59   :  { %615 = vst [vmem:[%s1517_s6 + $0x1a0] sm:$0xff] %v551_v31  ;;  %v490_v1 = vadd.f32 %v426_v33, %v220_v32  ;;  %v222_v42 = vadd.f32 %v635_v41, %v151_v34  ;;  %v357_v43 = vmul.f32 %v636_v2, %v286_v29  ;;  %v637_v6 = vld [vmem:[%s1512_s1] ss:$0 sm:$0xff]  ;;  %v358_v48 = vmul.f32 %v636_v2, %v287_v5 }
  0x5a   :  { %v152_v44 = vmul.f32 %v637_v6, %v81_v30  ;;  %616 = vst [vmem:[%s1517_s6 + $0x1a8] sm:$0xff] %v552_v36  ;;  %v553_v46 = vmax.f32 %v489_v37, 0.0  ;;  %v491_v47 = vadd.f32 %v427_v39, %v221_v38  ;;  %v153_v49 = vmul.f32 %v637_v6, %v82_v35 }
  0x5b   :  { %v554_v52 = vmax.f32 %v490_v1, 0.0  ;;  %v428_v54 = vadd.f32 %v638_v53, %v357_v43  ;;  %v359_v56 = vmul.f32 %v636_v2, %v288_v40  ;;  %v429_v60 = vadd.f32 %v638_v53, %v358_v48 }
  0x5c   :  { %v223_v55 = vadd.f32 %v635_v41, %v152_v44  ;;  %617 = vst [vmem:[%s1517_s6 + $0x1b0] sm:$0xff] %v553_v46  ;;  %v555_v59 = vmax.f32 %v491_v47, 0.0  ;;  %v224_v61 = vadd.f32 %v635_v41, %v153_v49  ;;  %v154_v62 = vmul.f32 %v637_v6, %v83_v45 }
  0x5d   :  { %618 = vst [vmem:[%s1517_s6 + $0x1b8] sm:$0xff] %v554_v52  ;;  %v492_v63 = vadd.f32 %v428_v54, %v222_v42  ;;  %v430_v0 = vadd.f32 %v638_v53, %v359_v56  ;;  %v360_v3 = vmul.f32 %v636_v2, %v289_v50  ;;  %v155_v4 = vmul.f32 %v637_v6, %v84_v51 }
  0x5e   :  { %619 = vst [vmem:[%s1517_s6 + $0x1c0] sm:$0xff] %v555_v59  ;;  %v493_v8 = vadd.f32 %v429_v60, %v223_v55  ;;  %v225_v9 = vadd.f32 %v635_v41, %v154_v62  ;;  %v361_v10 = vmul.f32 %v636_v2, %v290_v57  ;;  %v156_v11 = vmul.f32 %v637_v6, %v85_v58 }
  0x5f   :  { %v556_v14 = vmax.f32 %v492_v63, 0.0  ;;  %v494_v15 = vadd.f32 %v430_v0, %v224_v61  ;;  %v431_v16 = vadd.f32 %v638_v53, %v360_v3  ;;  %v226_v17 = vadd.f32 %v635_v41, %v155_v4 }
  0x60   :  { %v557_v18 = vmax.f32 %v493_v8, 0.0  ;;  %v432_v19 = vadd.f32 %v638_v53, %v361_v10  ;;  %v227_v20 = vadd.f32 %v635_v41, %v156_v11  ;;  %v362_v21 = vmul.f32 %v636_v2, %v291_v7 }
  0x61   :  { %620 = vst [vmem:[%s1517_s6 + $0x1c8] sm:$0xff] %v556_v14  ;;  %v558_v22 = vmax.f32 %v494_v15, 0.0  ;;  %v495_v23 = vadd.f32 %v431_v16, %v225_v9  ;;  %v157_v24 = vmul.f32 %v637_v6, %v86_v12  ;;  %v363_v25 = vmul.f32 %v636_v2, %v292_v13 }
  0x62   :  { %621 = vst [vmem:[%s1517_s6 + $0x1d0] sm:$0xff] %v557_v18  ;;  %v496_v26 = vadd.f32 %v432_v19, %v226_v17  ;;  %v433_v27 = vadd.f32 %v638_v53, %v362_v21 }
  0x63   :  { %622 = vst [vmem:[%s1517_s6 + $0x1d8] sm:$0xff] %v558_v22  ;;  %v559_v28 = vmax.f32 %v495_v23, 0.0  ;;  %v228_v29 = vadd.f32 %v635_v41, %v157_v24  ;;  %v434_v30 = vadd.f32 %v638_v53, %v363_v25 }
  0x64   :  { %v560_v31 = vmax.f32 %v496_v26, 0.0  ;;  %v497_v32 = vadd.f32 %v433_v27, %v227_v20 }
  0x65   :  { %623 = vst [vmem:[%s1517_s6 + $0x1e0] sm:$0xff] %v559_v28  ;;  %v498_v33 = vadd.f32 %v434_v30, %v228_v29 }
  0x66   :  { %624 = vst [vmem:[%s1517_s6 + $0x1e8] sm:$0xff] %v560_v31  ;;  %v561_v34 = vmax.f32 %v497_v32, 0.0 }
  0x67   :  { %v562_v5 = vmax.f32 %v498_v33, 0.0 }
  0x68   :  { %625 = vst [vmem:[%s1517_s6 + $0x1f0] sm:$0xff] %v561_v34 }
  0x69   :  { %626 = vst [vmem:[%s1517_s6 + $0x1f8] sm:$0xff] %v562_v5 }

// kernel: bottleneck_forward.7
= control target key start
LH: loop header
LB: loop body
LE: loop exit
PB: predicated region body
PF: predicated region fallthrough
CT: control target
= control target key end

     0   :  { %s2309_s3 = inlined_call_operand.vmem [shape: bf16[128,128], index: 3, kind: input, shape index: {}]   ;;  %s2310_s0 = inlined_call_operand.vmem [shape: f32[512,128], index: 0, kind: input, shape index: {}]   ;;  %s2311_s1 = inlined_call_operand.vmem [shape: f32[1,128], index: 1, kind: input, shape index: {}]   ;;  %s2312_s2 = inlined_call_operand.vmem [shape: f32[1,128], index: 2, kind: input, shape index: {}]   ;;  %s2313_s4 = inlined_call_operand.vmem [shape: f32[512,128], index: 4, kind: output, shape index: {0}]   ;;  %s2314_s5 = inlined_call_operand.vmem [shape: f32[1,2,128], index: 5, kind: output, shape index: {1}]  }
   0x1   :  { %v1424_v0 = vld [vmem:[%s2309_s3 + $0x38] sm:$0xff]   ;;  %v1425_v1 = vld [vmem:[%s2309_s3 + $0x30] sm:$0xff]   ;;  %v1426_v2 = vld [vmem:[%s2309_s3 + $0x28] sm:$0xff]  }
   0x2   :  { %1328 = vmatprep.subr.bf16.mxu0 %v1424_v0  ;;  %1408 = vmatprep.subr.bf16.mxu1 %v1424_v0  ;;  %v1427_v3 = vld [vmem:[%s2309_s3 + $0x20] sm:$0xff]   ;;  %v89_v5 = vld [vmem:[%s2310_s0 + $0x8] sm:$0xff]  ;;  %v90_v10 = vld [vmem:[%s2310_s0 + $0x10] sm:$0xff] }
   0x3   :  { %1329 = vmatpush3.bf16.msra.mxu0 %v1424_v0  ;;  %1416 = vmatpush3.bf16.msra.mxu1 %v1424_v0  ;;  %v88_v4 = vld [vmem:[%s2310_s0] sm:$0xff]  ;;  %v1498_v11 = vld [vmem:[%s2309_s3 + $0x18] sm:$0xff]   ;;  %v93_v16 = vld [vmem:[%s2310_s0 + $0x28] sm:$0xff] }
   0x4   :  { %1330 = vmatprep.subr.bf16.mxu0 %v1425_v1  ;;  %1409 = vmatprep.subr.bf16.mxu1 %v1425_v1  ;;  %v1483_v6 = vld [vmem:[%s2311_s1] ss:$0 sm:$0xff]  ;;  %v91_v14 = vld [vmem:[%s2310_s0 + $0x18] sm:$0xff]  ;;  %v94_v17 = vld [vmem:[%s2310_s0 + $0x30] sm:$0xff] }
   0x5   :  { %v159_v7 = vmul.f32 %v1483_v6, %v88_v4  ;;  %v160_v8 = vmul.f32 %v1483_v6, %v89_v5  ;;  %v1490_v9 = vld [vmem:[%s2312_s2] ss:$0 sm:$0xff]  ;;  %v95_v18 = vld [vmem:[%s2310_s0 + $0x38] sm:$0xff]  ;;  %v161_v21 = vmul.f32 %v1483_v6, %v90_v10  ;;  %v97_v23 = vld [vmem:[%s2310_s0 + $0x48] sm:$0xff]  ;;  %v162_v24 = vmul.f32 %v1483_v6, %v91_v14 }
   0x6   :  { %v92_v15 = vld [vmem:[%s2310_s0 + $0x20] sm:$0xff]  ;;  %v98_v26 = vld [vmem:[%s2310_s0 + $0x50] sm:$0xff]  ;;  %v99_v27 = vld [vmem:[%s2310_s0 + $0x58] sm:$0xff]  ;;  %v164_v29 = vmul.f32 %v1483_v6, %v93_v16  ;;  %v165_v30 = vmul.f32 %v1483_v6, %v94_v17  ;;  %v166_v31 = vmul.f32 %v1483_v6, %v95_v18  ;;  %v168_v36 = vmul.f32 %v1483_v6, %v97_v23 }
   0x7   :  { %1331 = vmatpush3.bf16.msra.mxu0 %v1425_v1  ;;  %1417 = vmatpush3.bf16.msra.mxu1 %v1425_v1  ;;  %v230_v12 = vadd.f32 %v1490_v9, %v159_v7  ;;  %v231_v13 = vadd.f32 %v1490_v9, %v160_v8  ;;  %v96_v22 = vld [vmem:[%s2310_s0 + $0x40] sm:$0xff]  ;;  %v163_v25 = vmul.f32 %v1483_v6, %v92_v15  ;;  %v101_v33 = vld [vmem:[%s2310_s0 + $0x68] sm:$0xff]  ;;  %v1429_v34 = vld [vmem:[%s2309_s3 + $0x10] sm:$0xff]  }
   0x8   :  { %1332 = vmatprep.subr.bf16.mxu0 %v1426_v2  ;;  %1410 = vmatprep.subr.bf16.mxu1 %v1426_v2  ;;  %v100_v32 = vld [vmem:[%s2310_s0 + $0x60] sm:$0xff]  ;;  %v167_v35 = vmul.f32 %v1483_v6, %v96_v22  ;;  %v232_v37 = vadd.f32 %v1490_v9, %v161_v21  ;;  %v169_v38 = vmul.f32 %v1483_v6, %v98_v26  ;;  %v102_v44 = vld [vmem:[%s2310_s0 + $0x70] sm:$0xff]  ;;  %v103_v48 = vld [vmem:[%s2310_s0 + $0x78] sm:$0xff] }
   0x9   :  { %v294_v19 = vmax.f32 %v230_v12, 0.0  ;;  %v295_v20 = vmax.f32 %v231_v13, 0.0  ;;  %v170_v39 = vmul.f32 %v1483_v6, %v99_v27  ;;  %v233_v40 = vadd.f32 %v1490_v9, %v162_v24  ;;  %v104_v49 = vld [vmem:[%s2310_s0 + $0x80] sm:$0xff]  ;;  %v1571_v50 = vld [vmem:[%s2309_s3 + $0x8] sm:$0xff]   ;;  %v106_v0 = vld [vmem:[%s2310_s0 + $0x90] sm:$0xff] }
   0xa   :  { %v234_v41 = vadd.f32 %v1490_v9, %v163_v25  ;;  %v171_v42 = vmul.f32 %v1483_v6, %v100_v32  ;;  %v172_v43 = vmul.f32 %v1483_v6, %v101_v33  ;;  %v235_v45 = vadd.f32 %v1490_v9, %v164_v29  ;;  %v105_v55 = vld [vmem:[%s2310_s0 + $0x88] sm:$0xff]  ;;  %v107_v5 = vld [vmem:[%s2310_s0 + $0x98] sm:$0xff]  ;;  %v1431_v7 = vld [vmem:[%s2309_s3] sm:$0xff]  }
   0xb   :  { %1333 = vmatpush3.bf16.msra.mxu0 %v1426_v2  ;;  %1418 = vmatpush3.bf16.msra.mxu1 %v1426_v2  ;;  %v422_v28 = vpack.c.bf16 %v295_v20, %v294_v19  ;;  %v236_v46 = vadd.f32 %v1490_v9, %v165_v30  ;;  %v237_v47 = vadd.f32 %v1490_v9, %v166_v31  ;;  %v296_v56 = vmax.f32 %v232_v37, 0.0  ;;  %v108_v13 = vld [vmem:[%s2310_s0 + $0xa0] sm:$0xff]  ;;  %v109_v18 = vld [vmem:[%s2310_s0 + $0xa8] sm:$0xff]  ;;  %v110_v25 = vld [vmem:[%s2310_s0 + $0xb0] sm:$0xff] }
   0xc   :  { %1334 = vmatprep.subr.bf16.mxu0 %v1427_v3  ;;  %1411 = vmatprep.subr.bf16.mxu1 %v1427_v3  ;;  %v238_v51 = vadd.f32 %v1490_v9, %v167_v35  ;;  %v239_v52 = vadd.f32 %v1490_v9, %v168_v36  ;;  %v240_v53 = vadd.f32 %v1490_v9, %v169_v38  ;;  %v297_v60 = vmax.f32 %v233_v40, 0.0  ;;  %v114_v30 = vld [vmem:[%s2310_s0 + $0xd0] sm:$0xff]  ;;  %v115_v31 = vld [vmem:[%s2310_s0 + $0xd8] sm:$0xff]  ;;  %v116_v37 = vld [vmem:[%s2310_s0 + $0xe0] sm:$0xff] }
   0xd   :  { %1344 = vmatprep.mubr.bf16.mxu0 %v422_v28  ;;  %v241_v54 = vadd.f32 %v1490_v9, %v170_v39  ;;  %v242_v57 = vadd.f32 %v1490_v9, %v171_v42  ;;  %v243_v58 = vadd.f32 %v1490_v9, %v172_v43  ;;  %v173_v59 = vmul.f32 %v1483_v6, %v102_v44  ;;  %v111_v36 = vld [vmem:[%s2310_s0 + $0xb8] sm:$0xff]  ;;  %v117_v38 = vld [vmem:[%s2310_s0 + $0xe8] sm:$0xff]  ;;  %v118_v43 = vld [vmem:[%s2310_s0 + $0xf0] sm:$0xff] }
   0xe   :  { %v298_v61 = vmax.f32 %v234_v41, 0.0  ;;  %v174_v62 = vmul.f32 %v1483_v6, %v103_v48  ;;  %v175_v63 = vmul.f32 %v1483_v6, %v104_v49  ;;  %v299_v1 = vmax.f32 %v235_v45, 0.0  ;;  %v119_v48 = vld [vmem:[%s2310_s0 + $0xf8] sm:$0xff] }
   0xf   :  { %1335 = vmatpush3.bf16.msra.mxu0 %v1427_v3  ;;  %1419 = vmatpush3.bf16.msra.mxu1 %v1427_v3  ;;  %v300_v2 = vmax.f32 %v236_v46, 0.0  ;;  %v301_v3 = vmax.f32 %v237_v47, 0.0  ;;  %v176_v4 = vmul.f32 %v1483_v6, %v105_v55  ;;  %v302_v8 = vmax.f32 %v238_v51, 0.0 }
  0x10   :  { %1336 = vmatprep.subr.bf16.mxu0 %v1498_v11  ;;  %1412 = vmatprep.subr.bf16.mxu1 %v1498_v11  ;;  %v303_v10 = vmax.f32 %v239_v52, 0.0  ;;  %v305_v12 = vmax.f32 %v241_v54, 0.0  ;;  %v306_v14 = vmax.f32 %v242_v57, 0.0  ;;  %v307_v15 = vmax.f32 %v243_v58, 0.0 }
  0x11   :  { %v1601_v16 = vadd.f32 %v1490_v9, %v173_v59  ;;  %v177_v17 = vmul.f32 %v1483_v6, %v106_v0  ;;  %v1608_v19 = vadd.f32 %v1490_v9, %v174_v62  ;;  %v1611_v20 = vadd.f32 %v1490_v9, %v175_v63  ;;  %v121_v62 = vld [vmem:[%s2310_s0 + $0x108] sm:$0xff] }
  0x12   :  { %v178_v21 = vmul.f32 %v1483_v6, %v107_v5  ;;  %v423_v22 = vpack.c.bf16 %v297_v60, %v296_v56  ;;  %v1616_v23 = vadd.f32 %v1490_v9, %v176_v4  ;;  %v179_v24 = vmul.f32 %v1483_v6, %v108_v13  ;;  %v123_v4 = vld [vmem:[%s2310_s0 + $0x118] sm:$0xff] }
  0x13   :  { %1337 = vmatpush3.bf16.msra.mxu0 %v1498_v11  ;;  %1420 = vmatpush3.bf16.msra.mxu1 %v1498_v11  ;;  %v304_v11 = vmax.f32 %v240_v53, 0.0  ;;  %v424_v26 = vpack.c.bf16 %v299_v1, %v298_v61  ;;  %v1623_v27 = vpack.c.bf16 %v301_v3, %v300_v2  ;;  %v1625_v28 = vpack.c.bf16 %v303_v10, %v302_v8  ;;  %v120_v53 = vld [vmem:[%s2310_s0 + $0x100] sm:$0xff]  ;;  %v122_v3 = vld [vmem:[%s2310_s0 + $0x110] sm:$0xff] }
  0x14   :  { %1338 = vmatprep.subr.bf16.mxu0 %v1429_v34  ;;  %1413 = vmatprep.subr.bf16.mxu1 %v1429_v34  ;;  %v180_v29 = vmul.f32 %v1483_v6, %v109_v18  ;;  %v1636_v33 = vpack.c.bf16 %v307_v15, %v306_v14  ;;  %v1640_v35 = vadd.f32 %v1490_v9, %v177_v17  ;;  %v309_v39 = vmax.f32 %v1608_v19, 0.0  ;;  %v126_v18 = vld [vmem:[%s2310_s0 + $0x130] sm:$0xff] }
  0x15   :  { %v1634_v32 = vpack.c.bf16 %v305_v12, %v304_v11  ;;  %v310_v40 = vmax.f32 %v1611_v20, 0.0  ;;  %v1654_v41 = vadd.f32 %v1490_v9, %v178_v21  ;;  %v181_v42 = vmul.f32 %v1483_v6, %v110_v25  ;;  %v124_v11 = vld [vmem:[%s2310_s0 + $0x120] sm:$0xff]  ;;  %v125_v12 = vld [vmem:[%s2310_s0 + $0x128] sm:$0xff] }
  0x16   :  { %v311_v44 = vmax.f32 %v1616_v23, 0.0  ;;  %v1663_v45 = vadd.f32 %v1490_v9, %v179_v24  ;;  %v185_v46 = vmul.f32 %v1483_v6, %v114_v30  ;;  %v186_v47 = vmul.f32 %v1483_v6, %v115_v31 }
  0x17   :  { %1339 = vmatpush3.bf16.msra.mxu0 %v1429_v34  ;;  %1421 = vmatpush3.bf16.msra.mxu1 %v1429_v34  ;;  %v308_v34 = vmax.f32 %v1601_v16, 0.0  ;;  %v1671_v49 = vadd.f32 %v1490_v9, %v180_v29  ;;  %v187_v51 = vmul.f32 %v1483_v6, %v116_v37  ;;  %v188_v52 = vmul.f32 %v1483_v6, %v117_v38  ;;  %v128_v37 = vld [vmem:[%s2310_s0 + $0x140] sm:$0xff]  ;;  %v143_v16 = vld [vmem:[%s2310_s0 + $0x1b8] sm:$0xff] }
  0x18   :  { %1340 = vmatprep.subr.bf16.mxu0 %v1571_v50  ;;  %1414 = vmatprep.subr.bf16.mxu1 %v1571_v50  ;;  %v312_v54 = vmax.f32 %v1640_v35, 0.0  ;;  %v256_v55 = vadd.f32 %v1490_v9, %v185_v46  ;;  %v257_v56 = vadd.f32 %v1490_v9, %v186_v47  ;;  %v189_v57 = vmul.f32 %v1483_v6, %v118_v43  ;;  %v112_v47 = vld [vmem:[%s2310_s0 + $0xc0] sm:$0xff]  ;;  %v138_v35 = vld [vmem:[%s2310_s0 + $0x190] sm:$0xff] }
  0x19   :  { %v313_v58 = vmax.f32 %v1654_v41, 0.0  ;;  %v258_v59 = vadd.f32 %v1490_v9, %v187_v51  ;;  %v259_v60 = vadd.f32 %v1490_v9, %v188_v52  ;;  %v190_v61 = vmul.f32 %v1483_v6, %v119_v48 }
  0x1a   :  { %v320_v63 = vmax.f32 %v256_v55, 0.0  ;;  %v321_v0 = vmax.f32 %v257_v56, 0.0  ;;  %v260_v1 = vadd.f32 %v1490_v9, %v189_v57  ;;  %v191_v2 = vmul.f32 %v1483_v6, %v120_v53  ;;  %v129_v55 = vld [vmem:[%s2310_s0 + $0x148] sm:$0xff] }
  0x1b   :  { %1341 = vmatpush3.bf16.msra.mxu0 %v1571_v50  ;;  %1422 = vmatpush3.bf16.msra.mxu1 %v1571_v50  ;;  %v1674_v50 = vmul.f32 %v1483_v6, %v111_v36  ;;  %v1701_v5 = vadd.f32 %v1490_v9, %v181_v42  ;;  %v323_v8 = vmax.f32 %v259_v60, 0.0  ;;  %v261_v10 = vadd.f32 %v1490_v9, %v190_v61  ;;  %v130_v61 = vld [vmem:[%s2310_s0 + $0x150] sm:$0xff] }
  0x1c   :  { %1342 = vmatprep.subr.bf16.mxu0 %v1431_v7  ;;  %1415 = vmatprep.subr.bf16.mxu1 %v1431_v7  ;;  %v1710_v13 = vpack.c.bf16 %v321_v0, %v320_v63  ;;  %v324_v14 = vmax.f32 %v260_v1, 0.0  ;;  %v192_v15 = vmul.f32 %v1483_v6, %v121_v62  ;;  %v262_v17 = vadd.f32 %v1490_v9, %v191_v2  ;;  %v131_v62 = vld [vmem:[%s2310_s0 + $0x158] sm:$0xff]  ;;  %v132_v2 = vld [vmem:[%s2310_s0 + $0x160] sm:$0xff] }
  0x1d   :  { %v193_v24 = vmul.f32 %v1483_v6, %v122_v3  ;;  %v194_v25 = vmul.f32 %v1483_v6, %v123_v4  ;;  %v195_v31 = vmul.f32 %v1483_v6, %v124_v11  ;;  %v196_v36 = vmul.f32 %v1483_v6, %v125_v12  ;;  %v133_v3 = vld [vmem:[%s2310_s0 + $0x168] sm:$0xff] }
  0x1e   :  { %v263_v29 = vadd.f32 %v1490_v9, %v192_v15  ;;  %v326_v30 = vmax.f32 %v262_v17, 0.0  ;;  %v197_v46 = vmul.f32 %v1483_v6, %v126_v18  ;;  %v199_v60 = vmul.f32 %v1483_v6, %v128_v37  ;;  %v135_v17 = vld [vmem:[%s2310_s0 + $0x178] sm:$0xff] }
  0x1f   :  { %1343 = vmatpush3.bf16.msra.mxu0 %v1431_v7  ;;  %1423 = vmatpush3.bf16.msra.mxu1 %v1431_v7  ;;  %v322_v7 = vmax.f32 %v258_v59, 0.0  ;;  %v264_v42 = vadd.f32 %v1490_v9, %v193_v24  ;;  %v265_v43 = vadd.f32 %v1490_v9, %v194_v25  ;;  %v266_v51 = vadd.f32 %v1490_v9, %v195_v31 }
  0x20   :  { %v327_v48 = vmax.f32 %v263_v29, 0.0  ;;  %v267_v52 = vadd.f32 %v1490_v9, %v196_v36  ;;  %v268_v59 = vadd.f32 %v1490_v9, %v197_v46  ;;  %v183_v4 = vmul.f32 %v1483_v6, %v112_v47  ;;  %v113_v29 = vld [vmem:[%s2310_s0 + $0xc8] sm:$0xff] }
  0x21   :  { %v1717_v21 = vpack.c.bf16 %v323_v8, %v322_v7  ;;  %v328_v56 = vmax.f32 %v264_v42, 0.0  ;;  %v329_v57 = vmax.f32 %v265_v43, 0.0  ;;  %v330_v0 = vmax.f32 %v266_v51, 0.0 }
  0x22   :  { %1345 = vmatmul.mubr.bf16.vlgmr.msra.gmra.mxu0 %v423_v22  ;;  %v325_v22 = vmax.f32 %v261_v10, 0.0  ;;  %v438_v63 = vpack.c.bf16 %v327_v48, %v326_v30  ;;  %v331_v1 = vmax.f32 %v267_v52, 0.0  ;;  %v200_v8 = vmul.f32 %v1483_v6, %v129_v55  ;;  %v134_v10 = vld [vmem:[%s2310_s0 + $0x170] sm:$0xff] }
  0x23   :  { %1348 = vmatprep.mubr.bf16.mxu0 %v424_v26  ;;  %v127_v26 = vld [vmem:[%s2310_s0 + $0x138] sm:$0xff]  ;;  %v439_v7 = vpack.c.bf16 %v329_v57, %v328_v56  ;;  %v332_v12 = vmax.f32 %v268_v59, 0.0  ;;  %v202_v15 = vmul.f32 %v1483_v6, %v131_v62  ;;  %v203_v24 = vmul.f32 %v1483_v6, %v132_v2 }
  0x24   :  { %v1730_v38 = vpack.c.bf16 %v325_v22, %v324_v14  ;;  %v198_v53 = vmul.f32 %v1483_v6, %v127_v26  ;;  %1376 = vmatprep.mubr.bf16.mxu1 %v438_v63  ;;  %v440_v11 = vpack.c.bf16 %v331_v1, %v330_v0  ;;  %v201_v14 = vmul.f32 %v1483_v6, %v130_v61  ;;  %v136_v26 = vld [vmem:[%s2310_s0 + $0x180] sm:$0xff] }
  0x25   :  { %1377 = vmatmul.mubr.bf16.vlgmr.msra.gmra.mxu1 %v439_v7  ;;  %v271_v22 = vadd.f32 %v1490_v9, %v200_v8  ;;  %v204_v25 = vmul.f32 %v1483_v6, %v133_v3  ;;  %v273_v36 = vadd.f32 %v1490_v9, %v202_v15  ;;  %v205_v37 = vmul.f32 %v1483_v6, %v134_v10  ;;  %v140_v3 = vld [vmem:[%s2310_s0 + $0x1a0] sm:$0xff]  ;;  %v145_v7 = vld [vmem:[%s2310_s0 + $0x1c8] sm:$0xff]  ;;  %v147_v15 = vld [vmem:[%s2310_s0 + $0x1d8] sm:$0xff] }
  0x26   :  { %1380 = vmatprep.mubr.bf16.mxu1 %v440_v11  ;;  %v272_v31 = vadd.f32 %v1490_v9, %v201_v14  ;;  %v274_v43 = vadd.f32 %v1490_v9, %v203_v24  ;;  %v206_v47 = vmul.f32 %v1483_v6, %v135_v17  ;;  %v314_v48 = vmax.f32 %v1663_v45, 0.0  ;;  %v141_v10 = vld [vmem:[%s2310_s0 + $0x1a8] sm:$0xff]  ;;  %v146_v14 = vld [vmem:[%s2310_s0 + $0x1d0] sm:$0xff] }
  0x27   :  { %v335_v42 = vmax.f32 %v271_v22, 0.0  ;;  %v275_v46 = vadd.f32 %v1490_v9, %v204_v25  ;;  %v315_v51 = vmax.f32 %v1671_v49, 0.0  ;;  %v1791_v52 = vadd.f32 %v1490_v9, %v1674_v50  ;;  %v148_v25 = vld [vmem:[%s2310_s0 + $0x1e0] sm:$0xff] }
  0x28   :  { %v184_v55 = vmul.f32 %v1483_v6, %v113_v29  ;;  %v336_v57 = vmax.f32 %v272_v31, 0.0  ;;  %v337_v59 = vmax.f32 %v273_v36, 0.0  ;;  %v338_v49 = vmax.f32 %v274_v43, 0.0 }
  0x29   :  { %v339_v61 = vmax.f32 %v275_v46, 0.0  ;;  %v1801_v50 = vadd.f32 %v1490_v9, %v205_v37  ;;  %v429_v62 = vpack.c.bf16 %v309_v39, %v308_v34  ;;  %v1818_v63 = vpack.c.bf16 %v313_v58, %v312_v54  ;;  %v144_v39 = vld [vmem:[%s2310_s0 + $0x1c0] sm:$0xff]  ;;  %v139_v54 = vld [vmem:[%s2310_s0 + $0x198] sm:$0xff]  ;;  %v150_v37 = vld [vmem:[%s2310_s0 + $0x1f0] sm:$0xff] }
  0x2a   :  { %1349 = vmatmul.mubr.bf16.gmra.mxu0 %v1623_v27  ;;  %v269_v27 = vadd.f32 %v1490_v9, %v198_v53  ;;  %v207_v53 = vmul.f32 %v1483_v6, %v136_v26  ;;  %v1821_v0 = vadd.f32 %v1490_v9, %v206_v47  ;;  %v316_v19 = vmax.f32 %v1701_v5, 0.0  ;;  %v149_v26 = vld [vmem:[%s2310_s0 + $0x1e8] sm:$0xff] }
  0x2b   :  { %1352 = vmatprep.mubr.bf16.mxu0 %v1625_v28  ;;  %v270_v28 = vadd.f32 %v1490_v9, %v199_v60  ;;  %v137_v60 = vld [vmem:[%s2310_s0 + $0x188] sm:$0xff]  ;;  %v1828_v20 = vadd.f32 %v1490_v9, %v183_v4  ;;  %v317_v41 = vmax.f32 %v1791_v52, 0.0  ;;  %v443_v1 = vpack.c.bf16 %v337_v59, %v336_v57 }
  0x2c   :  { %v333_v18 = vmax.f32 %v269_v27, 0.0  ;;  %v208_v23 = vmul.f32 %v1483_v6, %v137_v60  ;;  %v1832_v34 = vadd.f32 %v1490_v9, %v207_v53  ;;  %v444_v27 = vpack.c.bf16 %v339_v61, %v338_v49 }
  0x2d   :  { %v334_v30 = vmax.f32 %v270_v28, 0.0  ;;  %v340_v2 = vmax.f32 %v1801_v50, 0.0  ;;  %v214_v4 = vmul.f32 %v1483_v6, %v143_v16  ;;  %v341_v8 = vmax.f32 %v1821_v0, 0.0 }
  0x2e   :  { %v441_v56 = vpack.c.bf16 %v333_v18, %v332_v12  ;;  %v209_v28 = vmul.f32 %v1483_v6, %v138_v35  ;;  %v215_v12 = vmul.f32 %v1483_v6, %v144_v39  ;;  %v279_v17 = vadd.f32 %v1490_v9, %v208_v23 }
  0x2f   :  { %v442_v45 = vpack.c.bf16 %v335_v42, %v334_v30  ;;  %v342_v18 = vmax.f32 %v1832_v34, 0.0  ;;  %v210_v22 = vmul.f32 %v1483_v6, %v139_v54  ;;  %v285_v24 = vadd.f32 %v1490_v9, %v214_v4 }
  0x30   :  { %1381 = vmatmul.mubr.bf16.gmra.mxu1 %v441_v56  ;;  %v211_v29 = vmul.f32 %v1483_v6, %v140_v3  ;;  %v216_v31 = vmul.f32 %v1483_v6, %v145_v7  ;;  %v286_v36 = vadd.f32 %v1490_v9, %v215_v12  ;;  %v212_v42 = vmul.f32 %v1483_v6, %v141_v10 }
  0x31   :  { %1384 = vmatprep.mubr.bf16.mxu1 %v442_v45  ;;  %v349_v43 = vmax.f32 %v285_v24, 0.0  ;;  %v217_v46 = vmul.f32 %v1483_v6, %v146_v14  ;;  %v218_v47 = vmul.f32 %v1483_v6, %v147_v15  ;;  %v220_v56 = vmul.f32 %v1483_v6, %v149_v26 }
  0x32   :  { %1353 = vmatmul.mubr.bf16.gmra.mxu0 %v1634_v32  ;;  %v142_v32 = vld [vmem:[%s2310_s0 + $0x1b0] sm:$0xff]  ;;  %v350_v53 = vmax.f32 %v286_v36, 0.0  ;;  %v221_v45 = vmul.f32 %v1483_v6, %v150_v37  ;;  %v318_v54 = vmax.f32 %v1828_v20, 0.0  ;;  %v282_v12 = vadd.f32 %v1490_v9, %v211_v29 }
  0x33   :  { %1356 = vmatprep.mubr.bf16.mxu0 %v1636_v33  ;;  %v430_v33 = vpack.c.bf16 %v311_v44, %v310_v40  ;;  %v1840_v40 = vpack.c.bf16 %v315_v51, %v314_v48  ;;  %v1844_v44 = vadd.f32 %v1490_v9, %v184_v55  ;;  %v213_v58 = vmul.f32 %v1483_v6, %v142_v32  ;;  %v151_v48 = vld [vmem:[%s2310_s0 + $0x1f8] sm:$0xff] }
  0x34   :  { %v287_v51 = vadd.f32 %v1490_v9, %v216_v31  ;;  %v219_v55 = vmul.f32 %v1483_v6, %v148_v25  ;;  %v288_v59 = vadd.f32 %v1490_v9, %v217_v46  ;;  %v289_v60 = vadd.f32 %v1490_v9, %v218_v47 }
  0x35   :  { %v284_v11 = vadd.f32 %v1490_v9, %v213_v58  ;;  %v291_v50 = vadd.f32 %v1490_v9, %v220_v56  ;;  %v222_v32 = vmul.f32 %v1483_v6, %v151_v48  ;;  %v292_v16 = vadd.f32 %v1490_v9, %v221_v45 }
  0x36   :  { %v351_v49 = vmax.f32 %v287_v51, 0.0  ;;  %v290_v61 = vadd.f32 %v1490_v9, %v219_v55  ;;  %v353_v0 = vmax.f32 %v289_v60, 0.0  ;;  %v445_v58 = vpack.c.bf16 %v341_v8, %v340_v2 }
  0x37   :  { %v348_v30 = vmax.f32 %v284_v11, 0.0  ;;  %v355_v35 = vmax.f32 %v291_v50, 0.0  ;;  %v293_v39 = vadd.f32 %v1490_v9, %v222_v32  ;;  %v356_v3 = vmax.f32 %v292_v16, 0.0 }
  0x38   :  { %1385 = vmatmul.mubr.bf16.gmra.mxu1 %v443_v1  ;;  %v450_v23 = vpack.c.bf16 %v351_v49, %v350_v53  ;;  %v354_v34 = vmax.f32 %v290_v61, 0.0  ;;  %v280_v6 = vadd.f32 %v1490_v9, %v209_v28  ;;  %v319_v10 = vmax.f32 %v1844_v44, 0.0 }
  0x39   :  { %v449_v57 = vpack.c.bf16 %v349_v43, %v348_v30  ;;  %1388 = vmatprep.mubr.bf16.mxu1 %v444_v27  ;;  %v281_v27 = vadd.f32 %v1490_v9, %v210_v22  ;;  %v357_v7 = vmax.f32 %v293_v39, 0.0  ;;  %v283_v20 = vadd.f32 %v1490_v9, %v212_v42 }
  0x3a   :  { %1357 = vmatmul.mubr.bf16.gmra.mxu0 %v429_v62  ;;  %v343_v62 = vmax.f32 %v279_v17, 0.0  ;;  %v452_v4 = vpack.c.bf16 %v355_v35, %v354_v34  ;;  %v344_v8 = vmax.f32 %v280_v6, 0.0  ;;  %v434_v14 = vpack.c.bf16 %v319_v10, %v318_v54 }
  0x3b   :  { %1360 = vmatprep.mubr.bf16.mxu0 %v430_v33  ;;  %v352_v33 = vmax.f32 %v288_v59, 0.0  ;;  %v453_v2 = vpack.c.bf16 %v357_v7, %v356_v3  ;;  %v345_v28 = vmax.f32 %v281_v27, 0.0  ;;  %v346_v15 = vmax.f32 %v282_v12, 0.0 }
  0x3c   :  { %v446_v11 = vpack.c.bf16 %v343_v62, %v342_v18 }
  0x3d   :  { %v451_v1 = vpack.c.bf16 %v353_v0, %v352_v33  ;;  %v447_v44 = vpack.c.bf16 %v345_v28, %v344_v8 }
  0x40   :  { %1389 = vmatmul.mubr.bf16.gmra.mxu1 %v445_v58 }
  0x41   :  { %1392 = vmatprep.mubr.bf16.mxu1 %v446_v11 }
  0x42   :  { %1361 = vmatmul.mubr.bf16.gmra.mxu0 %v1818_v63  ;;  %v433_v63 = vpack.c.bf16 %v317_v41, %v316_v19 }
  0x43   :  { %1364 = vmatprep.mubr.bf16.mxu0 %v1840_v40  ;;  %v347_v40 = vmax.f32 %v283_v20, 0.0 }
  0x45   :  { %v448_v17 = vpack.c.bf16 %v347_v40, %v346_v15 }
  0x48   :  { %1393 = vmatmul.mubr.bf16.gmra.mxu1 %v447_v44 }
  0x49   :  { %1396 = vmatprep.mubr.bf16.mxu1 %v448_v17 }
  0x4a   :  { %1365 = vmatmul.mubr.bf16.gmra.mxu0 %v433_v63 }
  0x4b   :  { %1368 = vmatprep.mubr.bf16.mxu0 %v434_v14 }
  0x50   :  { %1397 = vmatmul.mubr.bf16.gmra.mxu1 %v449_v57 }
  0x51   :  { %1400 = vmatprep.mubr.bf16.mxu1 %v450_v23 }
  0x52   :  { %1369 = vmatmul.mubr.bf16.gmra.mxu0 %v1710_v13 }
  0x53   :  { %1372 = vmatprep.mubr.bf16.mxu0 %v1717_v21 }
  0x58   :  { %1401 = vmatmul.mubr.bf16.gmra.mxu1 %v451_v1 }
  0x59   :  { %1404 = vmatprep.mubr.bf16.mxu1 %v452_v4 }
  0x5a   :  { %1373 = vmatmul.mubr.bf16.gmra.mxu0 %v1730_v38 }
  0x60   :  { %1405 = vmatmul.mubr.bf16.gmra.mxu1 %v453_v2 }
  0xe2   :  { %v1346_v9 = vpop.f32.mrf.mxu0 }
  0xe3   :  { %1004 = vst [vmem:[%s2313_s4 + $0x10] sm:$0xff] %v1346_v9  ;;  %v1138_v18 = vmul.f32 %v1346_v9, %v1346_v9 }
  0xe4   :  { %v552_v5 = vpop.f32.mrf.mxu0 }
  0xe5   :  { %1002 = vst [vmem:[%s2313_s4] sm:$0xff] %v552_v5  ;;  %v1136_v38 = vmul.f32 %v552_v5, %v552_v5  ;;  %v1937_v36 = vpop.f32.mrf.mxu1 }
  0xe6   :  { %v1347_v13 = vpop.f32.mrf.mxu0  ;;  %1036 = vst [vmem:[%s2313_s4 + $0x110] sm:$0xff] %v1937_v36 }
  0xe7   :  { %1005 = vst [vmem:[%s2313_s4 + $0x18] sm:$0xff] %v1347_v13  ;;  %v1139_v26 = vmul.f32 %v1347_v13, %v1347_v13  ;;  %v1946_v47 = vpop.f32.mrf.mxu1 }
  0xe8   :  { %v555_v21 = vpop.f32.mrf.mxu0  ;;  %1034 = vst [vmem:[%s2313_s4 + $0x100] sm:$0xff] %v1946_v47 }
  0xe9   :  { %1003 = vst [vmem:[%s2313_s4 + $0x8] sm:$0xff] %v555_v21  ;;  %v1066_v52 = vadd.f32 %v555_v21, %v552_v5  ;;  %v1137_v19 = vmul.f32 %v555_v21, %v555_v21  ;;  %v1955_v56 = vpop.f32.mrf.mxu1 }
  0xea   :  { %v1350_v41 = vpop.f32.mrf.mxu0  ;;  %1037 = vst [vmem:[%s2313_s4 + $0x118] sm:$0xff] %v1955_v56 }
  0xeb   :  { %v1067_v22 = vadd.f32 %v1346_v9, %v1066_v52  ;;  %v1200_v24 = vadd.f32 %v1137_v19, %v1136_v38  ;;  %1008 = vst [vmem:[%s2313_s4 + $0x30] sm:$0xff] %v1350_v41  ;;  %v1142_v57 = vmul.f32 %v1350_v41, %v1350_v41  ;;  %v1964_v49 = vpop.f32.mrf.mxu1 }
  0xec   :  { %v568_v25 = vpop.f32.mrf.mxu0  ;;  %1035 = vst [vmem:[%s2313_s4 + $0x108] sm:$0xff] %v1964_v49 }
  0xed   :  { %v1201_v29 = vadd.f32 %v1200_v24, %v1138_v18  ;;  %1006 = vst [vmem:[%s2313_s4 + $0x20] sm:$0xff] %v568_v25  ;;  %v1068_v30 = vadd.f32 %v1347_v13, %v1067_v22  ;;  %v1140_v42 = vmul.f32 %v568_v25, %v568_v25 }
  0xee   :  { %v1351_v31 = vpop.f32.mrf.mxu0 }
  0xef   :  { %v1069_v37 = vadd.f32 %v1068_v30, %v568_v25  ;;  %v1202_v43 = vadd.f32 %v1201_v29, %v1139_v26  ;;  %1009 = vst [vmem:[%s2313_s4 + $0x38] sm:$0xff] %v1351_v31  ;;  %v1143_v61 = vmul.f32 %v1351_v31, %v1351_v31 }
  0xf0   :  { %v571_v46 = vpop.f32.mrf.mxu0  ;;  %v1973_v33 = vpop.f32.mrf.mxu1 }
  0xf1   :  { %v1203_v48 = vadd.f32 %v1202_v43, %v1140_v42  ;;  %1007 = vst [vmem:[%s2313_s4 + $0x28] sm:$0xff] %v571_v46  ;;  %v1070_v51 = vadd.f32 %v1069_v37, %v571_v46  ;;  %v1141_v53 = vmul.f32 %v571_v46, %v571_v46  ;;  %1040 = vst [vmem:[%s2313_s4 + $0x130] sm:$0xff] %v1973_v33 }
  0xf2   :  { %v1354_v55 = vpop.f32.mrf.mxu0  ;;  %v1982_v35 = vpop.f32.mrf.mxu1 }
  0xf3   :  { %v1071_v59 = vadd.f32 %v1350_v41, %v1070_v51  ;;  %v1204_v60 = vadd.f32 %v1203_v48, %v1141_v53  ;;  %1012 = vst [vmem:[%s2313_s4 + $0x50] sm:$0xff] %v1354_v55  ;;  %1038 = vst [vmem:[%s2313_s4 + $0x120] sm:$0xff] %v1982_v35  ;;  %v1146_v6 = vmul.f32 %v1354_v55, %v1354_v55 }
  0xf4   :  { %v584_v45 = vpop.f32.mrf.mxu0  ;;  %v1991_v3 = vpop.f32.mrf.mxu1 }
  0xf5   :  { %v1205_v50 = vadd.f32 %v1204_v60, %v1142_v57  ;;  %1010 = vst [vmem:[%s2313_s4 + $0x40] sm:$0xff] %v584_v45  ;;  %v1072_v32 = vadd.f32 %v1351_v31, %v1071_v59  ;;  %v1144_v16 = vmul.f32 %v584_v45, %v584_v45  ;;  %1041 = vst [vmem:[%s2313_s4 + $0x138] sm:$0xff] %v1991_v3 }
  0xf6   :  { %v1355_v62 = vpop.f32.mrf.mxu0  ;;  %v2000_v10 = vpop.f32.mrf.mxu1 }
  0xf7   :  { %v1073_v0 = vadd.f32 %v1072_v32, %v584_v45  ;;  %v1206_v23 = vadd.f32 %v1205_v50, %v1143_v61  ;;  %1013 = vst [vmem:[%s2313_s4 + $0x58] sm:$0xff] %v1355_v62  ;;  %v1147_v11 = vmul.f32 %v1355_v62, %v1355_v62  ;;  %1039 = vst [vmem:[%s2313_s4 + $0x128] sm:$0xff] %v2000_v10 }
  0xf8   :  { %v587_v34 = vpop.f32.mrf.mxu0  ;;  %v2009_v63 = vpop.f32.mrf.mxu1 }
  0xf9   :  { %v1207_v39 = vadd.f32 %v1206_v23, %v1144_v16  ;;  %1011 = vst [vmem:[%s2313_s4 + $0x48] sm:$0xff] %v587_v34  ;;  %v1074_v54 = vadd.f32 %v1073_v0, %v587_v34  ;;  %v1145_v58 = vmul.f32 %v587_v34, %v587_v34  ;;  %1044 = vst [vmem:[%s2313_s4 + $0x150] sm:$0xff] %v2009_v63 }
  0xfa   :  { %v1358_v1 = vpop.f32.mrf.mxu0  ;;  %v2018_v40 = vpop.f32.mrf.mxu1 }
  0xfb   :  { %v1075_v27 = vadd.f32 %v1354_v55, %v1074_v54  ;;  %v1208_v4 = vadd.f32 %v1207_v39, %v1145_v58  ;;  %1016 = vst [vmem:[%s2313_s4 + $0x70] sm:$0xff] %v1358_v1  ;;  %1042 = vst [vmem:[%s2313_s4 + $0x140] sm:$0xff] %v2018_v40  ;;  %v1150_v21 = vmul.f32 %v1358_v1, %v1358_v1 }
  0xfc   :  { %v600_v7 = vpop.f32.mrf.mxu0  ;;  %v2027_v13 = vpop.f32.mrf.mxu1 }
  0xfd   :  { %v1209_v12 = vadd.f32 %v1208_v4, %v1146_v6  ;;  %1014 = vst [vmem:[%s2313_s4 + $0x60] sm:$0xff] %v600_v7  ;;  %v1076_v20 = vadd.f32 %v1355_v62, %v1075_v27  ;;  %v1148_v28 = vmul.f32 %v600_v7, %v600_v7  ;;  %1045 = vst [vmem:[%s2313_s4 + $0x158] sm:$0xff] %v2027_v13 }
  0xfe   :  { %v1359_v2 = vpop.f32.mrf.mxu0  ;;  %v2036_v41 = vpop.f32.mrf.mxu1 }
  0xff   :  { %v1077_v8 = vadd.f32 %v1076_v20, %v600_v7  ;;  %v1210_v14 = vadd.f32 %v1209_v12, %v1147_v11  ;;  %1017 = vst [vmem:[%s2313_s4 + $0x78] sm:$0xff] %v1359_v2  ;;  %v1151_v18 = vmul.f32 %v1359_v2, %v1359_v2  ;;  %1043 = vst [vmem:[%s2313_s4 + $0x148] sm:$0xff] %v2036_v41 }
 0x100   :  { %v603_v15 = vpop.f32.mrf.mxu0  ;;  %v2045_v26 = vpop.f32.mrf.mxu1 }
 0x101   :  { %v1211_v44 = vadd.f32 %v1210_v14, %v1148_v28  ;;  %1015 = vst [vmem:[%s2313_s4 + $0x68] sm:$0xff] %v603_v15  ;;  %v1078_v17 = vadd.f32 %v1077_v8, %v603_v15  ;;  %v1149_v9 = vmul.f32 %v603_v15, %v603_v15  ;;  %1048 = vst [vmem:[%s2313_s4 + $0x170] sm:$0xff] %v2045_v26 }
 0x102   :  { %v1362_v5 = vpop.f32.mrf.mxu0  ;;  %v2054_v42 = vpop.f32.mrf.mxu1 }
 0x103   :  { %v1079_v38 = vadd.f32 %v1358_v1, %v1078_v17  ;;  %v1212_v52 = vadd.f32 %v1211_v44, %v1149_v9  ;;  %1020 = vst [vmem:[%s2313_s4 + $0x90] sm:$0xff] %v1362_v5  ;;  %1046 = vst [vmem:[%s2313_s4 + $0x160] sm:$0xff] %v2054_v42  ;;  %v1154_v55 = vmul.f32 %v1362_v5, %v1362_v5 }
 0x104   :  { %v616_v19 = vpop.f32.mrf.mxu0  ;;  %v2063_v53 = vpop.f32.mrf.mxu1 }
 0x105   :  { %v1213_v22 = vadd.f32 %v1212_v52, %v1150_v21  ;;  %1018 = vst [vmem:[%s2313_s4 + $0x80] sm:$0xff] %v616_v19  ;;  %v1080_v24 = vadd.f32 %v1359_v2, %v1079_v38  ;;  %v1152_v30 = vmul.f32 %v616_v19, %v616_v19  ;;  %1049 = vst [vmem:[%s2313_s4 + $0x178] sm:$0xff] %v2063_v53 }
 0x106   :  { %v1363_v25 = vpop.f32.mrf.mxu0  ;;  %v2072_v45 = vpop.f32.mrf.mxu1 }
 0x107   :  { %v1081_v29 = vadd.f32 %v1080_v24, %v616_v19  ;;  %v1214_v31 = vadd.f32 %v1213_v22, %v1151_v18  ;;  %1021 = vst [vmem:[%s2313_s4 + $0x98] sm:$0xff] %v1363_v25  ;;  %v1155_v61 = vmul.f32 %v1363_v25, %v1363_v25  ;;  %1047 = vst [vmem:[%s2313_s4 + $0x168] sm:$0xff] %v2072_v45 }
 0x108   :  { %v619_v37 = vpop.f32.mrf.mxu0  ;;  %v2081_v0 = vpop.f32.mrf.mxu1 }
 0x109   :  { %v1215_v43 = vadd.f32 %v1214_v31, %v1152_v30  ;;  %1019 = vst [vmem:[%s2313_s4 + $0x88] sm:$0xff] %v619_v37  ;;  %v1082_v46 = vadd.f32 %v1081_v29, %v619_v37  ;;  %v1153_v48 = vmul.f32 %v619_v37, %v619_v37  ;;  %1052 = vst [vmem:[%s2313_s4 + $0x190] sm:$0xff] %v2081_v0 }
 0x10a   :  { %v1366_v51 = vpop.f32.mrf.mxu0  ;;  %v2090_v54 = vpop.f32.mrf.mxu1 }
 0x10b   :  { %v1083_v57 = vadd.f32 %v1362_v5, %v1082_v46  ;;  %v1216_v59 = vadd.f32 %v1215_v43, %v1153_v48  ;;  %1024 = vst [vmem:[%s2313_s4 + $0xb0] sm:$0xff] %v1366_v51  ;;  %1050 = vst [vmem:[%s2313_s4 + $0x180] sm:$0xff] %v2090_v54  ;;  %v1158_v7 = vmul.f32 %v1366_v51, %v1366_v51 }
 0x10c   :  { %v632_v60 = vpop.f32.mrf.mxu0  ;;  %v2099_v4 = vpop.f32.mrf.mxu1 }
 0x10d   :  { %v1217_v50 = vadd.f32 %v1216_v59, %v1154_v55  ;;  %1022 = vst [vmem:[%s2313_s4 + $0xa0] sm:$0xff] %v632_v60  ;;  %v1084_v32 = vadd.f32 %v1363_v25, %v1083_v57  ;;  %v1156_v23 = vmul.f32 %v632_v60, %v632_v60  ;;  %1053 = vst [vmem:[%s2313_s4 + $0x198] sm:$0xff] %v2099_v4 }
 0x10e   :  { %v1367_v62 = vpop.f32.mrf.mxu0  ;;  %v2108_v2 = vpop.f32.mrf.mxu1 }
 0x10f   :  { %v1085_v16 = vadd.f32 %v1084_v32, %v632_v60  ;;  %v1218_v34 = vadd.f32 %v1217_v50, %v1155_v61  ;;  %1025 = vst [vmem:[%s2313_s4 + $0xb8] sm:$0xff] %v1367_v62  ;;  %v1159_v8 = vmul.f32 %v1367_v62, %v1367_v62  ;;  %1051 = vst [vmem:[%s2313_s4 + $0x188] sm:$0xff] %v2108_v2 }
 0x110   :  { %v635_v39 = vpop.f32.mrf.mxu0  ;;  %v2117_v44 = vpop.f32.mrf.mxu1 }
 0x111   :  { %v1219_v58 = vadd.f32 %v1218_v34, %v1156_v23  ;;  %1023 = vst [vmem:[%s2313_s4 + $0xa8] sm:$0xff] %v635_v39  ;;  %v1086_v1 = vadd.f32 %v1085_v16, %v635_v39  ;;  %v1157_v6 = vmul.f32 %v635_v39, %v635_v39  ;;  %1056 = vst [vmem:[%s2313_s4 + $0x1b0] sm:$0xff] %v2117_v44 }
 0x112   :  { %v1370_v27 = vpop.f32.mrf.mxu0  ;;  %v2126_v38 = vpop.f32.mrf.mxu1 }
 0x113   :  { %v1087_v11 = vadd.f32 %v1366_v51, %v1086_v1  ;;  %v1220_v12 = vadd.f32 %v1219_v58, %v1157_v6  ;;  %1028 = vst [vmem:[%s2313_s4 + $0xd0] sm:$0xff] %v1370_v27  ;;  %1054 = vst [vmem:[%s2313_s4 + $0x1a0] sm:$0xff] %v2126_v38  ;;  %v1162_v25 = vmul.f32 %v1370_v27, %v1370_v27 }
 0x114   :  { %v648_v20 = vpop.f32.mrf.mxu0  ;;  %v2135_v24 = vpop.f32.mrf.mxu1 }
 0x115   :  { %v1221_v28 = vadd.f32 %v1220_v12, %v1158_v7  ;;  %1026 = vst [vmem:[%s2313_s4 + $0xc0] sm:$0xff] %v648_v20  ;;  %v1088_v14 = vadd.f32 %v1367_v62, %v1087_v11  ;;  %v1160_v9 = vmul.f32 %v648_v20, %v648_v20  ;;  %1057 = vst [vmem:[%s2313_s4 + $0x1b8] sm:$0xff] %v2135_v24 }
 0x116   :  { %v1371_v15 = vpop.f32.mrf.mxu0  ;;  %v2144_v37 = vpop.f32.mrf.mxu1  ;;  %v1168_v12 = vmul.f32 %v1946_v47, %v1946_v47 }
 0x117   :  { %v1089_v17 = vadd.f32 %v1088_v14, %v648_v20  ;;  %v1222_v5 = vadd.f32 %v1221_v28, %v1159_v8  ;;  %1029 = vst [vmem:[%s2313_s4 + $0xd8] sm:$0xff] %v1371_v15  ;;  %v1163_v43 = vmul.f32 %v1371_v15, %v1371_v15  ;;  %1055 = vst [vmem:[%s2313_s4 + $0x1a8] sm:$0xff] %v2144_v37 }
 0x118   :  { %v651_v21 = vpop.f32.mrf.mxu0  ;;  %v2153_v55 = vpop.f32.mrf.mxu1 }
 0x119   :  { %v1223_v52 = vadd.f32 %v1222_v5, %v1160_v9  ;;  %1027 = vst [vmem:[%s2313_s4 + $0xc8] sm:$0xff] %v651_v21  ;;  %v1090_v19 = vadd.f32 %v1089_v17, %v651_v21  ;;  %v1161_v18 = vmul.f32 %v651_v21, %v651_v21  ;;  %1060 = vst [vmem:[%s2313_s4 + $0x1d0] sm:$0xff] %v2153_v55 }
 0x11a   :  { %v1374_v22 = vpop.f32.mrf.mxu0  ;;  %v2162_v50 = vpop.f32.mrf.mxu1 }
 0x11b   :  { %v1091_v29 = vadd.f32 %v1370_v27, %v1090_v19  ;;  %v1224_v30 = vadd.f32 %v1223_v52, %v1161_v18  ;;  %1032 = vst [vmem:[%s2313_s4 + $0xf0] sm:$0xff] %v1374_v22  ;;  %1058 = vst [vmem:[%s2313_s4 + $0x1c0] sm:$0xff] %v2162_v50  ;;  %v1166_v34 = vmul.f32 %v1374_v22, %v1374_v22 }
 0x11c   :  { %v664_v31 = vpop.f32.mrf.mxu0  ;;  %v2171_v23 = vpop.f32.mrf.mxu1  ;;  %v1171_v52 = vmul.f32 %v1955_v56, %v1955_v56 }
 0x11d   :  { %v1225_v46 = vadd.f32 %v1224_v30, %v1162_v25  ;;  %1030 = vst [vmem:[%s2313_s4 + $0xe0] sm:$0xff] %v664_v31  ;;  %v1092_v48 = vadd.f32 %v1371_v15, %v1091_v29  ;;  %v1164_v59 = vmul.f32 %v664_v31, %v664_v31  ;;  %1061 = vst [vmem:[%s2313_s4 + $0x1d8] sm:$0xff] %v2171_v23 }
 0x11e   :  { %v1375_v51 = vpop.f32.mrf.mxu0  ;;  %v2177_v1 = vpop.f32.mrf.mxu1  ;;  %v1169_v15 = vmul.f32 %v1964_v49, %v1964_v49 }
 0x11f   :  { %v1093_v57 = vadd.f32 %v1092_v48, %v664_v31  ;;  %v1226_v60 = vadd.f32 %v1225_v46, %v1163_v43  ;;  %1033 = vst [vmem:[%s2313_s4 + $0xf8] sm:$0xff] %v1375_v51  ;;  %v1167_v6 = vmul.f32 %v1375_v51, %v1375_v51  ;;  %1059 = vst [vmem:[%s2313_s4 + $0x1c8] sm:$0xff] %v2177_v1 }
 0x120   :  { %v667_v61 = vpop.f32.mrf.mxu0  ;;  %v2183_v11 = vpop.f32.mrf.mxu1  ;;  %v1173_v31 = vmul.f32 %v2000_v10, %v2000_v10  ;;  %v1175_v48 = vmul.f32 %v1991_v3, %v1991_v3 }
 0x121   :  { %v1227_v32 = vadd.f32 %v1226_v60, %v1164_v59  ;;  %1031 = vst [vmem:[%s2313_s4 + $0xe8] sm:$0xff] %v667_v61  ;;  %v1094_v62 = vadd.f32 %v1093_v57, %v667_v61  ;;  %v1165_v16 = vmul.f32 %v667_v61, %v667_v61  ;;  %1064 = vst [vmem:[%s2313_s4 + $0x1f0] sm:$0xff] %v2183_v11 }
 0x122   :  { %v2192_v28 = vpop.f32.mrf.mxu1  ;;  %v1176_v59 = vmul.f32 %v2018_v40, %v2018_v40 }
 0x123   :  { %v1095_v39 = vadd.f32 %v1374_v22, %v1094_v62  ;;  %v1228_v58 = vadd.f32 %v1227_v32, %v1165_v16  ;;  %1062 = vst [vmem:[%s2313_s4 + $0x1e0] sm:$0xff] %v2192_v28  ;;  %v1172_v22 = vmul.f32 %v1982_v35, %v1982_v35  ;;  %v1177_v32 = vmul.f32 %v2036_v41, %v2036_v41 }
 0x124   :  { %v2201_v9 = vpop.f32.mrf.mxu1 }
 0x125   :  { %v1096_v27 = vadd.f32 %v1375_v51, %v1095_v39  ;;  %v1229_v7 = vadd.f32 %v1228_v58, %v1166_v34  ;;  %1065 = vst [vmem:[%s2313_s4 + $0x1f8] sm:$0xff] %v2201_v9  ;;  %v1180_v58 = vmul.f32 %v2054_v42, %v2054_v42 }
 0x127   :  { %v1230_v20 = vadd.f32 %v1229_v7, %v1167_v6  ;;  %v1097_v8 = vadd.f32 %v1096_v27, %v1946_v47  ;;  %v1170_v47 = vmul.f32 %v1937_v36, %v1937_v36  ;;  %v1181_v7 = vmul.f32 %v2072_v45, %v2072_v45 }
 0x129   :  { %v1098_v14 = vadd.f32 %v1097_v8, %v1964_v49  ;;  %v1231_v17 = vadd.f32 %v1230_v20, %v1168_v12  ;;  %v2210_v49 = vpop.f32.mrf.mxu1 }
 0x12a   :  { %1063 = vst [vmem:[%s2313_s4 + $0x1e8] sm:$0xff] %v2210_v49 }
 0x12b   :  { %v1099_v5 = vadd.f32 %v1937_v36, %v1098_v14  ;;  %v1232_v21 = vadd.f32 %v1231_v17, %v1169_v15  ;;  %v1184_v15 = vmul.f32 %v2090_v54, %v2090_v54 }
 0x12d   :  { %v1233_v19 = vadd.f32 %v1232_v21, %v1170_v47  ;;  %v1100_v18 = vadd.f32 %v1955_v56, %v1099_v5  ;;  %v1174_v56 = vmul.f32 %v1973_v33, %v1973_v33  ;;  %v1185_v5 = vmul.f32 %v2108_v2, %v2108_v2 }
 0x12f   :  { %v1101_v36 = vadd.f32 %v1100_v18, %v1982_v35  ;;  %v1234_v25 = vadd.f32 %v1233_v19, %v1171_v52 }
 0x131   :  { %v1235_v29 = vadd.f32 %v1234_v25, %v1172_v22  ;;  %v1102_v30 = vadd.f32 %v1101_v36, %v2000_v10  ;;  %v1188_v36 = vmul.f32 %v2126_v38, %v2126_v38 }
 0x133   :  { %v1103_v43 = vadd.f32 %v1973_v33, %v1102_v30  ;;  %v1236_v46 = vadd.f32 %v1235_v29, %v1173_v31  ;;  %v1178_v33 = vmul.f32 %v2009_v63, %v2009_v63  ;;  %v1189_v29 = vmul.f32 %v2144_v37, %v2144_v37 }
 0x135   :  { %v1237_v51 = vadd.f32 %v1236_v46, %v1174_v56  ;;  %v1104_v57 = vadd.f32 %v1991_v3, %v1103_v43  ;;  %v1179_v3 = vmul.f32 %v2027_v13, %v2027_v13  ;;  %v1192_v46 = vmul.f32 %v2162_v50, %v2162_v50 }
 0x137   :  { %v1105_v35 = vadd.f32 %v1104_v57, %v2018_v40  ;;  %v1238_v60 = vadd.f32 %v1237_v51, %v1175_v48  ;;  %v1193_v57 = vmul.f32 %v2177_v1, %v2177_v1 }
 0x139   :  { %v1239_v61 = vadd.f32 %v1238_v60, %v1176_v59  ;;  %v1106_v10 = vadd.f32 %v1105_v35, %v2036_v41 }
 0x13b   :  { %v1107_v62 = vadd.f32 %v2009_v63, %v1106_v10  ;;  %v1240_v16 = vadd.f32 %v1239_v61, %v1177_v32  ;;  %v1182_v63 = vmul.f32 %v2045_v26, %v2045_v26  ;;  %v1196_v10 = vmul.f32 %v2192_v28, %v2192_v28 }
 0x13d   :  { %v1241_v34 = vadd.f32 %v1240_v16, %v1178_v33  ;;  %v1108_v39 = vadd.f32 %v2027_v13, %v1107_v62  ;;  %v1183_v13 = vmul.f32 %v2063_v53, %v2063_v53  ;;  %v1197_v62 = vmul.f32 %v2210_v49, %v2210_v49 }
 0x13f   :  { %v1109_v40 = vadd.f32 %v1108_v39, %v2054_v42  ;;  %v1242_v6 = vadd.f32 %v1241_v34, %v1179_v3 }
 0x141   :  { %v1243_v27 = vadd.f32 %v1242_v6, %v1180_v58  ;;  %v1110_v41 = vadd.f32 %v1109_v40, %v2072_v45 }
 0x143   :  { %v1111_v12 = vadd.f32 %v2045_v26, %v1110_v41  ;;  %v1244_v20 = vadd.f32 %v1243_v27, %v1181_v7  ;;  %v1186_v26 = vmul.f32 %v2081_v0, %v2081_v0 }
 0x145   :  { %v1245_v8 = vadd.f32 %v1244_v20, %v1182_v63  ;;  %v1112_v14 = vadd.f32 %v2063_v53, %v1111_v12  ;;  %v1187_v53 = vmul.f32 %v2099_v4, %v2099_v4 }
 0x147   :  { %v1113_v42 = vadd.f32 %v1112_v14, %v2090_v54  ;;  %v1246_v17 = vadd.f32 %v1245_v8, %v1183_v13 }
 0x149   :  { %v1247_v47 = vadd.f32 %v1246_v17, %v1184_v15  ;;  %v1114_v45 = vadd.f32 %v1113_v42, %v2108_v2 }
 0x14b   :  { %v1115_v21 = vadd.f32 %v2081_v0, %v1114_v45  ;;  %v1248_v52 = vadd.f32 %v1247_v47, %v1185_v5  ;;  %v1190_v0 = vmul.f32 %v2117_v44, %v2117_v44 }
 0x14d   :  { %v1249_v19 = vadd.f32 %v1248_v52, %v1186_v26  ;;  %v1116_v18 = vadd.f32 %v2099_v4, %v1115_v21  ;;  %v1191_v4 = vmul.f32 %v2135_v24, %v2135_v24 }
 0x14f   :  { %v1117_v54 = vadd.f32 %v1116_v18, %v2126_v38  ;;  %v1250_v22 = vadd.f32 %v1249_v19, %v1187_v53 }
 0x151   :  { %v1251_v25 = vadd.f32 %v1250_v22, %v1188_v36  ;;  %v1118_v2 = vadd.f32 %v1117_v54, %v2144_v37 }
 0x153   :  { %v1119_v30 = vadd.f32 %v2117_v44, %v1118_v2  ;;  %v1252_v31 = vadd.f32 %v1251_v25, %v1189_v29  ;;  %v1194_v44 = vmul.f32 %v2153_v55, %v2153_v55 }
 0x155   :  { %v1253_v56 = vadd.f32 %v1252_v31, %v1190_v0  ;;  %v1120_v43 = vadd.f32 %v2135_v24, %v1119_v30  ;;  %v1195_v24 = vmul.f32 %v2171_v23, %v2171_v23 }
 0x157   :  { %v1121_v38 = vadd.f32 %v1120_v43, %v2162_v50  ;;  %v1254_v48 = vadd.f32 %v1253_v56, %v1191_v4 }
 0x159   :  { %v1255_v51 = vadd.f32 %v1254_v48, %v1192_v46  ;;  %v1122_v37 = vadd.f32 %v1121_v38, %v2177_v1 }
 0x15b   :  { %v1123_v35 = vadd.f32 %v2153_v55, %v1122_v37  ;;  %v1256_v59 = vadd.f32 %v1255_v51, %v1193_v57  ;;  %v1198_v55 = vmul.f32 %v2183_v11, %v2183_v11 }
 0x15d   :  { %v1257_v60 = vadd.f32 %v1256_v59, %v1194_v44  ;;  %v1124_v61 = vadd.f32 %v2171_v23, %v1123_v35  ;;  %v1199_v23 = vmul.f32 %v2201_v9, %v2201_v9 }
 0x15f   :  { %v1125_v50 = vadd.f32 %v1124_v61, %v2192_v28  ;;  %v1258_v32 = vadd.f32 %v1257_v60, %v1195_v24 }
 0x161   :  { %v1259_v33 = vadd.f32 %v1258_v32, %v1196_v10  ;;  %v1126_v1 = vadd.f32 %v1125_v50, %v2210_v49 }
 0x163   :  { %v1127_v16 = vadd.f32 %v2183_v11, %v1126_v1  ;;  %v1260_v3 = vadd.f32 %v1259_v33, %v1197_v62 }
 0x165   :  { %v1128_v34 = vadd.f32 %v2201_v9, %v1127_v16  ;;  %v1261_v39 = vadd.f32 %v1260_v3, %v1198_v55 }
 0x167   :  { %v1129_v28 = vrot.slane %v1128_v34, 4  ;;  %v1262_v40 = vadd.f32 %v1261_v39, %v1199_v23 }
 0x169   :  { %v1130_v58 = vadd.f32 %v1129_v28, %v1128_v34  ;;  %v1263_v6 = vrot.slane %v1262_v40, 4 }
 0x16b   :  { %v1131_v27 = vrot.slane %v1130_v58, 2  ;;  %v1264_v41 = vadd.f32 %v1263_v6, %v1262_v40 }
 0x16d   :  { %v1132_v7 = vadd.f32 %v1131_v27, %v1130_v58  ;;  %v1265_v49 = vrot.slane %v1264_v41, 2 }
 0x16f   :  { %v1133_v63 = vrot.slane %v1132_v7, 1  ;;  %v1266_v12 = vadd.f32 %v1265_v49, %v1264_v41 }
 0x171   :  { %v1134_v20 = vadd.f32 %v1133_v63, %v1132_v7  ;;  %v1267_v13 = vrot.slane %v1266_v12, 1 }
 0x173   :  { %1135 = vst [vmem:[%s2314_s5] sm:$0x1] %v1134_v20  ;;  %v1268_v11 = vadd.f32 %v1267_v13, %v1266_v12 }
 0x175   :  { %1269 = vst [vmem:[%s2314_s5 + $0x1] sm:$0x1] %v1268_v11 }

// kernel: bottleneck_forward.6
= control target key start
LH: loop header
LB: loop body
LE: loop exit
PB: predicated region body
PF: predicated region fallthrough
CT: control target
= control target key end

     0   :  { %s4953_s18 = smov 0   ;;  %s6169_s0 = inlined_call_operand.vmem [shape: f32[2,16,16,128], index: 0, kind: input, shape index: {}]   ;;  %s6170_s1 = inlined_call_operand.vmem [shape: f32[1,128], index: 1, kind: input, shape index: {}]   ;;  %s6171_s2 = inlined_call_operand.vmem [shape: f32[1,128], index: 2, kind: input, shape index: {}]   ;;  %s6172_s3 = inlined_call_operand.vmem [shape: bf16[1152,128], index: 3, kind: input, shape index: {}]   ;;  %s6173_s4 = inlined_call_operand.vmem [shape: f32[512,128], index: 4, kind: output, shape index: {0}]   ;;  %s6174_s5 = inlined_call_operand.vmem [shape: f32[2,2,128], index: 5, kind: output, shape index: {1}]  }
   0x1 LB: > { %s4959_s19 = sadd.s32 4294967295, %s4919_s18   ;;  %p4084_p0 = scmp.ge.s32.totalorder %s4919_s18, 1  ;;  %s4919_s18 = sphi %s4953_s18, %s16_s18  }
   0x2   : > { %p190_p1 = scmp.lt.s32.totalorder %s4919_s18, 3 }
   0x4   : > { %p191_p2 = pnand %p4084_p0, %p190_p1 }
   0x6   : > { %194 = sbr.rel (%p191_p2) target bundleno = 556 (0x22c), region = 36 }
   0xb   : > { %v4840_v0 = vld [vmem:[%s6172_s3 + $0x38] sm:$0xff]   ;;  %v4969_v1 = vld [vmem:[%s6172_s3 + $0x30] sm:$0xff]   ;;  %v4921_v2 = vmov 0.0   ;;  %p222_p3 = scmp.lt.s32.totalorder %s4959_s19, 1  ;;  %v4842_v3 = vld [vmem:[%s6172_s3 + $0x28] sm:$0xff]   ;;  %v4922_v4 = vmov 0.0|0.0  }
   0xc   : > { %380 = vst [vmem:[#allocation2] sm:$0xff] %v4921_v2  ;;  %381 = vst [vmem:[#allocation2 + $0x8] sm:$0xff] %v4921_v2  ;;  %4383 = vmatprep.subr.bf16.mxu0 %v4840_v0  ;;  %4815 = vmatprep.subr.bf16.mxu1 %v4840_v0  ;;  %v4843_v5 = vld [vmem:[%s6172_s3 + $0x20] sm:$0xff]   ;;  %v4844_v21 = vld [vmem:[%s6172_s3 + $0x18] sm:$0xff]   ;;  %s4087_s21 = sshll.u32 %s4959_s19, 5 }
   0xd   : > { %382 = vst [vmem:[#allocation2 + $0x10] sm:$0x3] %v4921_v2  ;;  %383 = vst [vmem:[#allocation2 + $0x18] sm:$0xff] %v4921_v2  ;;  %4384 = vmatpush3.bf16.msra.mxu0 %v4840_v0  ;;  %4823 = vmatpush3.bf16.msra.mxu1 %v4840_v0  ;;  %s4973_s24 = scalar_select %p222_p3, %s4959_s19, 1  ;;  %v4996_v8 = vld [vmem:[%s6170_s1] ss:$0 sm:$0xff] }
   0xe   : > { %384 = vst [vmem:[#allocation2 + $0x20] sm:$0xff] %v4921_v2  ;;  %385 = vst [vmem:[#allocation2 + $0x28] sm:$0x3] %v4921_v2  ;;  %4385 = vmatprep.subr.bf16.mxu0 %v4969_v1  ;;  %4816 = vmatprep.subr.bf16.mxu1 %v4969_v1  ;;  %v5003_v11 = vld [vmem:[%s6171_s2] ss:$0 sm:$0xff]  ;;  %v4845_v28 = vld [vmem:[%s6172_s3 + $0x10] sm:$0xff]  }
   0xf   : > { %386 = vst [vmem:[#allocation2 + $0x30] sm:$0xff] %v4921_v2  ;;  %387 = vst [vmem:[#allocation2 + $0x38] sm:$0xff] %v4921_v2  ;;  %4399 = vmatprep.mubr.bf16.mxu0 %v4922_v4  ;;  %s4166_s27 = sshll.u32 %s4973_s24, 8  ;;  %v4846_v56 = vld [vmem:[%s6172_s3 + $0x8] sm:$0xff]   ;;  %p228_p4 = scmp.lt.s32.totalorder %s4087_s21, 63 }
  0x10   : > { %388 = vst [vmem:[#allocation2 + $0x40] sm:$0x3] %v4921_v2  ;;  %389 = vst [vmem:[#allocation2 + $0x48] sm:$0xff] %v4921_v2  ;;  %s4984_s30 = scalar_lea.vmem %s6169_s0, %s4166_s27  ;;  %s4089_s26 = sshll.u32 %s4973_s24, 1 }
  0x11   : > { %390 = vst [vmem:[#allocation2 + $0x50] sm:$0xff] %v4921_v2  ;;  %391 = vst [vmem:[#allocation2 + $0x58] sm:$0x3] %v4921_v2  ;;  %4386 = vmatpush3.bf16.msra.mxu0 %v4969_v1  ;;  %4824 = vmatpush3.bf16.msra.mxu1 %v4969_v1  ;;  %v252_v6 = vld [vmem:[%s4984_s30 + $0x70] sm:$0xff]  ;;  %v253_v7 = vld [vmem:[%s4984_s30 + $0x78] sm:$0xff]  ;;  %s6260_s21 = smov (!%p228_p4, %s4087_s21), 63  ;;  %s236_s28 = scalar_lea.vmem %s6174_s5, %s4089_s26 }
  0x12   : > { %392 = vst [vmem:[#allocation2 + $0x60] sm:$0xff] %v4921_v2  ;;  %393 = vst [vmem:[#allocation2 + $0x68] sm:$0xff] %v4921_v2  ;;  %4387 = vmatprep.subr.bf16.mxu0 %v4842_v3  ;;  %4817 = vmatprep.subr.bf16.mxu1 %v4842_v3  ;;  %v291_v9 = vmul.f32 %v4996_v8, %v252_v6  ;;  %v292_v10 = vmul.f32 %v4996_v8, %v253_v7  ;;  %v238_v12 = vld [vmem:[%s4984_s30] sm:$0xff]  ;;  %v239_v13 = vld [vmem:[%s4984_s30 + $0x8] sm:$0xff]  ;;  %s4088_s19 = sshll.u32 %s6260_s21, 3 }
  0x13   : > { %394 = vst [vmem:[#allocation2 + $0x70] sm:$0x3] %v4921_v2  ;;  %395 = vst [vmem:[#allocation2 + $0x78] sm:$0xff] %v4921_v2  ;;  %v277_v14 = vmul.f32 %v4996_v8, %v238_v12  ;;  %v278_v15 = vmul.f32 %v4996_v8, %v239_v13  ;;  %v254_v16 = vld [vmem:[%s4984_s30 + $0x80] sm:$0xff]  ;;  %v255_v17 = vld [vmem:[%s4984_s30 + $0x88] sm:$0xff]  ;;  %s6042_s25 = scalar_lea.vmem %s6173_s4, %s4088_s19 }
  0x14   : > { %396 = vst [vmem:[#allocation2 + $0x80] sm:$0xff] %v4921_v2  ;;  %397 = vst [vmem:[#allocation2 + $0x88] sm:$0x3] %v4921_v2  ;;  %v330_v18 = vadd.f32 %v5003_v11, %v291_v9  ;;  %v331_v19 = vadd.f32 %v5003_v11, %v292_v10  ;;  %v293_v20 = vmul.f32 %v4996_v8, %v254_v16  ;;  %v240_v33 = vld [vmem:[%s4984_s30 + $0x10] sm:$0xff]  ;;  %v241_v34 = vld [vmem:[%s4984_s30 + $0x18] sm:$0xff] }
  0x15   : > { %398 = vst [vmem:[#allocation2 + $0x90] sm:$0xff] %v4921_v2  ;;  %399 = vst [vmem:[#allocation2 + $0x98] sm:$0xff] %v4921_v2  ;;  %4388 = vmatpush3.bf16.msra.mxu0 %v4842_v3  ;;  %4825 = vmatpush3.bf16.msra.mxu1 %v4842_v3  ;;  %v5018_v22 = vadd.f32 %v5003_v11, %v277_v14  ;;  %v5021_v23 = vadd.f32 %v5003_v11, %v278_v15  ;;  %v256_v35 = vld [vmem:[%s4984_s30 + $0x90] sm:$0xff]  ;;  %v257_v40 = vld [vmem:[%s4984_s30 + $0x98] sm:$0xff] }
  0x16   : > { %400 = vst [vmem:[#allocation2 + $0xa0] sm:$0x3] %v4921_v2  ;;  %401 = vst [vmem:[#allocation2 + $0xa8] sm:$0xff] %v4921_v2  ;;  %4389 = vmatprep.subr.bf16.mxu0 %v4843_v5  ;;  %4818 = vmatprep.subr.bf16.mxu1 %v4843_v5  ;;  %v294_v24 = vmul.f32 %v4996_v8, %v255_v17  ;;  %v362_v25 = vmax.f32 %v330_v18, 0.0  ;;  %v363_v26 = vmax.f32 %v331_v19, 0.0  ;;  %v242_v42 = vld [vmem:[%s4984_s30 + $0x20] sm:$0xff] }
  0x17   : > { %402 = vst [vmem:[#allocation2 + $0xb0] sm:$0xff] %v4921_v2  ;;  %403 = vst [vmem:[#allocation2 + $0xb8] sm:$0x3] %v4921_v2  ;;  %v332_v27 = vadd.f32 %v5003_v11, %v293_v20  ;;  %v348_v29 = vmax.f32 %v5018_v22, 0.0  ;;  %v349_v30 = vmax.f32 %v5021_v23, 0.0  ;;  %v279_v38 = vmul.f32 %v4996_v8, %v240_v33  ;;  %v243_v43 = vld [vmem:[%s4984_s30 + $0x28] sm:$0xff] }
  0x18   : > { %404 = vst [vmem:[#allocation2 + $0xc0] sm:$0xff] %v4921_v2  ;;  %405 = vst [vmem:[#allocation2 + $0xc8] sm:$0xff] %v4921_v2  ;;  %v333_v31 = vadd.f32 %v5003_v11, %v294_v24  ;;  %v5034_v36 = vpack.c.bf16 %v363_v26, %v362_v25  ;;  %v280_v39 = vmul.f32 %v4996_v8, %v241_v34  ;;  %v258_v47 = vld [vmem:[%s4984_s30 + $0xa0] sm:$0xff]  ;;  %v259_v48 = vld [vmem:[%s4984_s30 + $0xa8] sm:$0xff] }
  0x19   : > { %406 = vst [vmem:[#allocation2 + $0xd0] sm:$0x3] %v4921_v2  ;;  %407 = vst [vmem:[#allocation2 + $0xd8] sm:$0xff] %v4921_v2  ;;  %4390 = vmatpush3.bf16.msra.mxu0 %v4843_v5  ;;  %4826 = vmatpush3.bf16.msra.mxu1 %v4843_v5  ;;  %v364_v32 = vmax.f32 %v332_v27, 0.0  ;;  %v295_v41 = vmul.f32 %v4996_v8, %v256_v35  ;;  %v296_v44 = vmul.f32 %v4996_v8, %v257_v40  ;;  %v244_v10 = vld [vmem:[%s4984_s30 + $0x30] sm:$0xff]  ;;  %v4847_v13 = vld [vmem:[%s6172_s3] sm:$0xff]  }
  0x1a   : > { %408 = vst [vmem:[#allocation2 + $0xe0] sm:$0xff] %v4921_v2  ;;  %409 = vst [vmem:[#allocation2 + $0xe8] sm:$0x3] %v4921_v2  ;;  %4391 = vmatprep.subr.bf16.mxu0 %v4844_v21  ;;  %4819 = vmatprep.subr.bf16.mxu1 %v4844_v21  ;;  %v365_v37 = vmax.f32 %v333_v31, 0.0  ;;  %v281_v45 = vmul.f32 %v4996_v8, %v242_v42  ;;  %v282_v46 = vmul.f32 %v4996_v8, %v243_v43  ;;  %v245_v15 = vld [vmem:[%s4984_s30 + $0x38] sm:$0xff]  ;;  %v260_v17 = vld [vmem:[%s4984_s30 + $0xb0] sm:$0xff] }
  0x1b   : > { %410 = vst [vmem:[#allocation2 + $0xf0] sm:$0xff] %v4921_v2  ;;  %411 = vst [vmem:[#allocation2 + $0xf8] sm:$0xff] %v4921_v2  ;;  %v5052_v49 = vadd.f32 %v5003_v11, %v279_v38  ;;  %v5055_v50 = vadd.f32 %v5003_v11, %v280_v39  ;;  %v334_v51 = vadd.f32 %v5003_v11, %v295_v41  ;;  %v261_v20 = vld [vmem:[%s4984_s30 + $0xb8] sm:$0xff]  ;;  %v246_v24 = vld [vmem:[%s4984_s30 + $0x40] sm:$0xff] }
  0x1c   : > { %412 = vst [vmem:[#allocation2 + $0x100] sm:$0x3] %v4921_v2  ;;  %413 = vst [vmem:[#allocation2 + $0x108] sm:$0xff] %v4921_v2  ;;  %v297_v52 = vmul.f32 %v4996_v8, %v258_v47  ;;  %v335_v53 = vadd.f32 %v5003_v11, %v296_v44  ;;  %v5061_v54 = vadd.f32 %v5003_v11, %v281_v45  ;;  %v247_v31 = vld [vmem:[%s4984_s30 + $0x48] sm:$0xff]  ;;  %v262_v33 = vld [vmem:[%s4984_s30 + $0xc0] sm:$0xff] }
  0x1d   : > { %414 = vst [vmem:[#allocation2 + $0x110] sm:$0xff] %v4921_v2  ;;  %415 = vst [vmem:[#allocation2 + $0x118] sm:$0x3] %v4921_v2  ;;  %4392 = vmatpush3.bf16.msra.mxu0 %v4844_v21  ;;  %4827 = vmatpush3.bf16.msra.mxu1 %v4844_v21  ;;  %v5064_v55 = vadd.f32 %v5003_v11, %v282_v46  ;;  %v350_v57 = vmax.f32 %v5052_v49, 0.0  ;;  %v351_v58 = vmax.f32 %v5055_v50, 0.0  ;;  %v366_v59 = vmax.f32 %v334_v51, 0.0 }
  0x1e   : > { %416 = vst [vmem:[#allocation2 + $0x120] sm:$0xff] %v4921_v2  ;;  %417 = vst [vmem:[#allocation2 + $0x128] sm:$0xff] %v4921_v2  ;;  %4393 = vmatprep.subr.bf16.mxu0 %v4845_v28  ;;  %4820 = vmatprep.subr.bf16.mxu1 %v4845_v28  ;;  %v298_v60 = vmul.f32 %v4996_v8, %v259_v48  ;;  %v367_v61 = vmax.f32 %v335_v53, 0.0  ;;  %v352_v62 = vmax.f32 %v5061_v54, 0.0  ;;  %v263_v34 = vld [vmem:[%s4984_s30 + $0xc8] sm:$0xff]  ;;  %v4849_v40 = vld [vmem:[%s6172_s3 + $0xb8] sm:$0xff]  }
  0x1f   : > { %418 = vst [vmem:[#allocation2 + $0x130] sm:$0x3] %v4921_v2  ;;  %419 = vst [vmem:[#allocation2 + $0x138] sm:$0xff] %v4921_v2  ;;  %v353_v63 = vmax.f32 %v5064_v55, 0.0  ;;  %v5075_v0 = vadd.f32 %v5003_v11, %v297_v52  ;;  %v5084_v4 = vpack.c.bf16 %v365_v37, %v364_v32  ;;  %v283_v16 = vmul.f32 %v4996_v8, %v244_v10  ;;  %v4866_v22 = vld [vmem:[%s6172_s3 + $0xf0] sm:$0xff]   ;;  %v4870_v54 = vld [vmem:[%s6172_s3 + $0xe0] sm:$0xff]  }
  0x20   : > { %420 = vst [vmem:[#allocation2 + $0x140] sm:$0xff] %v4921_v2  ;;  %421 = vst [vmem:[#allocation2 + $0x148] sm:$0x3] %v4921_v2  ;;  %v5082_v3 = vadd.f32 %v5003_v11, %v298_v60  ;;  %v5092_v12 = vpack.c.bf16 %v367_v61, %v366_v59  ;;  %v284_v19 = vmul.f32 %v4996_v8, %v245_v15  ;;  %v4867_v23 = vld [vmem:[%s6172_s3 + $0x130] sm:$0xff]  }
  0x21   : > { %422 = vst [vmem:[#allocation2 + $0x150] sm:$0xff] %v4921_v2  ;;  %423 = vst [vmem:[#allocation2 + $0x158] sm:$0xff] %v4921_v2  ;;  %4394 = vmatpush3.bf16.msra.mxu0 %v4845_v28  ;;  %4828 = vmatpush3.bf16.msra.mxu1 %v4845_v28  ;;  %v368_v9 = vmax.f32 %v5075_v0, 0.0  ;;  %v299_v21 = vmul.f32 %v4996_v8, %v260_v17  ;;  %v5117_v27 = vadd.f32 %v5003_v11, %v283_v16 }
  0x22   : > { %424 = vst [vmem:[#allocation2 + $0x160] sm:$0x3] %v4921_v2  ;;  %425 = vst [vmem:[#allocation2 + $0x168] sm:$0xff] %v4921_v2  ;;  %4395 = vmatprep.subr.bf16.mxu0 %v4846_v56  ;;  %4821 = vmatprep.subr.bf16.mxu1 %v4846_v56  ;;  %v369_v14 = vmax.f32 %v5082_v3, 0.0  ;;  %v300_v28 = vmul.f32 %v4996_v8, %v261_v20  ;;  %v286_v39 = vmul.f32 %v4996_v8, %v247_v31 }
  0x23   : > { %426 = vst [vmem:[#allocation2 + $0x170] sm:$0xff] %v4921_v2  ;;  %427 = vst [vmem:[#allocation2 + $0x178] sm:$0x3] %v4921_v2  ;;  %v338_v38 = vadd.f32 %v5003_v11, %v299_v21  ;;  %v354_v41 = vmax.f32 %v5117_v27, 0.0  ;;  %v301_v44 = vmul.f32 %v4996_v8, %v262_v33  ;;  %v302_v52 = vmul.f32 %v4996_v8, %v263_v34  ;;  %v265_v33 = vld [vmem:[%s4984_s30 + $0xd8] sm:$0xff] }
  0x24   : > { %428 = vst [vmem:[#allocation2 + $0x180] sm:$0xff] %v4921_v2  ;;  %429 = vst [vmem:[#allocation2 + $0x188] sm:$0xff] %v4921_v2  ;;  %v339_v42 = vadd.f32 %v5003_v11, %v300_v28  ;;  %v5140_v51 = vadd.f32 %v5003_v11, %v286_v39  ;;  %v5174_v16 = vpack.c.bf16 %v369_v14, %v368_v9  ;;  %v249_v28 = vld [vmem:[%s4984_s30 + $0x58] sm:$0xff]  ;;  %v250_v39 = vld [vmem:[%s4984_s30 + $0x60] sm:$0xff] }
  0x25   : > { %430 = vst [vmem:[#allocation2 + $0x190] sm:$0x3] %v4921_v2  ;;  %431 = vst [vmem:[#allocation2 + $0x198] sm:$0xff] %v4921_v2  ;;  %4396 = vmatpush3.bf16.msra.mxu0 %v4846_v56  ;;  %4829 = vmatpush3.bf16.msra.mxu1 %v4846_v56  ;;  %v370_v48 = vmax.f32 %v338_v38, 0.0  ;;  %v5147_v56 = vld [vmem:[%s6172_s3 + $0x70] sm:$0xff]   ;;  %v5164_v10 = vadd.f32 %v5003_v11, %v302_v52  ;;  %v288_v34 = vmul.f32 %v4996_v8, %v249_v28 }
  0x26   : > { %432 = vst [vmem:[#allocation2 + $0x1a0] sm:$0xff] %v4921_v2  ;;  %433 = vst [vmem:[#allocation2 + $0x1a8] sm:$0x3] %v4921_v2  ;;  %4397 = vmatprep.subr.bf16.mxu0 %v4847_v13  ;;  %4822 = vmatprep.subr.bf16.mxu1 %v4847_v13  ;;  %v304_v38 = vmul.f32 %v4996_v8, %v265_v33  ;;  %v4855_v33 = vld [vmem:[%s6172_s3 + $0xa0] sm:$0xff]  }
  0x27   : > { %449 = vst [vmem:[#allocation2 + $0xc1] sm:$0xff] %v362_v25  ;;  %450 = vst [vmem:[#allocation2 + $0xc9] sm:$0xff] %v363_v26  ;;  %v5114_v26 = vld [vmem:[%s6172_s3 + $0x78] sm:$0xff]   ;;  %v373_v21 = vmax.f32 %v5164_v10, 0.0  ;;  %v5219_v52 = vadd.f32 %v5003_v11, %v288_v34 }
  0x28   : > { %435 = vst [vmem:[#allocation2 + $0x19] sm:$0xff] %v348_v29  ;;  %436 = vst [vmem:[#allocation2 + $0x21] sm:$0xff] %v349_v30 }
  0x29   : > { %451 = vst [vmem:[#allocation2 + $0xd9] sm:$0xff] %v364_v32  ;;  %452 = vst [vmem:[#allocation2 + $0xe1] sm:$0xff] %v365_v37  ;;  %v285_v32 = vmul.f32 %v4996_v8, %v246_v24  ;;  %v5125_v37 = vadd.f32 %v5003_v11, %v284_v19  ;;  %4398 = vmatpush3.bf16.msra.mxu0 %v4847_v13  ;;  %4830 = vmatpush3.bf16.msra.mxu1 %v4847_v13  ;;  %v248_v24 = vld [vmem:[%s4984_s30 + $0x50] sm:$0xff] }
  0x2a   : > { %437 = vst [vmem:[#allocation2 + $0x31] sm:$0xff] %v350_v57  ;;  %438 = vst [vmem:[#allocation2 + $0x39] sm:$0xff] %v351_v58  ;;  %4431 = vmatprep.subr.bf16.mxu1 %v5114_v26  ;;  %4479 = vmatprep.subr.bf16.mxu0 %v4849_v40  ;;  %v287_v31 = vmul.f32 %v4996_v8, %v248_v24  ;;  %v359_v24 = vmax.f32 %v5219_v52, 0.0 }
  0x2b   : > { %453 = vst [vmem:[#allocation2 + $0xf1] sm:$0xff] %v366_v59  ;;  %454 = vst [vmem:[#allocation2 + $0xf9] sm:$0xff] %v367_v61  ;;  %v5135_v43 = vadd.f32 %v5003_v11, %v285_v32  ;;  %v355_v47 = vmax.f32 %v5125_v37, 0.0  ;;  %v5152_v59 = vld [vmem:[%s6172_s3 + $0xb0] sm:$0xff]  }
  0x2c   : > { %439 = vst [vmem:[#allocation2 + $0x49] sm:$0xff] %v352_v62  ;;  %440 = vst [vmem:[#allocation2 + $0x51] sm:$0xff] %v353_v63  ;;  %v264_v32 = vld [vmem:[%s4984_s30 + $0xd0] sm:$0xff] }
  0x2d   : > { %455 = vst [vmem:[#allocation2 + $0x109] sm:$0xff] %v368_v9  ;;  %456 = vst [vmem:[#allocation2 + $0x111] sm:$0xff] %v369_v14  ;;  %v356_v3 = vmax.f32 %v5135_v43, 0.0  ;;  %v4852_v14 = vld [vmem:[%s6172_s3 + $0x68] sm:$0xff]   ;;  %v4874_v43 = vld [vmem:[%s6172_s3 + $0xd0] sm:$0xff]  }
  0x2e   : > { %v515_v1 = vld [vmem:[#allocation2 + $0xc0] sm:$0xff]  ;;  %v516_v2 = vld [vmem:[#allocation2 + $0xc8] sm:$0xff]  ;;  %441 = vst [vmem:[#allocation2 + $0x61] sm:$0xff] %v354_v41  ;;  %442 = vst [vmem:[#allocation2 + $0x69] sm:$0xff] %v355_v47 }
  0x2f   : > { %v571_v5 = vpack.c.bf16 %v516_v2, %v515_v1  ;;  %v501_v6 = vld [vmem:[#allocation2 + $0x18] sm:$0xff]  ;;  %v502_v7 = vld [vmem:[#allocation2 + $0x20] sm:$0xff]  ;;  %v371_v2 = vmax.f32 %v339_v42, 0.0  ;;  %457 = vst [vmem:[#allocation2 + $0x121] sm:$0xff] %v370_v48  ;;  %443 = vst [vmem:[#allocation2 + $0x79] sm:$0xff] %v356_v3 }
  0x30   : > { %v5101_v18 = vld [vmem:[#allocation2 + $0xd8] sm:$0xff]  ;;  %v5109_v25 = vpack.c.bf16 %v502_v7, %v501_v6  ;;  %v518_v35 = vld [vmem:[#allocation2 + $0xe0] sm:$0xff]  ;;  %v357_v7 = vmax.f32 %v5140_v51, 0.0  ;;  %460 = vst [vmem:[#allocation2 + $0x141] sm:$0xff] %v373_v21  ;;  %v251_v42 = vld [vmem:[%s4984_s30 + $0x68] sm:$0xff] }
  0x31   : > { %4415 = vmatprep.mubr.bf16.mxu1 %v571_v5  ;;  %v503_v45 = vld [vmem:[#allocation2 + $0x30] sm:$0xff]  ;;  %v504_v46 = vld [vmem:[#allocation2 + $0x38] sm:$0xff]  ;;  %v572_v53 = vpack.c.bf16 %v518_v35, %v5101_v18  ;;  %v5158_v5 = vadd.f32 %v5003_v11, %v301_v44  ;;  %458 = vst [vmem:[#allocation2 + $0x129] sm:$0xff] %v371_v2  ;;  %v5176_v17 = vpack.c.bf16 %v371_v2, %v370_v48  ;;  %v266_v44 = vld [vmem:[%s4984_s30 + $0xe0] sm:$0xff] }
  0x32   : > { %v519_v60 = vld [vmem:[#allocation2 + $0xf0] sm:$0xff]  ;;  %v520_v61 = vld [vmem:[#allocation2 + $0xf8] sm:$0xff]  ;;  %v5178_v18 = vpack.c.bf16 %v504_v46, %v503_v45  ;;  %444 = vst [vmem:[#allocation2 + $0x81] sm:$0xff] %v357_v7  ;;  %4400 = vmatmul.mubr.bf16.vlgmr.msra.gmra.mxu0 %v5109_v25  ;;  %v303_v35 = vmul.f32 %v4996_v8, %v264_v32  ;;  %v289_v45 = vmul.f32 %v4996_v8, %v250_v39  ;;  %v4854_v32 = vld [vmem:[%s6172_s3 + $0x60] sm:$0xff]  }
  0x33   : > { %v505_v1 = vld [vmem:[#allocation2 + $0x48] sm:$0xff]  ;;  %v506_v6 = vld [vmem:[#allocation2 + $0x50] sm:$0xff]  ;;  %v372_v13 = vmax.f32 %v5158_v5, 0.0  ;;  %v573_v19 = vpack.c.bf16 %v520_v61, %v519_v60  ;;  %4416 = vmatmul.mubr.bf16.vlgmr.msra.gmra.mxu1 %v572_v53  ;;  %4480 = vmatpush3.bf16.msra.mxu0 %v4849_v40  ;;  %v5213_v40 = vadd.f32 %v5003_v11, %v287_v31  ;;  %v290_v46 = vmul.f32 %v4996_v8, %v251_v42 }
  0x34   : > { %v5167_v15 = vld [vmem:[#allocation2 + $0x108] sm:$0xff]  ;;  %v5180_v20 = vld [vmem:[#allocation2 + $0x110] sm:$0xff]  ;;  %v5187_v0 = vpack.c.bf16 %v506_v6, %v505_v1  ;;  %4432 = vmatpush3.bf16.msra.mxu1 %v5114_v26  ;;  %4481 = vmatprep.subr.bf16.mxu0 %v5152_v59  ;;  %v342_v53 = vadd.f32 %v5003_v11, %v303_v35  ;;  %v343_v60 = vadd.f32 %v5003_v11, %v304_v38 }
  0x35   : > { %v574_v9 = vpack.c.bf16 %v5180_v20, %v5167_v15  ;;  %459 = vst [vmem:[#allocation2 + $0x139] sm:$0xff] %v372_v13  ;;  %4433 = vmatprep.subr.bf16.mxu1 %v5147_v56  ;;  %v4853_v26 = vld [vmem:[%s6172_s3 + $0xa8] sm:$0xff]   ;;  %4403 = vmatprep.mubr.bf16.mxu0 %v5178_v18  ;;  %v507_v48 = vld [vmem:[#allocation2 + $0x60] sm:$0xff]  ;;  %v358_v6 = vmax.f32 %v5213_v40, 0.0  ;;  %v5226_v10 = vadd.f32 %v5003_v11, %v289_v45  ;;  %446 = vst [vmem:[#allocation2 + $0x99] sm:$0xff] %v359_v24 }
  0x36   : > { %4419 = vmatprep.mubr.bf16.mxu1 %v573_v19  ;;  %v267_v61 = vld [vmem:[%s4984_s30 + $0xe8] sm:$0xff]  ;;  %v523_v2 = vld [vmem:[#allocation2 + $0x120] sm:$0xff]  ;;  %v5229_v15 = vadd.f32 %v5003_v11, %v290_v46  ;;  %v305_v19 = vmul.f32 %v4996_v8, %v266_v44  ;;  %v374_v28 = vmax.f32 %v342_v53, 0.0  ;;  %v375_v31 = vmax.f32 %v343_v60, 0.0  ;;  %v509_v44 = vld [vmem:[#allocation2 + $0x78] sm:$0xff] }
  0x37   : > { %v508_v1 = vld [vmem:[#allocation2 + $0x68] sm:$0xff]  ;;  %4482 = vmatpush3.bf16.msra.mxu0 %v5152_v59  ;;  %445 = vst [vmem:[#allocation2 + $0x91] sm:$0xff] %v358_v6  ;;  %v306_v34 = vmul.f32 %v4996_v8, %v267_v61  ;;  %v5255_v42 = vpack.c.bf16 %v373_v21, %v372_v13  ;;  %v4857_v53 = vld [vmem:[%s6172_s3 + $0x98] sm:$0xff]   ;;  %v4875_v51 = vld [vmem:[%s6172_s3 + $0x110] sm:$0xff]  }
  0x38   : > { %4434 = vmatpush3.bf16.msra.mxu1 %v5147_v56  ;;  %v524_v20 = vld [vmem:[#allocation2 + $0x128] sm:$0xff]  ;;  %4483 = vmatprep.subr.bf16.mxu0 %v4853_v26  ;;  %v360_v56 = vmax.f32 %v5226_v10, 0.0  ;;  %v6175_v59 = vmax.f32 %v5229_v15, 0.0  ;;  %v5246_v35 = vpack.c.bf16 %v508_v1, %v507_v48  ;;  %461 = vst [vmem:[#allocation2 + $0x151] sm:$0xff] %v374_v28  ;;  %462 = vst [vmem:[#allocation2 + $0x159] sm:$0xff] %v375_v31  ;;  %v4858_v1 = vld [vmem:[%s6172_s3 + $0x50] sm:$0xff]  }
  0x39   : > { %4435 = vmatprep.subr.bf16.mxu1 %v4852_v14  ;;  %v5248_v38 = vpack.c.bf16 %v524_v20, %v523_v2  ;;  %v344_v39 = vadd.f32 %v5003_v11, %v305_v19  ;;  %v345_v45 = vadd.f32 %v5003_v11, %v306_v34  ;;  %v5263_v46 = vpack.c.bf16 %v375_v31, %v374_v28  ;;  %v510_v48 = vld [vmem:[#allocation2 + $0x80] sm:$0xff]  ;;  %v4859_v2 = vld [vmem:[%s6172_s3 + $0x90] sm:$0xff]  }
  0x3a   : > { %4404 = vmatmul.mubr.bf16.gmra.mxu0 %v5187_v0  ;;  %447 = vst [vmem:[#allocation2 + $0xa9] sm:$0xff] %v360_v56  ;;  %448 = vst [vmem:[#allocation2 + $0xb1] sm:$0xff] %v6175_v59  ;;  %v1245_v49 = vld [vmem:[#allocation2 + $0x62] sm:$0xff]  ;;  %v1246_v50 = vld [vmem:[#allocation2 + $0x6a] sm:$0xff] }
  0x3b   : > { %4420 = vmatmul.mubr.bf16.gmra.mxu1 %v574_v9  ;;  %4484 = vmatpush3.bf16.msra.mxu0 %v4853_v26  ;;  %v376_v21 = vmax.f32 %v344_v39, 0.0  ;;  %v4856_v9 = vld [vmem:[%s6172_s3 + $0x58] sm:$0xff]   ;;  %v377_v60 = vmax.f32 %v345_v45, 0.0  ;;  %v1253_v40 = vld [vmem:[#allocation2 + $0xc2] sm:$0xff]  ;;  %v1254_v52 = vld [vmem:[#allocation2 + $0xca] sm:$0xff] }
  0x3c   : > { %4436 = vmatpush3.bf16.msra.mxu1 %v4852_v14  ;;  %v525_v5 = vld [vmem:[#allocation2 + $0x138] sm:$0xff]  ;;  %v526_v13 = vld [vmem:[#allocation2 + $0x140] sm:$0xff]  ;;  %4485 = vmatprep.subr.bf16.mxu0 %v4855_v33  ;;  %v5273_v14 = vpack.c.bf16 %v510_v48, %v509_v44  ;;  %v4861_v48 = vld [vmem:[%s6172_s3 + $0x88] sm:$0xff]  }
  0x3d   : > { %4437 = vmatprep.subr.bf16.mxu1 %v4854_v32  ;;  %4407 = vmatprep.mubr.bf16.mxu0 %v5246_v35  ;;  %463 = vst [vmem:[#allocation2 + $0x169] sm:$0xff] %v376_v21  ;;  %v5275_v26 = vpack.c.bf16 %v526_v13, %v525_v5  ;;  %464 = vst [vmem:[#allocation2 + $0x171] sm:$0xff] %v377_v60  ;;  %v5277_v61 = vpack.c.bf16 %v377_v60, %v376_v21  ;;  %v868_v5 = vld [vmem:[#allocation2 + $0x1] sm:$0xff]  ;;  %v869_v21 = vld [vmem:[#allocation2 + $0x9] sm:$0xff] }
  0x3e   : > { %4423 = vmatprep.mubr.bf16.mxu1 %v5248_v38  ;;  %v511_v19 = vld [vmem:[#allocation2 + $0x90] sm:$0xff]  ;;  %v512_v20 = vld [vmem:[#allocation2 + $0x98] sm:$0xff]  ;;  %v1237_v60 = vld [vmem:[#allocation2 + $0x2] sm:$0xff] }
  0x3f   : > { %4486 = vmatpush3.bf16.msra.mxu0 %v4855_v33  ;;  %v527_v28 = vld [vmem:[#allocation2 + $0x150] sm:$0xff]  ;;  %v528_v31 = vld [vmem:[#allocation2 + $0x158] sm:$0xff]  ;;  %v5285_v34 = vpack.c.bf16 %v512_v20, %v511_v19  ;;  %v4860_v33 = vld [vmem:[%s6172_s3 + $0x48] sm:$0xff]  }
  0x40   : > { %4438 = vmatpush3.bf16.msra.mxu1 %v4854_v32  ;;  %4487 = vmatprep.subr.bf16.mxu0 %v4857_v53  ;;  %v5287_v39 = vpack.c.bf16 %v528_v31, %v527_v28  ;;  %v4862_v20 = vld [vmem:[%s6172_s3 + $0x40] sm:$0xff]   ;;  %v932_v31 = vpack.c.bf16 %v869_v21, %v868_v5  ;;  %v5353_v21 = vpack.c.bf16 %v353_v63, %v352_v62  ;;  %v1249_v27 = vld [vmem:[#allocation2 + $0x92] sm:$0xff] }
  0x41   : > { %4439 = vmatprep.subr.bf16.mxu1 %v4856_v9  ;;  %v513_v32 = vld [vmem:[#allocation2 + $0xa8] sm:$0xff]  ;;  %v514_v44 = vld [vmem:[#allocation2 + $0xb0] sm:$0xff]  ;;  %v4863_v28 = vld [vmem:[%s6172_s3 + $0x80] sm:$0xff]  }
  0x42   : > { %4408 = vmatmul.mubr.bf16.gmra.mxu0 %v5273_v14  ;;  %v5299_v19 = vpack.c.bf16 %v514_v44, %v513_v32  ;;  %v4864_v32 = vld [vmem:[%s6172_s3 + $0xf8] sm:$0xff]   ;;  %v1248_v62 = vld [vmem:[#allocation2 + $0x82] sm:$0xff] }
  0x43   : > { %4424 = vmatmul.mubr.bf16.gmra.mxu1 %v5275_v26  ;;  %4488 = vmatpush3.bf16.msra.mxu0 %v4857_v53  ;;  %v1238_v53 = vld [vmem:[#allocation2 + $0xa] sm:$0xff]  ;;  %v4865_v44 = vld [vmem:[%s6172_s3 + $0x138] sm:$0xff]   ;;  %v4871_v63 = vld [vmem:[%s6172_s3 + $0x120] sm:$0xff]  }
  0x44   : > { %4440 = vmatpush3.bf16.msra.mxu1 %v4856_v9  ;;  %4489 = vmatprep.subr.bf16.mxu0 %v4859_v2  ;;  %v529_v45 = vld [vmem:[#allocation2 + $0x168] sm:$0xff]  ;;  %v530_v13 = vld [vmem:[#allocation2 + $0x170] sm:$0xff]  ;;  %v1301_v59 = vpack.c.bf16 %v1238_v53, %v1237_v60  ;;  %v1242_v5 = vld [vmem:[#allocation2 + $0x3a] sm:$0xff]  ;;  %v5361_v53 = vpack.c.bf16 %v355_v47, %v354_v41 }
  0x45   : > { %4441 = vmatprep.subr.bf16.mxu1 %v4858_v1  ;;  %4411 = vmatprep.mubr.bf16.mxu0 %v5285_v34  ;;  %v5301_v9 = vpack.c.bf16 %v530_v13, %v529_v45  ;;  %v1241_v45 = vld [vmem:[#allocation2 + $0x32] sm:$0xff]  ;;  %v5329_v13 = vpack.c.bf16 %v351_v58, %v350_v57  ;;  %v4868_v57 = vld [vmem:[%s6172_s3 + $0xe8] sm:$0xff]   ;;  %v1247_v55 = vld [vmem:[#allocation2 + $0x7a] sm:$0xff] }
  0x46   : > { %4427 = vmatprep.mubr.bf16.mxu1 %v5287_v39  ;;  %v4869_v58 = vld [vmem:[%s6172_s3 + $0x128] sm:$0xff]   ;;  %v1250_v37 = vld [vmem:[#allocation2 + $0x9a] sm:$0xff] }
  0x47   : > { %4490 = vmatpush3.bf16.msra.mxu0 %v4859_v2  ;;  %v1240_v2 = vld [vmem:[#allocation2 + $0x22] sm:$0xff]  ;;  %v4872_v41 = vld [vmem:[%s6172_s3 + $0xd8] sm:$0xff]  }
  0x48   : > { %4442 = vmatpush3.bf16.msra.mxu1 %v4858_v1  ;;  %4491 = vmatprep.subr.bf16.mxu0 %v4861_v48  ;;  %v1239_v1 = vld [vmem:[#allocation2 + $0x1a] sm:$0xff] }
  0x49   : > { %4443 = vmatprep.subr.bf16.mxu1 %v4860_v33  ;;  %v4873_v47 = vld [vmem:[%s6172_s3 + $0x118] sm:$0xff]   ;;  %v4879_v10 = vld [vmem:[%s6172_s3 + $0x100] sm:$0xff]  }
  0x4a   : > { %4412 = vmatmul.mubr.bf16.gmra.mxu0 %v5299_v19 }
  0x4b   : > { %4428 = vmatmul.mubr.bf16.gmra.mxu1 %v5301_v9  ;;  %4492 = vmatpush3.bf16.msra.mxu0 %v4861_v48  ;;  %v5323_v48 = vpack.c.bf16 %v1240_v2, %v1239_v1  ;;  %v5393_v1 = vpack.c.bf16 %v359_v24, %v358_v6  ;;  %v5395_v2 = vpack.c.bf16 %v1250_v37, %v1249_v27  ;;  %v4876_v6 = vld [vmem:[%s6172_s3 + $0xc8] sm:$0xff]  }
  0x4c   : > { %4444 = vmatpush3.bf16.msra.mxu1 %v4860_v33  ;;  %4493 = vmatprep.subr.bf16.mxu0 %v4863_v28  ;;  %v5321_v33 = vpack.c.bf16 %v349_v30, %v348_v29  ;;  %v1243_v29 = vld [vmem:[#allocation2 + $0x4a] sm:$0xff]  ;;  %v1244_v30 = vld [vmem:[#allocation2 + $0x52] sm:$0xff] }
  0x4d   : > { %4445 = vmatprep.subr.bf16.mxu1 %v4862_v20  ;;  %4447 = vmatprep.mubr.bf16.mxu1 %v932_v31  ;;  %v5355_v60 = vpack.c.bf16 %v1244_v30, %v1243_v29  ;;  %v5387_v31 = vpack.c.bf16 %v1248_v62, %v1247_v55  ;;  %v4877_v24 = vld [vmem:[%s6172_s3 + $0x108] sm:$0xff]   ;;  %v4880_v30 = vld [vmem:[%s6172_s3 + $0x178] sm:$0xff]  }
  0x4e   : > { %4495 = vmatprep.mubr.bf16.mxu0 %v1301_v59  ;;  %v5331_v59 = vpack.c.bf16 %v1242_v5, %v1241_v45  ;;  %v5421_v5 = vpack.c.bf16 %v1254_v52, %v1253_v40  ;;  %v1256_v29 = vld [vmem:[#allocation2 + $0xe2] sm:$0xff]  ;;  %v1266_v40 = vld [vmem:[#allocation2 + $0x15a] sm:$0xff] }
  0x4f   : > { %4494 = vmatpush3.bf16.msra.mxu0 %v4863_v28  ;;  %v5385_v28 = vpack.c.bf16 %v357_v7, %v356_v3  ;;  %v1251_v3 = vld [vmem:[#allocation2 + $0xaa] sm:$0xff]  ;;  %v1252_v7 = vld [vmem:[#allocation2 + $0xb2] sm:$0xff] }
  0x50   : > { %4446 = vmatpush3.bf16.msra.mxu1 %v4862_v20  ;;  %4575 = vmatprep.subr.bf16.mxu0 %v4865_v44  ;;  %v5363_v20 = vpack.c.bf16 %v1246_v50, %v1245_v49  ;;  %v5419_v45 = vpack.c.bf16 %v1252_v7, %v1251_v3  ;;  %v268_v49 = vld [vmem:[%s4984_s30 + $0xf0] sm:$0xff]  ;;  %v269_v50 = vld [vmem:[%s4984_s30 + $0xf8] sm:$0xff]  ;;  %v1264_v7 = vld [vmem:[#allocation2 + $0x142] sm:$0xff] }
  0x51   : > { %4527 = vmatprep.subr.bf16.mxu1 %v4864_v32 }
  0x52   : > { %4496 = vmatmul.mubr.bf16.vlgmr.msra.gmra.mxu0 %v5323_v48 }
  0x53   : > { %4448 = vmatmul.mubr.bf16.vlgmr.msra.gmra.mxu1 %v5321_v33  ;;  %4576 = vmatpush3.bf16.msra.mxu0 %v4865_v44 }
  0x54   : > { %4528 = vmatpush3.bf16.msra.mxu1 %v4864_v32  ;;  %4451 = vmatprep.mubr.bf16.mxu1 %v5329_v13  ;;  %v6176_v32 = vmax.f32 %v5229_v15, 0.0  ;;  %v1257_v15 = vld [vmem:[#allocation2 + $0xf2] sm:$0xff] }
  0x55   : > { %4499 = vmatprep.mubr.bf16.mxu0 %v5331_v59  ;;  %4529 = vmatprep.subr.bf16.mxu1 %v4866_v22 }
  0x56   : > { %4577 = vmatprep.subr.bf16.mxu0 %v4867_v23  ;;  %v5417_v44 = vpack.c.bf16 %v6176_v32, %v360_v56  ;;  %v1258_v56 = vld [vmem:[#allocation2 + $0xfa] sm:$0xff] }
  0x57   : > { %4578 = vmatpush3.bf16.msra.mxu0 %v4867_v23  ;;  %v1255_v23 = vld [vmem:[#allocation2 + $0xda] sm:$0xff]  ;;  %v5445_v55 = vpack.c.bf16 %v1258_v56, %v1257_v15 }
  0x58   : > { %4530 = vmatpush3.bf16.msra.mxu1 %v4866_v22  ;;  %4579 = vmatprep.subr.bf16.mxu0 %v4869_v58  ;;  %v4878_v22 = vld [vmem:[%s6172_s3 + $0xc0] sm:$0xff]   ;;  %v1622_v15 = vld [vmem:[#allocation2 + $0xd8] sm:$0xff] }
  0x59   : > { %4531 = vmatprep.subr.bf16.mxu1 %v4868_v57  ;;  %v1623_v56 = vld [vmem:[#allocation2 + $0xe0] sm:$0xff] }
  0x5a   : > { %4500 = vmatmul.mubr.bf16.gmra.mxu0 %v5355_v60 }
  0x5b   : > { %4452 = vmatmul.mubr.bf16.gmra.mxu1 %v5353_v21  ;;  %4503 = vmatprep.mubr.bf16.mxu0 %v5363_v20 }
  0x5c   : > { %4455 = vmatprep.mubr.bf16.mxu1 %v5361_v53  ;;  %4532 = vmatpush3.bf16.msra.mxu1 %v4868_v57  ;;  %v4881_v57 = vld [vmem:[%s6172_s3 + $0x1b8] sm:$0xff]  }
  0x5d   : > { %4580 = vmatpush3.bf16.msra.mxu0 %v4869_v58  ;;  %4533 = vmatprep.subr.bf16.mxu1 %v4870_v54  ;;  %v307_v58 = vmul.f32 %v4996_v8, %v268_v49  ;;  %v1992_v49 = vld [vmem:[#allocation2 + $0xe1] sm:$0xff] }
  0x5e   : > { %4581 = vmatprep.subr.bf16.mxu0 %v4871_v63 }
  0x5f   : > { %v346_v62 = vadd.f32 %v5003_v11, %v307_v58  ;;  %v4894_v58 = vld [vmem:[%s6172_s3 + $0x140] sm:$0xff]  }
  0x60   : > { %4534 = vmatpush3.bf16.msra.mxu1 %v4870_v54  ;;  %v5443_v54 = vpack.c.bf16 %v1256_v29, %v1255_v23  ;;  %v4883_v23 = vld [vmem:[%s6172_s3 + $0x1b0] sm:$0xff]   ;;  %v1989_v29 = vld [vmem:[#allocation2 + $0xc1] sm:$0xff] }
  0x61   : > { %4582 = vmatpush3.bf16.msra.mxu0 %v4871_v63  ;;  %4535 = vmatprep.subr.bf16.mxu1 %v4872_v41  ;;  %v378_v27 = vmax.f32 %v346_v62, 0.0  ;;  %v1624_v62 = vld [vmem:[#allocation2 + $0xf0] sm:$0xff] }
  0x62   : > { %4583 = vmatprep.subr.bf16.mxu0 %v4873_v47  ;;  %4504 = vmatmul.mubr.bf16.gmra.mxu0 %v5387_v31 }
  0x63   : > { %4456 = vmatmul.mubr.bf16.gmra.mxu1 %v5385_v28  ;;  %4507 = vmatprep.mubr.bf16.mxu0 %v5395_v2  ;;  %465 = vst [vmem:[#allocation2 + $0x181] sm:$0xff] %v378_v27 }
  0x64   : > { %4459 = vmatprep.mubr.bf16.mxu1 %v5393_v1  ;;  %4536 = vmatpush3.bf16.msra.mxu1 %v4872_v41  ;;  %v1259_v41 = vld [vmem:[#allocation2 + $0x10a] sm:$0xff] }
  0x65   : > { %4584 = vmatpush3.bf16.msra.mxu0 %v4873_v47  ;;  %4537 = vmatprep.subr.bf16.mxu1 %v4874_v43  ;;  %v1261_v47 = vld [vmem:[#allocation2 + $0x122] sm:$0xff] }
  0x66   : > { %4585 = vmatprep.subr.bf16.mxu0 %v4875_v51 }
  0x68   : > { %4538 = vmatpush3.bf16.msra.mxu1 %v4874_v43  ;;  %v1262_v43 = vld [vmem:[#allocation2 + $0x12a] sm:$0xff] }
  0x69   : > { %4586 = vmatpush3.bf16.msra.mxu0 %v4875_v51  ;;  %4539 = vmatprep.subr.bf16.mxu1 %v4876_v6  ;;  %v5457_v3 = vpack.c.bf16 %v1262_v43, %v1261_v47  ;;  %v1995_v47 = vld [vmem:[#allocation2 + $0x109] sm:$0xff]  ;;  %v1996_v43 = vld [vmem:[#allocation2 + $0x111] sm:$0xff] }
  0x6a   : > { %4587 = vmatprep.subr.bf16.mxu0 %v4877_v24  ;;  %4508 = vmatmul.mubr.bf16.gmra.mxu0 %v5419_v45 }
  0x6b   : > { %4460 = vmatmul.mubr.bf16.gmra.mxu1 %v5417_v44  ;;  %4511 = vmatprep.mubr.bf16.mxu0 %v5421_v5 }
  0x6c   : > { %4463 = vmatprep.mubr.bf16.mxu1 %v5034_v36  ;;  %4540 = vmatpush3.bf16.msra.mxu1 %v4876_v6  ;;  %v308_v36 = vmul.f32 %v4996_v8, %v269_v50  ;;  %v1260_v8 = vld [vmem:[#allocation2 + $0x112] sm:$0xff]  ;;  %v5529_v50 = vpack.c.bf16 %v1623_v56, %v1622_v15 }
  0x6d   : > { %4588 = vmatpush3.bf16.msra.mxu0 %v4877_v24  ;;  %4541 = vmatprep.subr.bf16.mxu1 %v4878_v22  ;;  %v5455_v51 = vpack.c.bf16 %v1260_v8, %v1259_v41  ;;  %v1267_v24 = vld [vmem:[#allocation2 + $0x16a] sm:$0xff]  ;;  %v4904_v56 = vld [vmem:[%s6172_s3 + $0x1d8] sm:$0xff]  }
  0x6e   : > { %4589 = vmatprep.subr.bf16.mxu0 %v4879_v10  ;;  %v347_v63 = vadd.f32 %v5003_v11, %v308_v36  ;;  %v4895_v36 = vld [vmem:[%s6172_s3 + $0x180] sm:$0xff]   ;;  %v1626_v41 = vld [vmem:[#allocation2 + $0x108] sm:$0xff]  ;;  %v1627_v8 = vld [vmem:[#allocation2 + $0x110] sm:$0xff] }
  0x6f   : > { %v2725_v15 = vld [vmem:[#allocation2 + $0xb0] sm:$0xff] }
  0x70   : > { %4542 = vmatpush3.bf16.msra.mxu1 %v4878_v22  ;;  %v379_v37 = vmax.f32 %v347_v63, 0.0  ;;  %v4882_v22 = vld [vmem:[%s6172_s3 + $0x170] sm:$0xff]   ;;  %v1625_v63 = vld [vmem:[#allocation2 + $0xf8] sm:$0xff] }
  0x71   : > { %4590 = vmatpush3.bf16.msra.mxu0 %v4879_v10  ;;  %4623 = vmatprep.subr.bf16.mxu1 %v4880_v30  ;;  %v1990_v10 = vld [vmem:[#allocation2 + $0xc9] sm:$0xff] }
  0x72   : > { %4671 = vmatprep.subr.bf16.mxu0 %v4881_v57  ;;  %4512 = vmatmul.mubr.bf16.gmra.mxu0 %v5443_v54  ;;  %466 = vst [vmem:[#allocation2 + $0x189] sm:$0xff] %v379_v37  ;;  %v5453_v11 = vpack.c.bf16 %v379_v37, %v378_v27  ;;  %v1993_v27 = vld [vmem:[#allocation2 + $0xf1] sm:$0xff]  ;;  %v1994_v37 = vld [vmem:[#allocation2 + $0xf9] sm:$0xff] }
  0x73   : > { %4464 = vmatmul.mubr.bf16.gmra.mxu1 %v5084_v4  ;;  %4515 = vmatprep.mubr.bf16.mxu0 %v5445_v55  ;;  %v1263_v4 = vld [vmem:[#allocation2 + $0x13a] sm:$0xff] }
  0x74   : > { %4467 = vmatprep.mubr.bf16.mxu1 %v5092_v12  ;;  %v1265_v12 = vld [vmem:[#allocation2 + $0x152] sm:$0xff]  ;;  %v5463_v52 = vpack.c.bf16 %v1264_v7, %v1263_v4 }
  0x75   : > { %v5465_v6 = vpack.c.bf16 %v1266_v40, %v1265_v12  ;;  %v4896_v4 = vld [vmem:[%s6172_s3 + $0x1f8] sm:$0xff]   ;;  %v5549_v12 = vpack.c.bf16 %v1625_v63, %v1624_v62  ;;  %v5551_v40 = vpack.c.bf16 %v1994_v37, %v1993_v27  ;;  %v2738_v37 = vld [vmem:[#allocation2 + $0x150] sm:$0xff] }
  0x76   : > { %v4897_v7 = vld [vmem:[%s6172_s3 + $0x238] sm:$0xff]  }
  0x7a   : > { %4516 = vmatmul.mubr.bf16.gmra.mxu0 %v5455_v51 }
  0x7b   : > { %4468 = vmatmul.mubr.bf16.gmra.mxu1 %v5174_v16  ;;  %4519 = vmatprep.mubr.bf16.mxu0 %v5457_v3  ;;  %v1268_v16 = vld [vmem:[#allocation2 + $0x172] sm:$0xff] }
  0x7c   : > { %4471 = vmatprep.mubr.bf16.mxu1 %v5176_v17  ;;  %v5471_v32 = vpack.c.bf16 %v1268_v16, %v1267_v24  ;;  %v5553_v24 = vpack.c.bf16 %v1627_v8, %v1626_v41  ;;  %v5555_v16 = vpack.c.bf16 %v1996_v43, %v1995_v47  ;;  %v2739_v41 = vld [vmem:[#allocation2 + $0x158] sm:$0xff] }
  0x82   : > { %4520 = vmatmul.mubr.bf16.gmra.mxu0 %v5463_v52 }
  0x83   : > { %4472 = vmatmul.mubr.bf16.gmra.mxu1 %v5255_v42  ;;  %4523 = vmatprep.mubr.bf16.mxu0 %v5465_v6 }
  0x84   : > { %4475 = vmatprep.mubr.bf16.mxu1 %v5263_v46 }
  0x8a   : > { %4524 = vmatmul.mubr.bf16.gmra.mxu0 %v5471_v32 }
  0x8b   : > { %4476 = vmatmul.mubr.bf16.gmra.mxu1 %v5277_v61  ;;  %4591 = vmatprep.mubr.bf16.mxu0 %v5321_v33  ;;  %v4885_v33 = vld [vmem:[%s6172_s3 + $0x1a8] sm:$0xff]  }
  0x8c   : > { %4543 = vmatprep.mubr.bf16.mxu1 %v5109_v25  ;;  %v4884_v25 = vld [vmem:[%s6172_s3 + $0x168] sm:$0xff]  }
  0x92   : > { %4592 = vmatmul.mubr.bf16.vlgmr.msra.gmra.mxu0 %v5329_v13  ;;  %v4888_v13 = vld [vmem:[%s6172_s3 + $0x158] sm:$0xff]  }
  0x93   : > { %4544 = vmatmul.mubr.bf16.vlgmr.msra.gmra.mxu1 %v5178_v18  ;;  %4672 = vmatpush3.bf16.msra.mxu0 %v4881_v57  ;;  %v4886_v18 = vld [vmem:[%s6172_s3 + $0x160] sm:$0xff]  }
  0x94   : > { %4624 = vmatpush3.bf16.msra.mxu1 %v4880_v30  ;;  %4547 = vmatprep.mubr.bf16.mxu1 %v5187_v0  ;;  %v4887_v0 = vld [vmem:[%s6172_s3 + $0x1a0] sm:$0xff]  }
  0x95   : > { %4595 = vmatprep.mubr.bf16.mxu0 %v5353_v21  ;;  %4625 = vmatprep.subr.bf16.mxu1 %v4882_v22  ;;  %v4889_v21 = vld [vmem:[%s6172_s3 + $0x198] sm:$0xff]  }
  0x96   : > { %4673 = vmatprep.subr.bf16.mxu0 %v4883_v23  ;;  %v1991_v30 = vld [vmem:[#allocation2 + $0xd9] sm:$0xff] }
  0x97   : > { %4674 = vmatpush3.bf16.msra.mxu0 %v4883_v23  ;;  %v5531_v57 = vpack.c.bf16 %v1992_v49, %v1991_v30  ;;  %v1637_v23 = vld [vmem:[#allocation2 + $0x188] sm:$0xff]  ;;  %v4905_v30 = vld [vmem:[%s6172_s3 + $0x218] sm:$0xff]  }
  0x98   : > { %4626 = vmatpush3.bf16.msra.mxu1 %v4882_v22  ;;  %4675 = vmatprep.subr.bf16.mxu0 %v4885_v33  ;;  %v1636_v22 = vld [vmem:[#allocation2 + $0x180] sm:$0xff] }
  0x99   : > { %4627 = vmatprep.subr.bf16.mxu1 %v4884_v25 }
  0x9a   : > { %4596 = vmatmul.mubr.bf16.gmra.mxu0 %v5361_v53  ;;  %v1620_v53 = vld [vmem:[#allocation2 + $0xc0] sm:$0xff] }
  0x9b   : > { %4548 = vmatmul.mubr.bf16.gmra.mxu1 %v5246_v35  ;;  %4599 = vmatprep.mubr.bf16.mxu0 %v5385_v28  ;;  %v4890_v35 = vld [vmem:[%s6172_s3 + $0x150] sm:$0xff]   ;;  %v1621_v28 = vld [vmem:[#allocation2 + $0xc8] sm:$0xff] }
  0x9c   : > { %4551 = vmatprep.mubr.bf16.mxu1 %v5273_v14  ;;  %4628 = vmatpush3.bf16.msra.mxu1 %v4884_v25  ;;  %v4891_v14 = vld [vmem:[%s6172_s3 + $0x190] sm:$0xff]  }
  0x9d   : > { %4676 = vmatpush3.bf16.msra.mxu0 %v4885_v33  ;;  %4629 = vmatprep.subr.bf16.mxu1 %v4886_v18  ;;  %v2714_v25 = vld [vmem:[#allocation2 + $0x30] sm:$0xff]  ;;  %v2715_v33 = vld [vmem:[#allocation2 + $0x38] sm:$0xff] }
  0x9e   : > { %4677 = vmatprep.subr.bf16.mxu0 %v4887_v0 }
  0xa0   : > { %4630 = vmatpush3.bf16.msra.mxu1 %v4886_v18  ;;  %v5569_v18 = vpack.c.bf16 %v1637_v23, %v1636_v22  ;;  %v2741_v22 = vld [vmem:[#allocation2 + $0x170] sm:$0xff] }
  0xa1   : > { %4678 = vmatpush3.bf16.msra.mxu0 %v4887_v0  ;;  %4631 = vmatprep.subr.bf16.mxu1 %v4888_v13  ;;  %v4899_v0 = vld [vmem:[%s6172_s3 + $0x230] sm:$0xff]  }
  0xa2   : > { %4679 = vmatprep.subr.bf16.mxu0 %v4889_v21  ;;  %4600 = vmatmul.mubr.bf16.gmra.mxu0 %v5393_v1  ;;  %v5525_v1 = vpack.c.bf16 %v1621_v28, %v1620_v53  ;;  %v4901_v53 = vld [vmem:[%s6172_s3 + $0x228] sm:$0xff]  }
  0xa3   : > { %4552 = vmatmul.mubr.bf16.gmra.mxu1 %v5285_v34  ;;  %4603 = vmatprep.mubr.bf16.mxu0 %v5417_v44  ;;  %v4892_v34 = vld [vmem:[%s6172_s3 + $0x148] sm:$0xff]   ;;  %v5527_v44 = vpack.c.bf16 %v1990_v10, %v1989_v29  ;;  %v4903_v29 = vld [vmem:[%s6172_s3 + $0x220] sm:$0xff]  }
  0xa4   : > { %4555 = vmatprep.mubr.bf16.mxu1 %v5299_v19  ;;  %4632 = vmatpush3.bf16.msra.mxu1 %v4888_v13  ;;  %v4893_v19 = vld [vmem:[%s6172_s3 + $0x188] sm:$0xff]   ;;  %v2721_v13 = vld [vmem:[#allocation2 + $0x80] sm:$0xff] }
  0xa5   : > { %4680 = vmatpush3.bf16.msra.mxu0 %v4889_v21  ;;  %4633 = vmatprep.subr.bf16.mxu1 %v4890_v35  ;;  %v2722_v21 = vld [vmem:[#allocation2 + $0x90] sm:$0xff]  ;;  %v2724_v10 = vld [vmem:[#allocation2 + $0xa8] sm:$0xff] }
  0xa6   : > { %4681 = vmatprep.subr.bf16.mxu0 %v4891_v14  ;;  %v2783_v49 = vpack.c.bf16 %v2725_v15, %v2724_v10  ;;  %v3085_v15 = vld [vmem:[#allocation2 + $0x49] sm:$0xff] }
  0xa8   : > { %4634 = vmatpush3.bf16.msra.mxu1 %v4890_v35  ;;  %v2723_v35 = vld [vmem:[#allocation2 + $0x98] sm:$0xff] }
  0xa9   : > { %4682 = vmatpush3.bf16.msra.mxu0 %v4891_v14  ;;  %4635 = vmatprep.subr.bf16.mxu1 %v4892_v34  ;;  %v4900_v14 = vld [vmem:[%s6172_s3 + $0x1e8] sm:$0xff]   ;;  %v2782_v28 = vpack.c.bf16 %v2723_v35, %v2722_v21  ;;  %v3453_v21 = vld [vmem:[#allocation2 + $0x3a] sm:$0xff] }
  0xaa   : > { %4683 = vmatprep.subr.bf16.mxu0 %v4893_v19  ;;  %4604 = vmatmul.mubr.bf16.gmra.mxu0 %v5527_v44 }
  0xab   : > { %4556 = vmatmul.mubr.bf16.gmra.mxu1 %v5525_v1  ;;  %4607 = vmatprep.mubr.bf16.mxu0 %v5531_v57 }
  0xac   : > { %4559 = vmatprep.mubr.bf16.mxu1 %v5529_v50  ;;  %4636 = vmatpush3.bf16.msra.mxu1 %v4892_v34  ;;  %v4908_v34 = vld [vmem:[%s6172_s3 + $0x1c8] sm:$0xff]  }
  0xad   : > { %4684 = vmatpush3.bf16.msra.mxu0 %v4893_v19  ;;  %4637 = vmatprep.subr.bf16.mxu1 %v4894_v58  ;;  %v4909_v19 = vld [vmem:[%s6172_s3 + $0x208] sm:$0xff]  }
  0xae   : > { %4685 = vmatprep.subr.bf16.mxu0 %v4895_v36 }
  0xb0   : > { %4638 = vmatpush3.bf16.msra.mxu1 %v4894_v58  ;;  %v2735_v58 = vld [vmem:[#allocation2 + $0x128] sm:$0xff] }
  0xb1   : > { %4686 = vmatpush3.bf16.msra.mxu0 %v4895_v36  ;;  %4719 = vmatprep.subr.bf16.mxu1 %v4896_v4 }
  0xb2   : > { %4767 = vmatprep.subr.bf16.mxu0 %v4897_v7  ;;  %4608 = vmatmul.mubr.bf16.gmra.mxu0 %v5551_v40 }
  0xb3   : > { %4560 = vmatmul.mubr.bf16.gmra.mxu1 %v5549_v12  ;;  %4611 = vmatprep.mubr.bf16.mxu0 %v5555_v16 }
  0xb4   : > { %4563 = vmatprep.mubr.bf16.mxu1 %v5553_v24 }
  0xba   : > { %4612 = vmatmul.mubr.bf16.gmra.mxu0 %v5176_v17  ;;  %v2716_v17 = vld [vmem:[#allocation2 + $0x48] sm:$0xff] }
  0xbb   : > { %4564 = vmatmul.mubr.bf16.gmra.mxu1 %v5248_v38  ;;  %4615 = vmatprep.mubr.bf16.mxu0 %v5255_v42  ;;  %v2778_v38 = vpack.c.bf16 %v2715_v33, %v2714_v25  ;;  %v2717_v42 = vld [vmem:[#allocation2 + $0x50] sm:$0xff] }
  0xbc   : > { %4567 = vmatprep.mubr.bf16.mxu1 %v5275_v26  ;;  %v2719_v26 = vld [vmem:[#allocation2 + $0x68] sm:$0xff] }
  0xc2   : > { %4616 = vmatmul.mubr.bf16.gmra.mxu0 %v5263_v46  ;;  %v2718_v46 = vld [vmem:[#allocation2 + $0x60] sm:$0xff] }
  0xc3   : > { %4568 = vmatmul.mubr.bf16.gmra.mxu1 %v5287_v39  ;;  %4619 = vmatprep.mubr.bf16.mxu0 %v5277_v61  ;;  %v2779_v39 = vpack.c.bf16 %v2717_v42, %v2716_v17  ;;  %v2780_v61 = vpack.c.bf16 %v2719_v26, %v2718_v46 }
  0xc4   : > { %4571 = vmatprep.mubr.bf16.mxu1 %v5301_v9  ;;  %v4898_v9 = vld [vmem:[%s6172_s3 + $0x1f0] sm:$0xff]  }
  0xca   : > { %4620 = vmatmul.mubr.bf16.gmra.mxu0 %v5453_v11 }
  0xcb   : > { %4572 = vmatmul.mubr.bf16.gmra.mxu1 %v5569_v18  ;;  %4687 = vmatprep.mubr.bf16.mxu0 %v2778_v38 }
  0xcc   : > { %4639 = vmatprep.mubr.bf16.mxu1 %v5323_v48  ;;  %v2720_v48 = vld [vmem:[#allocation2 + $0x78] sm:$0xff] }
  0xd2   : > { %4688 = vmatmul.mubr.bf16.vlgmr.msra.gmra.mxu0 %v2779_v39  ;;  %v2375_v39 = vld [vmem:[#allocation2 + $0x18a] sm:$0xff] }
  0xd3   : > { %4640 = vmatmul.mubr.bf16.vlgmr.msra.gmra.mxu1 %v5331_v59  ;;  %4768 = vmatpush3.bf16.msra.mxu0 %v4897_v7  ;;  %v2781_v59 = vpack.c.bf16 %v2721_v13, %v2720_v48  ;;  %v3084_v48 = vld [vmem:[#allocation2 + $0x39] sm:$0xff] }
  0xd4   : > { %4720 = vmatpush3.bf16.msra.mxu1 %v4896_v4  ;;  %4643 = vmatprep.mubr.bf16.mxu1 %v5355_v60  ;;  %v4902_v60 = vld [vmem:[%s6172_s3 + $0x1e0] sm:$0xff]   ;;  %v2790_v4 = vpack.c.bf16 %v2739_v41, %v2738_v37  ;;  %v3452_v13 = vld [vmem:[#allocation2 + $0x32] sm:$0xff] }
  0xd5   : > { %4691 = vmatprep.mubr.bf16.mxu0 %v2780_v61  ;;  %4721 = vmatprep.subr.bf16.mxu1 %v4898_v9  ;;  %v3083_v61 = vld [vmem:[#allocation2 + $0x31] sm:$0xff] }
  0xd6   : > { %4769 = vmatprep.subr.bf16.mxu0 %v4899_v0 }
  0xd7   : > { %4770 = vmatpush3.bf16.msra.mxu0 %v4899_v0 }
  0xd8   : > { %4722 = vmatpush3.bf16.msra.mxu1 %v4898_v9  ;;  %4771 = vmatprep.subr.bf16.mxu0 %v4901_v53 }
  0xd9   : > { %4723 = vmatprep.subr.bf16.mxu1 %v4900_v14 }
  0xda   : > { %4692 = vmatmul.mubr.bf16.gmra.mxu0 %v2781_v59  ;;  %v3147_v59 = vpack.c.bf16 %v3084_v48, %v3083_v61  ;;  %v3459_v61 = vld [vmem:[#allocation2 + $0x82] sm:$0xff]  ;;  %v3091_v48 = vld [vmem:[#allocation2 + $0x91] sm:$0xff] }
  0xdb   : > { %4644 = vmatmul.mubr.bf16.gmra.mxu1 %v5363_v20  ;;  %4695 = vmatprep.mubr.bf16.mxu0 %v2782_v28  ;;  %v4906_v20 = vld [vmem:[%s6172_s3 + $0x1d0] sm:$0xff]  }
  0xdc   : > { %4647 = vmatprep.mubr.bf16.mxu1 %v5387_v31  ;;  %4724 = vmatpush3.bf16.msra.mxu1 %v4900_v14  ;;  %v4907_v31 = vld [vmem:[%s6172_s3 + $0x210] sm:$0xff]  }
  0xdd   : > { %4772 = vmatpush3.bf16.msra.mxu0 %v4901_v53  ;;  %4725 = vmatprep.subr.bf16.mxu1 %v4902_v60  ;;  %v4912_v53 = vld [vmem:[#allocation2] sm:$0xff] }
  0xde   : > { %4773 = vmatprep.subr.bf16.mxu0 %v4903_v29 }
  0xe0   : > { %4726 = vmatpush3.bf16.msra.mxu1 %v4902_v60 }
  0xe1   : > { %4774 = vmatpush3.bf16.msra.mxu0 %v4903_v29  ;;  %4727 = vmatprep.subr.bf16.mxu1 %v4904_v56 }
  0xe2   : > { %4775 = vmatprep.subr.bf16.mxu0 %v4905_v30  ;;  %4696 = vmatmul.mubr.bf16.gmra.mxu0 %v2783_v49  ;;  %v3455_v49 = vld [vmem:[#allocation2 + $0x52] sm:$0xff] }
  0xe3   : > { %4648 = vmatmul.mubr.bf16.gmra.mxu1 %v5395_v2  ;;  %4699 = vmatprep.mubr.bf16.mxu0 %v5525_v1  ;;  %v4910_v2 = vld [vmem:[%s6172_s3 + $0x1c0] sm:$0xff]  }
  0xe4   : > { %4651 = vmatprep.mubr.bf16.mxu1 %v5419_v45  ;;  %4728 = vmatpush3.bf16.msra.mxu1 %v4904_v56  ;;  %v4911_v45 = vld [vmem:[%s6172_s3 + $0x200] sm:$0xff]   ;;  %v3086_v56 = vld [vmem:[#allocation2 + $0x51] sm:$0xff] }
  0xe5   : > { %4776 = vmatpush3.bf16.msra.mxu0 %v4905_v30  ;;  %4729 = vmatprep.subr.bf16.mxu1 %v4906_v20  ;;  %v2734_v1 = vld [vmem:[#allocation2 + $0x120] sm:$0xff]  ;;  %v3454_v30 = vld [vmem:[#allocation2 + $0x4a] sm:$0xff] }
  0xe6   : > { %4777 = vmatprep.subr.bf16.mxu0 %v4907_v31  ;;  %v2788_v36 = vpack.c.bf16 %v2735_v58, %v2734_v1 }
  0xe8   : > { %4730 = vmatpush3.bf16.msra.mxu1 %v4906_v20  ;;  %v3087_v20 = vld [vmem:[#allocation2 + $0x61] sm:$0xff] }
  0xe9   : > { %4778 = vmatpush3.bf16.msra.mxu0 %v4907_v31  ;;  %4731 = vmatprep.subr.bf16.mxu1 %v4908_v34 }
  0xea   : > { %4779 = vmatprep.subr.bf16.mxu0 %v4909_v19  ;;  %4700 = vmatmul.mubr.bf16.gmra.mxu0 %v5529_v50 }
  0xeb   : > { %4652 = vmatmul.mubr.bf16.gmra.mxu1 %v5421_v5  ;;  %4703 = vmatprep.mubr.bf16.mxu0 %v5549_v12  ;;  %v2736_v5 = vld [vmem:[#allocation2 + $0x138] sm:$0xff] }
  0xec   : > { %4655 = vmatprep.mubr.bf16.mxu1 %v5443_v54  ;;  %4732 = vmatpush3.bf16.msra.mxu1 %v4908_v34  ;;  %v2737_v54 = vld [vmem:[#allocation2 + $0x140] sm:$0xff] }
  0xed   : > { %4780 = vmatpush3.bf16.msra.mxu0 %v4909_v19  ;;  %4733 = vmatprep.subr.bf16.mxu1 %v4910_v2  ;;  %v2789_v43 = vpack.c.bf16 %v2737_v54, %v2736_v5  ;;  %v3088_v19 = vld [vmem:[#allocation2 + $0x69] sm:$0xff]  ;;  %v3517_v5 = vpack.c.bf16 %v3455_v49, %v3454_v30 }
  0xee   : > { %4781 = vmatprep.subr.bf16.mxu0 %v4911_v45  ;;  %v3149_v54 = vpack.c.bf16 %v3088_v19, %v3087_v20 }
  0xf0   : > { %4734 = vmatpush3.bf16.msra.mxu1 %v4910_v2  ;;  %v3456_v2 = vld [vmem:[#allocation2 + $0x62] sm:$0xff] }
  0xf1   : > { %4782 = vmatpush3.bf16.msra.mxu0 %v4911_v45  ;;  %v3457_v45 = vld [vmem:[#allocation2 + $0x6a] sm:$0xff] }
  0xf2   : > { %v5627_v62 = vpop.f32.mrf.mxu0  ;;  %4704 = vmatmul.mubr.bf16.gmra.mxu0 %v5553_v24  ;;  %v2740_v24 = vld [vmem:[#allocation2 + $0x168] sm:$0xff]  ;;  %v3518_v37 = vpack.c.bf16 %v3457_v45, %v3456_v2 }
  0xf3   : > { %v5629_v63 = vpop.f32.mrf.mxu1  ;;  %4656 = vmatmul.mubr.bf16.gmra.mxu1 %v5445_v55  ;;  %4707 = vmatprep.mubr.bf16.mxu0 %v2788_v36  ;;  %v2791_v17 = vpack.c.bf16 %v2741_v22, %v2740_v24  ;;  %v3148_v36 = vpack.c.bf16 %v3086_v56, %v3085_v15  ;;  %v3089_v22 = vld [vmem:[#allocation2 + $0x79] sm:$0xff] }
  0xf4   : > { %4659 = vmatprep.mubr.bf16.mxu1 %v5455_v51  ;;  %v5634_v50 = vpop.f32.mrf.mxu0 }
  0xf5   : > { %v5636_v27 = vpop.f32.mrf.mxu1 }
  0xf6   : > { %v5638_v8 = vpop.f32.mrf.mxu0 }
  0xf7   : > { %v5640_v47 = vpop.f32.mrf.mxu1 }
  0xf8   : > { %v5642_v55 = vpop.f32.mrf.mxu0 }
  0xf9   : > { %v5644_v7 = vpop.f32.mrf.mxu1 }
  0xfa   : > { %v5646_v51 = vpop.f32.mrf.mxu0  ;;  %4708 = vmatmul.mubr.bf16.gmra.mxu0 %v2789_v43 }
  0xfb   : > { %v5648_v12 = vpop.f32.mrf.mxu1  ;;  %4660 = vmatmul.mubr.bf16.gmra.mxu1 %v5457_v3  ;;  %4711 = vmatprep.mubr.bf16.mxu0 %v2790_v4 }
  0xfc   : > { %4663 = vmatprep.mubr.bf16.mxu1 %v5463_v52  ;;  %v5652_v23 = vpop.f32.mrf.mxu0  ;;  %v2374_v52 = vld [vmem:[#allocation2 + $0x182] sm:$0xff] }
  0xfd   : > { %v5654_v25 = vpop.f32.mrf.mxu1 }
  0xfe   : > { %v5656_v33 = vpop.f32.mrf.mxu0 }
  0xff   : > { %v5658_v38 = vpop.f32.mrf.mxu1 }
 0x100   : > { %v5660_v42 = vpop.f32.mrf.mxu0 }
 0x101   : > { %v5662_v46 = vpop.f32.mrf.mxu1 }
 0x102   : > { %v5664_v3 = vpop.f32.mrf.mxu0  ;;  %4712 = vmatmul.mubr.bf16.gmra.mxu0 %v2791_v17  ;;  %v3090_v17 = vld [vmem:[#allocation2 + $0x81] sm:$0xff] }
 0x103   : > { %v5666_v26 = vpop.f32.mrf.mxu1  ;;  %4664 = vmatmul.mubr.bf16.gmra.mxu1 %v5465_v6  ;;  %4715 = vmatprep.mubr.bf16.mxu0 %v5569_v18  ;;  %v5679_v6 = vpack.c.bf16 %v2375_v39, %v2374_v52  ;;  %v3516_v18 = vpack.c.bf16 %v3453_v21, %v3452_v13  ;;  %v3458_v39 = vld [vmem:[#allocation2 + $0x7a] sm:$0xff]  ;;  %v3150_v49 = vpack.c.bf16 %v3090_v17, %v3089_v22  ;;  %v3462_v17 = vld [vmem:[#allocation2 + $0xaa] sm:$0xff] }
 0x104   : > { %4667 = vmatprep.mubr.bf16.mxu1 %v5471_v32  ;;  %v5671_v9 = vpop.f32.mrf.mxu0  ;;  %v2793_v32 = vpack.c.bf16 %v4912_v53, %v4912_v53  ;;  %v3092_v53 = vld [vmem:[#allocation2 + $0x99] sm:$0xff]  ;;  %v3519_v20 = vpack.c.bf16 %v3459_v61, %v3458_v39 }
 0x105   : > { %v5673_v0 = vpop.f32.mrf.mxu1  ;;  %v3151_v2 = vpack.c.bf16 %v3092_v53, %v3091_v48  ;;  %v3463_v39 = vld [vmem:[#allocation2 + $0xb2] sm:$0xff] }
 0x106   : > { %v5675_v35 = vpop.f32.mrf.mxu0 }
 0x107   : > { %v5677_v14 = vpop.f32.mrf.mxu1 }
 0x108   : > { %v5681_v28 = vpop.f32.mrf.mxu0 }
 0x109   : > { %v5683_v60 = vpop.f32.mrf.mxu1 }
 0x10a   : > { %v5685_v29 = vpop.f32.mrf.mxu0  ;;  %4716 = vmatmul.mubr.bf16.gmra.mxu0 %v2793_v32  ;;  %v3460_v32 = vld [vmem:[#allocation2 + $0x92] sm:$0xff] }
 0x10b   : > { %v5687_v10 = vpop.f32.mrf.mxu1  ;;  %4668 = vmatmul.mubr.bf16.gmra.mxu1 %v5679_v6  ;;  %4783 = vmatprep.mubr.bf16.mxu0 %v3516_v18 }
 0x10c   : > { %4735 = vmatprep.mubr.bf16.mxu1 %v3147_v59  ;;  %v5690_v31 = vpop.f32.mrf.mxu0  ;;  %v3461_v59 = vld [vmem:[#allocation2 + $0x9a] sm:$0xff] }
 0x10d   : > { %v5692_v34 = vpop.f32.mrf.mxu1  ;;  %v3520_v45 = vpack.c.bf16 %v3461_v59, %v3460_v32 }
 0x10e   : > { %v5694_v1 = vpop.f32.mrf.mxu0 }
 0x10f   : > { %v5696_v58 = vpop.f32.mrf.mxu1 }
 0x110   : > { %v5698_v41 = vpop.f32.mrf.mxu0 }
 0x111   : > { %v5700_v43 = vpop.f32.mrf.mxu1 }
 0x112   : > { %v4497_v24 = vpop.f32.mrf.mxu0  ;;  %4784 = vmatmul.mubr.bf16.vlgmr.msra.gmra.mxu0 %v3517_v5 }
 0x113   : > { %v4449_v4 = vpop.f32.mrf.mxu1  ;;  %4736 = vmatmul.mubr.bf16.vlgmr.msra.gmra.mxu1 %v3148_v36  ;;  %4787 = vmatprep.mubr.bf16.mxu0 %v3518_v37 }
 0x114   : > { %v1175_v52 = vadd.f32 %v4449_v4, %v5627_v62  ;;  %4739 = vmatprep.mubr.bf16.mxu1 %v3149_v54  ;;  %v1415_v21 = vpop.f32.mrf.mxu0 }
 0x115   : > { %v1046_v13 = vpop.f32.mrf.mxu1 }
 0x116   : > { %v5703_v18 = vadd.f32 %v4497_v24, %v1175_v52  ;;  %v1173_v15 = vadd.f32 %v1046_v13, %v5634_v50  ;;  %v4498_v30 = vpop.f32.mrf.mxu0  ;;  %v3093_v50 = vld [vmem:[#allocation2 + $0xa9] sm:$0xff] }
 0x117   : > { %v4450_v56 = vpop.f32.mrf.mxu1  ;;  %v3464_v13 = vld [vmem:[#allocation2 + $0xc2] sm:$0xff] }
 0x118   : > { %v5706_v19 = vadd.f32 %v1415_v21, %v1173_v15  ;;  %v1176_v62 = vadd.f32 %v4450_v56, %v5638_v8  ;;  %v1418_v5 = vpop.f32.mrf.mxu0  ;;  %v3094_v8 = vld [vmem:[#allocation2 + $0xb1] sm:$0xff]  ;;  %v3521_v56 = vpack.c.bf16 %v3463_v39, %v3462_v17 }
 0x119   : > { %v1049_v36 = vpop.f32.mrf.mxu1  ;;  %v3465_v21 = vld [vmem:[#allocation2 + $0xca] sm:$0xff]  ;;  %v3152_v15 = vpack.c.bf16 %v3094_v8, %v3093_v50  ;;  %v3469_v8 = vld [vmem:[#allocation2 + $0xfa] sm:$0xff] }
 0x11a   : > { %v5709_v54 = vadd.f32 %v4498_v30, %v1176_v62  ;;  %v1174_v37 = vadd.f32 %v1049_v36, %v5642_v55  ;;  %v4501_v24 = vpop.f32.mrf.mxu0  ;;  %4788 = vmatmul.mubr.bf16.gmra.mxu0 %v3519_v20 }
 0x11b   : > { %v4453_v4 = vpop.f32.mrf.mxu1  ;;  %4740 = vmatmul.mubr.bf16.gmra.mxu1 %v3150_v49  ;;  %4791 = vmatprep.mubr.bf16.mxu0 %v3520_v45  ;;  %v3522_v49 = vpack.c.bf16 %v3465_v21, %v3464_v13 }
 0x11c   : > { %v5712_v52 = vadd.f32 %v1418_v5, %v1174_v37  ;;  %v1179_v22 = vadd.f32 %v4453_v4, %v5646_v51  ;;  %4743 = vmatprep.mubr.bf16.mxu1 %v3151_v2  ;;  %v1431_v48 = vpop.f32.mrf.mxu0  ;;  %v3466_v4 = vld [vmem:[#allocation2 + $0xda] sm:$0xff] }
 0x11d   : > { %v1062_v61 = vpop.f32.mrf.mxu1 }
 0x11e   : > { %v5715_v53 = vadd.f32 %v4501_v24, %v1179_v22  ;;  %v1177_v55 = vadd.f32 %v1062_v61, %v5652_v23  ;;  %v4502_v59 = vpop.f32.mrf.mxu0  ;;  %v3468_v22 = vld [vmem:[#allocation2 + $0xf2] sm:$0xff] }
 0x11f   : > { %v4454_v32 = vpop.f32.mrf.mxu1  ;;  %v3524_v21 = vpack.c.bf16 %v3469_v8, %v3468_v22 }
 0x120   : > { %v5718_v30 = vadd.f32 %v1431_v48, %v1177_v55  ;;  %v1180_v51 = vadd.f32 %v4454_v32, %v5656_v33  ;;  %v1434_v62 = vpop.f32.mrf.mxu0  ;;  %v3467_v33 = vld [vmem:[#allocation2 + $0xe2] sm:$0xff] }
 0x121   : > { %v1065_v20 = vpop.f32.mrf.mxu1  ;;  %v3523_v48 = vpack.c.bf16 %v3467_v33, %v3466_v4 }
 0x122   : > { %v5721_v2 = vadd.f32 %v4502_v59, %v1180_v51  ;;  %v1178_v45 = vadd.f32 %v1065_v20, %v5660_v42  ;;  %v4505_v5 = vpop.f32.mrf.mxu0  ;;  %4792 = vmatmul.mubr.bf16.gmra.mxu0 %v3521_v56  ;;  %v3103_v20 = vld [vmem:[#allocation2 + $0x121] sm:$0xff] }
 0x123   : > { %v4457_v36 = vpop.f32.mrf.mxu1  ;;  %4744 = vmatmul.mubr.bf16.gmra.mxu1 %v3152_v15  ;;  %4795 = vmatprep.mubr.bf16.mxu0 %v3522_v49  ;;  %v3471_v49 = vld [vmem:[#allocation2 + $0x112] sm:$0xff] }
 0x124   : > { %v5724_v23 = vadd.f32 %v1434_v62, %v1178_v45  ;;  %v1183_v37 = vadd.f32 %v4457_v36, %v5664_v3  ;;  %4747 = vmatprep.mubr.bf16.mxu1 %v5527_v44  ;;  %v1447_v50 = vpop.f32.mrf.mxu0  ;;  %v3104_v36 = vld [vmem:[#allocation2 + $0x129] sm:$0xff] }
 0x125   : > { %v1078_v24 = vpop.f32.mrf.mxu1 }
 0x126   : > { %v5728_v17 = vadd.f32 %v4505_v5, %v1183_v37  ;;  %v1181_v42 = vadd.f32 %v1078_v24, %v5671_v9  ;;  %v4506_v61 = vpop.f32.mrf.mxu0  ;;  %v3472_v5 = vld [vmem:[#allocation2 + $0x122] sm:$0xff] }
 0x127   : > { %v4458_v39 = vpop.f32.mrf.mxu1 }
 0x128   : > { %v5731_v13 = vadd.f32 %v1447_v50, %v1181_v42  ;;  %v1184_v3 = vadd.f32 %v4458_v39, %v5675_v35  ;;  %v1450_v55 = vpop.f32.mrf.mxu0  ;;  %v3470_v35 = vld [vmem:[#allocation2 + $0x10a] sm:$0xff] }
 0x129   : > { %v1081_v44 = vpop.f32.mrf.mxu1  ;;  %v3525_v24 = vpack.c.bf16 %v3471_v49, %v3470_v35  ;;  %v3108_v35 = vld [vmem:[#allocation2 + $0x159] sm:$0xff] }
 0x12a   : > { %v5734_v32 = vadd.f32 %v4506_v61, %v1184_v3  ;;  %v1182_v59 = vadd.f32 %v1081_v44, %v5681_v28  ;;  %v4509_v56 = vpop.f32.mrf.mxu0  ;;  %4796 = vmatmul.mubr.bf16.gmra.mxu0 %v3523_v48  ;;  %v3473_v28 = vld [vmem:[#allocation2 + $0x12a] sm:$0xff]  ;;  %v3477_v49 = vld [vmem:[#allocation2 + $0x15a] sm:$0xff] }
 0x12b   : > { %v4461_v15 = vpop.f32.mrf.mxu1  ;;  %4748 = vmatmul.mubr.bf16.gmra.mxu1 %v5531_v57  ;;  %4799 = vmatprep.mubr.bf16.mxu0 %v3524_v21  ;;  %v3526_v22 = vpack.c.bf16 %v3473_v28, %v3472_v5  ;;  %v3106_v21 = vld [vmem:[#allocation2 + $0x141] sm:$0xff] }
 0x12c   : > { %v5738_v9 = vadd.f32 %v1450_v55, %v1182_v59  ;;  %v1187_v51 = vadd.f32 %v4461_v15, %v5685_v29  ;;  %4751 = vmatprep.mubr.bf16.mxu1 %v5551_v40  ;;  %v1463_v45 = vpop.f32.mrf.mxu0  ;;  %v3157_v29 = vpack.c.bf16 %v3104_v36, %v3103_v20  ;;  %v3475_v59 = vld [vmem:[#allocation2 + $0x142] sm:$0xff]  ;;  %v3107_v15 = vld [vmem:[#allocation2 + $0x151] sm:$0xff] }
 0x12d   : > { %v1094_v62 = vpop.f32.mrf.mxu1 }
 0x12e   : > { %v5742_v37 = vadd.f32 %v4509_v56, %v1187_v51  ;;  %v1185_v57 = vadd.f32 %v1094_v62, %v5690_v31  ;;  %v4510_v33 = vpop.f32.mrf.mxu0  ;;  %v3105_v31 = vld [vmem:[#allocation2 + $0x139] sm:$0xff] }
 0x12f   : > { %v4462_v4 = vpop.f32.mrf.mxu1  ;;  %v3158_v36 = vpack.c.bf16 %v3106_v21, %v3105_v31 }
 0x130   : > { %v5745_v50 = vadd.f32 %v1463_v45, %v1185_v57  ;;  %v1188_v40 = vadd.f32 %v4462_v4, %v5694_v1  ;;  %v1466_v42 = vpop.f32.mrf.mxu0  ;;  %v3474_v1 = vld [vmem:[#allocation2 + $0x13a] sm:$0xff]  ;;  %v3159_v57 = vpack.c.bf16 %v3108_v35, %v3107_v15 }
 0x131   : > { %v1097_v8 = vpop.f32.mrf.mxu1  ;;  %v3527_v5 = vpack.c.bf16 %v3475_v59, %v3474_v1 }
 0x132   : > { %v5748_v39 = vadd.f32 %v4510_v33, %v1188_v40  ;;  %v1186_v61 = vadd.f32 %v1097_v8, %v5698_v41  ;;  %v4513_v3 = vpop.f32.mrf.mxu0  ;;  %4800 = vmatmul.mubr.bf16.gmra.mxu0 %v3525_v24  ;;  %v3476_v41 = vld [vmem:[#allocation2 + $0x152] sm:$0xff] }
 0x133   : > { %v4465_v48 = vpop.f32.mrf.mxu1  ;;  %4752 = vmatmul.mubr.bf16.gmra.mxu1 %v5555_v16  ;;  %4803 = vmatprep.mubr.bf16.mxu0 %v3526_v22  ;;  %v3528_v4 = vpack.c.bf16 %v3477_v49, %v3476_v41 }
 0x134   : > { %v5752_v44 = vadd.f32 %v1466_v42, %v1186_v61  ;;  %v1191_v55 = vadd.f32 %v4465_v48, %v5629_v63  ;;  %4755 = vmatprep.mubr.bf16.mxu1 %v3157_v29  ;;  %v1479_v51 = vpop.f32.mrf.mxu0  ;;  %v3478_v48 = vld [vmem:[#allocation2 + $0x16a] sm:$0xff] }
 0x135   : > { %v1110_v56 = vpop.f32.mrf.mxu1 }
 0x136   : > { %v5755_v20 = vadd.f32 %v4513_v3, %v1191_v55  ;;  %v1189_v16 = vadd.f32 %v1110_v56, %v5636_v27  ;;  %v4514_v45 = vpop.f32.mrf.mxu0  ;;  %v3109_v27 = vld [vmem:[#allocation2 + $0x169] sm:$0xff]  ;;  %v3479_v3 = vld [vmem:[#allocation2 + $0x172] sm:$0xff] }
 0x137   : > { %v4466_v62 = vpop.f32.mrf.mxu1  ;;  %v3529_v56 = vpack.c.bf16 %v3479_v3, %v3478_v48 }
 0x138   : > { %v5758_v28 = vadd.f32 %v1479_v51, %v1189_v16  ;;  %v1192_v63 = vadd.f32 %v4466_v62, %v5640_v47  ;;  %v1482_v24 = vpop.f32.mrf.mxu0  ;;  %v3110_v47 = vld [vmem:[#allocation2 + $0x171] sm:$0xff] }
 0x139   : > { %v1113_v33 = vpop.f32.mrf.mxu1  ;;  %v3160_v15 = vpack.c.bf16 %v3110_v47, %v3109_v27 }
 0x13a   : > { %v5761_v40 = vadd.f32 %v4514_v45, %v1192_v63  ;;  %v1190_v29 = vadd.f32 %v1113_v33, %v5644_v7  ;;  %v4517_v8 = vpop.f32.mrf.mxu0  ;;  %4804 = vmatmul.mubr.bf16.gmra.mxu0 %v3527_v5  ;;  %v3482_v63 = vld [vmem:[#allocation2 + $0x19a] sm:$0xff] }
 0x13b   : > { %v4469_v22 = vpop.f32.mrf.mxu1  ;;  %4756 = vmatmul.mubr.bf16.gmra.mxu1 %v3158_v36  ;;  %4807 = vmatprep.mubr.bf16.mxu0 %v3528_v4  ;;  %v3113_v36 = vld [vmem:[#allocation2 + $0x199] sm:$0xff] }
 0x13c   : > { %v5764_v42 = vadd.f32 %v1482_v24, %v1190_v29  ;;  %v1195_v61 = vadd.f32 %v4469_v22, %v5648_v12  ;;  %4759 = vmatprep.mubr.bf16.mxu1 %v3159_v57  ;;  %v1495_v21 = vpop.f32.mrf.mxu0  ;;  %v3483_v57 = vld [vmem:[#allocation2 + $0x1a2] sm:$0xff] }
 0x13d   : > { %v1126_v31 = vpop.f32.mrf.mxu1  ;;  %v3531_v27 = vpack.c.bf16 %v3483_v57, %v3482_v63 }
 0x13e   : > { %v5767_v55 = vadd.f32 %v4517_v8, %v1195_v61  ;;  %v1193_v7 = vadd.f32 %v1126_v31, %v5654_v25  ;;  %v4518_v59 = vpop.f32.mrf.mxu0 }
 0x13f   : > { %v4470_v1 = vpop.f32.mrf.mxu1 }
 0x140   : > { %v5770_v51 = vadd.f32 %v1495_v21, %v1193_v7  ;;  %v1196_v35 = vadd.f32 %v4470_v1, %v5658_v38  ;;  %v1498_v41 = vpop.f32.mrf.mxu0  ;;  %v3114_v38 = vld [vmem:[#allocation2 + $0x1a1] sm:$0xff] }
 0x141   : > { %v1129_v12 = vpop.f32.mrf.mxu1  ;;  %v3162_v8 = vpack.c.bf16 %v3114_v38, %v3113_v36 }
 0x142   : > { %v5773_v49 = vadd.f32 %v4518_v59, %v1196_v35  ;;  %v1194_v16 = vadd.f32 %v1129_v12, %v5662_v46  ;;  %v4521_v45 = vpop.f32.mrf.mxu0  ;;  %4808 = vmatmul.mubr.bf16.gmra.mxu0 %v3529_v56 }
 0x143   : > { %v4473_v62 = vpop.f32.mrf.mxu1  ;;  %4760 = vmatmul.mubr.bf16.gmra.mxu1 %v3160_v15  ;;  %4811 = vmatprep.mubr.bf16.mxu0 %v5679_v6 }
 0x144   : > { %v5776_v25 = vadd.f32 %v1498_v41, %v1194_v16  ;;  %v1199_v5 = vadd.f32 %v4473_v62, %v5666_v26  ;;  %4763 = vmatprep.mubr.bf16.mxu1 %v5453_v11  ;;  %v1511_v33 = vpop.f32.mrf.mxu0 }
 0x145   : > { %v1142_v4 = vpop.f32.mrf.mxu1 }
 0x146   : > { %v5781_v24 = vadd.f32 %v4521_v45, %v1199_v5  ;;  %v1197_v46 = vadd.f32 %v1142_v4, %v5673_v0  ;;  %v4522_v22 = vpop.f32.mrf.mxu0 }
 0x147   : > { %v4474_v29 = vpop.f32.mrf.mxu1 }
 0x148   : > { %v5784_v61 = vadd.f32 %v1511_v33, %v1197_v46  ;;  %v1200_v26 = vadd.f32 %v4474_v29, %v5677_v14  ;;  %v1514_v47 = vpop.f32.mrf.mxu0 }
 0x149   : > { %v1145_v11 = vpop.f32.mrf.mxu1 }
 0x14a   : > { %v5787_v6 = vadd.f32 %v4522_v22, %v1200_v26  ;;  %v1198_v48 = vadd.f32 %v1145_v11, %v5683_v60  ;;  %v4525_v31 = vpop.f32.mrf.mxu0  ;;  %4812 = vmatmul.mubr.bf16.gmra.mxu0 %v3531_v27 }
 0x14b   : > { %v4477_v3 = vpop.f32.mrf.mxu1  ;;  %4764 = vmatmul.mubr.bf16.gmra.mxu1 %v3162_v8 }
 0x14c   : > { %v5790_v21 = vadd.f32 %v1514_v47, %v1198_v48  ;;  %v1203_v0 = vadd.f32 %v4477_v3, %v5687_v10  ;;  %v1527_v1 = vpop.f32.mrf.mxu0 }
 0x14d   : > { %v1158_v7 = vpop.f32.mrf.mxu1 }
 0x14e   : > { %v5793_v59 = vadd.f32 %v4525_v31, %v1203_v0  ;;  %v1201_v14 = vadd.f32 %v1158_v7, %v5692_v34  ;;  %v4526_v56 = vpop.f32.mrf.mxu0 }
 0x14f   : > { %v4478_v15 = vpop.f32.mrf.mxu1 }
 0x150   : > { %v5796_v35 = vadd.f32 %v1527_v1, %v1201_v14  ;;  %v1204_v60 = vadd.f32 %v4478_v15, %v5696_v58  ;;  %v1530_v41 = vpop.f32.mrf.mxu0 }
 0x151   : > { %v1161_v12 = vpop.f32.mrf.mxu1 }
 0x152   : > { %v5799_v16 = vadd.f32 %v4526_v56, %v1204_v60  ;;  %v1202_v62 = vadd.f32 %v1161_v12, %v5700_v43  ;;  %v4593_v10 = vpop.f32.mrf.mxu0 }
 0x153   : > { %v4545_v45 = vpop.f32.mrf.mxu1 }
 0x154   : > { %v5802_v36 = vadd.f32 %v1530_v41, %v1202_v62  ;;  %v1913_v5 = vadd.f32 %v4545_v45, %v5703_v18  ;;  %v2153_v34 = vpop.f32.mrf.mxu0 }
 0x155   : > { %v1784_v38 = vpop.f32.mrf.mxu1 }
 0x156   : > { %v5805_v63 = vadd.f32 %v4593_v10, %v1913_v5  ;;  %v1911_v57 = vadd.f32 %v1784_v38, %v5706_v19  ;;  %v4594_v58 = vpop.f32.mrf.mxu0 }
 0x157   : > { %v4546_v4 = vpop.f32.mrf.mxu1 }
 0x158   : > { %v5808_v33 = vadd.f32 %v2153_v34, %v1911_v57  ;;  %v1914_v46 = vadd.f32 %v4546_v4, %v5709_v54  ;;  %v2156_v43 = vpop.f32.mrf.mxu0 }
 0x159   : > { %v1787_v29 = vpop.f32.mrf.mxu1 }
 0x15a   : > { %v5811_v22 = vadd.f32 %v4594_v58, %v1914_v46  ;;  %v1912_v8 = vadd.f32 %v1787_v29, %v5712_v52  ;;  %v4597_v18 = vpop.f32.mrf.mxu0 }
 0x15b   : > { %v4549_v27 = vpop.f32.mrf.mxu1 }
 0x15c   : > { %v5814_v26 = vadd.f32 %v2156_v43, %v1912_v8  ;;  %v1917_v11 = vadd.f32 %v4549_v27, %v5715_v53  ;;  %v2169_v19 = vpop.f32.mrf.mxu0 }
 0x15d   : > { %v1800_v47 = vpop.f32.mrf.mxu1 }
 0x15e   : > { %v5817_v48 = vadd.f32 %v4597_v18, %v1917_v11  ;;  %v1915_v3 = vadd.f32 %v1800_v47, %v5718_v30  ;;  %v4598_v54 = vpop.f32.mrf.mxu0 }
 0x15f   : > { %v4550_v31 = vpop.f32.mrf.mxu1 }
 0x160   : > { %v5820_v0 = vadd.f32 %v2169_v19, %v1915_v3  ;;  %v1918_v7 = vadd.f32 %v4550_v31, %v5721_v2  ;;  %v2172_v52 = vpop.f32.mrf.mxu0 }
 0x161   : > { %v1803_v1 = vpop.f32.mrf.mxu1 }
 0x162   : > { %v5823_v14 = vadd.f32 %v4598_v54, %v1918_v7  ;;  %v1916_v15 = vadd.f32 %v1803_v1, %v5724_v23  ;;  %v4601_v53 = vpop.f32.mrf.mxu0 }
 0x163   : > { %v4553_v56 = vpop.f32.mrf.mxu1 }
 0x164   : > { %v5826_v60 = vadd.f32 %v2172_v52, %v1916_v15  ;;  %v1921_v12 = vadd.f32 %v4553_v56, %v5728_v17  ;;  %v2185_v30 = vpop.f32.mrf.mxu0 }
 0x165   : > { %v1816_v41 = vpop.f32.mrf.mxu1 }
 0x166   : > { %v5829_v62 = vadd.f32 %v4601_v53, %v1921_v12  ;;  %v1919_v45 = vadd.f32 %v1816_v41, %v5731_v13  ;;  %v4602_v2 = vpop.f32.mrf.mxu0 }
 0x167   : > { %v4554_v10 = vpop.f32.mrf.mxu1 }
 0x168   : > { %v5832_v5 = vadd.f32 %v2185_v30, %v1919_v45  ;;  %v1922_v38 = vadd.f32 %v4554_v10, %v5734_v32  ;;  %v2188_v23 = vpop.f32.mrf.mxu0 }
 0x169   : > { %v1819_v34 = vpop.f32.mrf.mxu1 }
 0x16a   : > { %v5835_v57 = vadd.f32 %v4602_v2, %v1922_v38  ;;  %v1920_v4 = vadd.f32 %v1819_v34, %v5738_v9  ;;  %v4605_v17 = vpop.f32.mrf.mxu0 }
 0x16b   : > { %v4557_v58 = vpop.f32.mrf.mxu1 }
 0x16c   : > { %v5838_v46 = vadd.f32 %v2188_v23, %v1920_v4  ;;  %v1925_v29 = vadd.f32 %v4557_v58, %v5742_v37  ;;  %v2201_v13 = vpop.f32.mrf.mxu0 }
 0x16d   : > { %v1832_v43 = vpop.f32.mrf.mxu1 }
 0x16e   : > { %v5841_v8 = vadd.f32 %v4605_v17, %v1925_v29  ;;  %v1923_v27 = vadd.f32 %v1832_v43, %v5745_v50  ;;  %v4606_v32 = vpop.f32.mrf.mxu0 }
 0x16f   : > { %v4558_v18 = vpop.f32.mrf.mxu1 }
 0x170   : > { %v5844_v11 = vadd.f32 %v2201_v13, %v1923_v27  ;;  %v1926_v47 = vadd.f32 %v4558_v18, %v5748_v39  ;;  %v2204_v9 = vpop.f32.mrf.mxu0 }
 0x171   : > { %v1835_v19 = vpop.f32.mrf.mxu1 }
 0x172   : > { %v5847_v3 = vadd.f32 %v4606_v32, %v1926_v47  ;;  %v1924_v31 = vadd.f32 %v1835_v19, %v5752_v44  ;;  %v4609_v37 = vpop.f32.mrf.mxu0 }
 0x173   : > { %v4561_v54 = vpop.f32.mrf.mxu1 }
 0x174   : > { %v5850_v7 = vadd.f32 %v2204_v9, %v1924_v31  ;;  %v1929_v1 = vadd.f32 %v4561_v54, %v5755_v20  ;;  %v2217_v50 = vpop.f32.mrf.mxu0 }
 0x175   : > { %v1848_v52 = vpop.f32.mrf.mxu1 }
 0x176   : > { %v5853_v15 = vadd.f32 %v4609_v37, %v1929_v1  ;;  %v1927_v56 = vadd.f32 %v1848_v52, %v5758_v28  ;;  %v4610_v39 = vpop.f32.mrf.mxu0 }
 0x177   : > { %v4562_v53 = vpop.f32.mrf.mxu1 }
 0x178   : > { %v5856_v12 = vadd.f32 %v2217_v50, %v1927_v56  ;;  %v1930_v41 = vadd.f32 %v4562_v53, %v5761_v40  ;;  %v2220_v44 = vpop.f32.mrf.mxu0 }
 0x179   : > { %v1851_v30 = vpop.f32.mrf.mxu1 }
 0x17a   : > { %v5859_v45 = vadd.f32 %v4610_v39, %v1930_v41  ;;  %v1928_v10 = vadd.f32 %v1851_v30, %v5764_v42  ;;  %v4613_v20 = vpop.f32.mrf.mxu0 }
 0x17b   : > { %v4565_v2 = vpop.f32.mrf.mxu1 }
 0x17c   : > { %6177 = vst [vmem:[#allocation4_spill] sm:$0xff] %v5859_v45  ;;  %v5862_v38 = vadd.f32 %v2220_v44, %v1928_v10  ;;  %v1933_v34 = vadd.f32 %v4565_v2, %v5767_v55  ;;  %v2233_v28 = vpop.f32.mrf.mxu0 }
 0x17d   : > { %v1864_v23 = vpop.f32.mrf.mxu1 }
 0x17e   : > { %6178 = vst [vmem:[#allocation5_spill] sm:$0xff] %v5862_v38  ;;  %v5865_v4 = vadd.f32 %v4613_v20, %v1933_v34  ;;  %v1931_v58 = vadd.f32 %v1864_v23, %v5770_v51  ;;  %v4614_v40 = vpop.f32.mrf.mxu0 }
 0x17f   : > { %v4566_v17 = vpop.f32.mrf.mxu1 }
 0x180   : > { %6179 = vst [vmem:[#allocation6_spill] sm:$0xff] %v5865_v4  ;;  %v5868_v29 = vadd.f32 %v2233_v28, %v1931_v58  ;;  %v1934_v43 = vadd.f32 %v4566_v17, %v5773_v49  ;;  %v2236_v42 = vpop.f32.mrf.mxu0 }
 0x181   : > { %v1867_v13 = vpop.f32.mrf.mxu1 }
 0x182   : > { %6180 = vst [vmem:[#allocation7_spill] sm:$0xff] %v5868_v29  ;;  %v5871_v27 = vadd.f32 %v4614_v40, %v1934_v43  ;;  %v1932_v18 = vadd.f32 %v1867_v13, %v5776_v25  ;;  %v4617_v55 = vpop.f32.mrf.mxu0 }
 0x183   : > { %v4569_v32 = vpop.f32.mrf.mxu1 }
 0x184   : > { %6181 = vst [vmem:[#allocation8_spill] sm:$0xff] %v5871_v27  ;;  %v5874_v47 = vadd.f32 %v2236_v42, %v1932_v18  ;;  %v1937_v19 = vadd.f32 %v4569_v32, %v5781_v24  ;;  %v2249_v51 = vpop.f32.mrf.mxu0 }
 0x185   : > { %v1880_v9 = vpop.f32.mrf.mxu1 }
 0x186   : > { %6182 = vst [vmem:[#allocation9_spill] sm:$0xff] %v5874_v47  ;;  %v5877_v31 = vadd.f32 %v4617_v55, %v1937_v19  ;;  %v1935_v54 = vadd.f32 %v1880_v9, %v5784_v61  ;;  %v4618_v49 = vpop.f32.mrf.mxu0 }
 0x187   : > { %v4570_v37 = vpop.f32.mrf.mxu1 }
 0x188   : > { %6183 = vst [vmem:[#allocation10_spill] sm:$0xff] %v5877_v31  ;;  %v5880_v1 = vadd.f32 %v2249_v51, %v1935_v54  ;;  %v1938_v52 = vadd.f32 %v4570_v37, %v5787_v6  ;;  %v2252_v25 = vpop.f32.mrf.mxu0 }
 0x189   : > { %v1883_v50 = vpop.f32.mrf.mxu1 }
 0x18a   : > { %6184 = vst [vmem:[#allocation11_spill] sm:$0xff] %v5880_v1  ;;  %v5883_v56 = vadd.f32 %v4618_v49, %v1938_v52  ;;  %v1936_v53 = vadd.f32 %v1883_v50, %v5790_v21  ;;  %v4621_v24 = vpop.f32.mrf.mxu0 }
 0x18b   : > { %v4573_v39 = vpop.f32.mrf.mxu1 }
 0x18c   : > { %6185 = vst [vmem:[#allocation12_spill] sm:$0xff] %v5883_v56  ;;  %v5886_v41 = vadd.f32 %v2252_v25, %v1936_v53  ;;  %v1941_v30 = vadd.f32 %v4573_v39, %v5793_v59  ;;  %v2265_v61 = vpop.f32.mrf.mxu0 }
 0x18d   : > { %v1896_v44 = vpop.f32.mrf.mxu1 }
 0x18e   : > { %6186 = vst [vmem:[#allocation13_spill] sm:$0xff] %v5886_v41  ;;  %v5889_v10 = vadd.f32 %v4621_v24, %v1941_v30  ;;  %v1939_v2 = vadd.f32 %v1896_v44, %v5796_v35  ;;  %v4622_v6 = vpop.f32.mrf.mxu0 }
 0x18f   : > { %v4574_v20 = vpop.f32.mrf.mxu1 }
 0x190   : > { %6187 = vst [vmem:[#allocation14_spill] sm:$0xff] %v5889_v10  ;;  %v5892_v34 = vadd.f32 %v2265_v61, %v1939_v2  ;;  %v1942_v23 = vadd.f32 %v4574_v20, %v5799_v16  ;;  %v2268_v21 = vpop.f32.mrf.mxu0 }
 0x191   : > { %v1899_v28 = vpop.f32.mrf.mxu1 }
 0x192   : > { %6188 = vst [vmem:[#allocation15_spill] sm:$0xff] %v5892_v34  ;;  %v5895_v58 = vadd.f32 %v4622_v6, %v1942_v23  ;;  %v1940_v17 = vadd.f32 %v1899_v28, %v5802_v36  ;;  %v5900_v59 = vpop.f32.mrf.mxu0 }
 0x193   : > { %v5898_v40 = vpop.f32.mrf.mxu1 }
 0x194   : > { %6189 = vst [vmem:[#allocation16_spill] sm:$0xff] %v5895_v58  ;;  %v5902_v43 = vadd.f32 %v2268_v21, %v1940_v17  ;;  %v5906_v35 = vpop.f32.mrf.mxu0 }
 0x195   : > { %v5904_v13 = vpop.f32.mrf.mxu1 }
 0x196   : > { %6190 = vst [vmem:[#allocation17_spill] sm:$0xff] %v5902_v43  ;;  %v5910_v18 = vpop.f32.mrf.mxu0 }
 0x197   : > { %v5908_v42 = vpop.f32.mrf.mxu1 }
 0x198   : > { %v5914_v32 = vpop.f32.mrf.mxu0 }
 0x199   : > { %v5912_v16 = vpop.f32.mrf.mxu1 }
 0x19a   : > { %v5918_v36 = vpop.f32.mrf.mxu0 }
 0x19b   : > { %v5916_v55 = vpop.f32.mrf.mxu1 }
 0x19c   : > { %v5922_v9 = vpop.f32.mrf.mxu0 }
 0x19d   : > { %v5920_v19 = vpop.f32.mrf.mxu1 }
 0x19e   : > { %v5926_v54 = vpop.f32.mrf.mxu0 }
 0x19f   : > { %v5924_v51 = vpop.f32.mrf.mxu1 }
 0x1a0   : > { %v5930_v49 = vpop.f32.mrf.mxu0 }
 0x1a1   : > { %v5928_v37 = vpop.f32.mrf.mxu1 }
 0x1a2   : > { %v5934_v50 = vpop.f32.mrf.mxu0 }
 0x1a3   : > { %v5932_v52 = vpop.f32.mrf.mxu1 }
 0x1a4   : > { %v5938_v53 = vpop.f32.mrf.mxu0 }
 0x1a5   : > { %v5936_v25 = vpop.f32.mrf.mxu1 }
 0x1a6   : > { %v5942_v24 = vpop.f32.mrf.mxu0 }
 0x1a7   : > { %v5940_v39 = vpop.f32.mrf.mxu1 }
 0x1a8   : > { %v5946_v44 = vpop.f32.mrf.mxu0 }
 0x1a9   : > { %v5944_v30 = vpop.f32.mrf.mxu1 }
 0x1aa   : > { %v5950_v2 = vpop.f32.mrf.mxu0 }
 0x1ab   : > { %v5948_v61 = vpop.f32.mrf.mxu1 }
 0x1ac   : > { %v5954_v6 = vpop.f32.mrf.mxu0 }
 0x1ad   : > { %v5952_v20 = vpop.f32.mrf.mxu1 }
 0x1ae   : > { %v5958_v28 = vpop.f32.mrf.mxu0 }
 0x1af   : > { %v5956_v23 = vpop.f32.mrf.mxu1 }
 0x1b0   : > { %v5962_v17 = vpop.f32.mrf.mxu0 }
 0x1b1   : > { %v5960_v21 = vpop.f32.mrf.mxu1 }
 0x1b2   : > { %v5966_v58 = vpop.f32.mrf.mxu0 }
 0x1b3   : > { %v5964_v43 = vpop.f32.mrf.mxu1 }
 0x1b4   : > { %v5970_v10 = vpop.f32.mrf.mxu0 }
 0x1b5   : > { %v5968_v34 = vpop.f32.mrf.mxu1  ;;  %6191 = vst [vmem:[#allocation18_spill] sm:$0xff] %v5970_v10 }
 0x1b6   : > { %v5974_v56 = vpop.f32.mrf.mxu0 }
 0x1b7   : > { %v5972_v41 = vpop.f32.mrf.mxu1  ;;  %6193 = vst [vmem:[#allocation20_spill] sm:$0xff] %v5974_v56 }
 0x1b8   : > { %6192 = vst [vmem:[#allocation19_spill] sm:$0xff] %v5972_v41  ;;  %v5978_v31 = vpop.f32.mrf.mxu0 }
 0x1b9   : > { %v5976_v1 = vpop.f32.mrf.mxu1  ;;  %6195 = vst [vmem:[#allocation22_spill] sm:$0xff] %v5978_v31 }
 0x1ba   : > { %6194 = vst [vmem:[#allocation21_spill] sm:$0xff] %v5976_v1  ;;  %v5982_v27 = vpop.f32.mrf.mxu0 }
 0x1bb   : > { %v5980_v47 = vpop.f32.mrf.mxu1  ;;  %6197 = vst [vmem:[#allocation24_spill] sm:$0xff] %v5982_v27 }
 0x1bc   : > { %6196 = vst [vmem:[#allocation23_spill] sm:$0xff] %v5980_v47  ;;  %v5986_v4 = vpop.f32.mrf.mxu0 }
 0x1bd   : > { %v5984_v29 = vpop.f32.mrf.mxu1  ;;  %6199 = vst [vmem:[#allocation26_spill] sm:$0xff] %v5986_v4 }
 0x1be   : > { %6198 = vst [vmem:[#allocation25_spill] sm:$0xff] %v5984_v29  ;;  %v5990_v10 = vpop.f32.mrf.mxu0 }
 0x1bf   : > { %v5988_v38 = vpop.f32.mrf.mxu1  ;;  %6200 = vst [vmem:[#allocation27_spill] sm:$0xff] %v5990_v10 }
 0x1c0   : > { %v5994_v56 = vpop.f32.mrf.mxu0 }
 0x1c1   : > { %v5992_v41 = vpop.f32.mrf.mxu1  ;;  %6202 = vst [vmem:[#allocation29_spill] sm:$0xff] %v5994_v56 }
 0x1c2   : > { %6201 = vst [vmem:[#allocation28_spill] sm:$0xff] %v5992_v41  ;;  %v5998_v45 = vpop.f32.mrf.mxu0 }
 0x1c3   : > { %v5996_v1 = vpop.f32.mrf.mxu1  ;;  %6204 = vst [vmem:[#allocation31_spill] sm:$0xff] %v5998_v45 }
 0x1c4   : > { %6203 = vst [vmem:[#allocation30_spill] sm:$0xff] %v5996_v1  ;;  %v6002_v47 = vpop.f32.mrf.mxu0 }
 0x1c5   : > { %v6000_v31 = vpop.f32.mrf.mxu1  ;;  %6205 = vst [vmem:[#allocation32_spill] sm:$0xff] %v6002_v47  ;;  %v2651_v47 = vadd.f32 %v5898_v40, %v5805_v63 }
 0x1c6   : > { %v6006_v29 = vpop.f32.mrf.mxu0 }
 0x1c7   : > { %v6004_v27 = vpop.f32.mrf.mxu1  ;;  %6207 = vst [vmem:[#allocation34_spill] sm:$0xff] %v6006_v29 }
 0x1c8   : > { %6206 = vst [vmem:[#allocation33_spill] sm:$0xff] %v6004_v27  ;;  %v6011_v10 = vpop.f32.mrf.mxu0 }
 0x1c9   : > { %v6009_v4 = vpop.f32.mrf.mxu1  ;;  %6209 = vst [vmem:[#allocation36_spill] sm:$0xff] %v6011_v10  ;;  %v2649_v10 = vadd.f32 %v5904_v13, %v5808_v33 }
 0x1ca   : > { %6208 = vst [vmem:[#allocation35_spill] sm:$0xff] %v6009_v4  ;;  %v6015_v56 = vpop.f32.mrf.mxu0 }
 0x1cb   : > { %v6013_v41 = vpop.f32.mrf.mxu1  ;;  %6211 = vst [vmem:[#allocation38_spill] sm:$0xff] %v6015_v56  ;;  %v3021_v56 = vadd.f32 %v5900_v59, %v2651_v47  ;;  %v3019_v40 = vadd.f32 %v5906_v35, %v2649_v10  ;;  %v2655_v59 = vadd.f32 %v5916_v55, %v5817_v48 }
 0x1cc   : > { %6210 = vst [vmem:[#allocation37_spill] sm:$0xff] %v6013_v41  ;;  %v6019_v45 = vpop.f32.mrf.mxu0 }
 0x1cd   : > { %v6017_v1 = vpop.f32.mrf.mxu1  ;;  %6213 = vst [vmem:[#allocation40_spill] sm:$0xff] %v6019_v45  ;;  %v2652_v45 = vadd.f32 %v5908_v42, %v5811_v22 }
 0x1ce   : > { %6212 = vst [vmem:[#allocation39_spill] sm:$0xff] %v6017_v1  ;;  %v6025_v29 = vpop.f32.mrf.mxu0 }
 0x1cf   : > { %v6023_v27 = vpop.f32.mrf.mxu1  ;;  %6215 = vst [vmem:[#allocation42_spill] sm:$0xff] %v6025_v29  ;;  %v2650_v29 = vadd.f32 %v5912_v16, %v5814_v26  ;;  %v3022_v22 = vadd.f32 %v5910_v18, %v2652_v45  ;;  %v3025_v45 = vadd.f32 %v5918_v36, %v2655_v59  ;;  %v2656_v18 = vadd.f32 %v5924_v51, %v5823_v14 }
 0x1d0   : > { %6214 = vst [vmem:[#allocation41_spill] sm:$0xff] %v6023_v27  ;;  %v6031_v41 = vpop.f32.mrf.mxu0  ;;  %v2659_v36 = vadd.f32 %v5932_v52, %v5829_v62 }
 0x1d1   : > { %v6029_v4 = vpop.f32.mrf.mxu1  ;;  %6217 = vst [vmem:[#allocation44_spill] sm:$0xff] %v6031_v41  ;;  %v3020_v26 = vadd.f32 %v5914_v32, %v2650_v29  ;;  %v2654_v29 = vadd.f32 %v5928_v37, %v5826_v60  ;;  %v3026_v60 = vadd.f32 %v5926_v54, %v2656_v18 }
 0x1d2   : > { %6216 = vst [vmem:[#allocation43_spill] sm:$0xff] %v6029_v4  ;;  %v4785_v63 = vpop.f32.mrf.mxu0  ;;  %v3029_v52 = vadd.f32 %v5934_v50, %v2659_v36 }
 0x1d3   : > { %v4737_v1 = vpop.f32.mrf.mxu1  ;;  %v3024_v37 = vadd.f32 %v5930_v49, %v2654_v29 }
 0x1d4   : > { %v3390_v27 = vadd.f32 %v4737_v1, %v3021_v56  ;;  %v3630_v47 = vpop.f32.mrf.mxu0  ;;  %v2653_v1 = vadd.f32 %v5920_v19, %v5820_v0 }
 0x1d5   : > { %v3261_v33 = vpop.f32.mrf.mxu1 }
 0x1d6   : > { %v3759_v13 = vadd.f32 %v4785_v63, %v3390_v27  ;;  %v3388_v10 = vadd.f32 %v3261_v33, %v3019_v40  ;;  %v4786_v42 = vpop.f32.mrf.mxu0  ;;  %v3023_v0 = vadd.f32 %v5922_v9, %v2653_v1 }
 0x1d7   : > { %v4738_v35 = vpop.f32.mrf.mxu1 }
 0x1d8   : > { %3855 = vst [vmem:[%s6042_s25 + $0x10] sm:$0xff] %v3759_v13  ;;  %v3757_v56 = vadd.f32 %v3630_v47, %v3388_v10  ;;  %v3391_v16 = vadd.f32 %v4738_v35, %v3022_v22  ;;  %v3633_v4 = vpop.f32.mrf.mxu0  ;;  %v3925_v59 = vmul.f32 %v3759_v13, %v3759_v13 }
 0x1d9   : > { %v3264_v41 = vpop.f32.mrf.mxu1 }
 0x1da   : > { %3853 = vst [vmem:[%s6042_s25] sm:$0xff] %v3757_v56  ;;  %v3760_v48 = vadd.f32 %v4786_v42, %v3391_v16  ;;  %v3389_v27 = vadd.f32 %v3264_v41, %v3020_v26  ;;  %v4789_v55 = vpop.f32.mrf.mxu0  ;;  %v3923_v40 = vmul.f32 %v3757_v56, %v3757_v56  ;;  %v2657_v42 = vadd.f32 %v5936_v25, %v5832_v5 }
 0x1db   : > { %v4741_v32 = vpop.f32.mrf.mxu1  ;;  %v2660_v26 = vadd.f32 %v5940_v39, %v5835_v57 }
 0x1dc   : > { %3856 = vst [vmem:[%s6042_s25 + $0x18] sm:$0xff] %v3760_v48  ;;  %v3758_v19 = vadd.f32 %v3633_v4, %v3389_v27  ;;  %v3394_v63 = vadd.f32 %v4741_v32, %v3025_v45  ;;  %v3646_v41 = vpop.f32.mrf.mxu0  ;;  %v3926_v49 = vmul.f32 %v3760_v48, %v3760_v48  ;;  %v2658_v27 = vadd.f32 %v5944_v30, %v5838_v46 }
 0x1dd   : > { %v3277_v33 = vpop.f32.mrf.mxu1 }
 0x1de   : > { %3854 = vst [vmem:[%s6042_s25 + $0x8] sm:$0xff] %v3758_v19  ;;  %v3885_v47 = vadd.f32 %v3758_v19, %v3757_v56  ;;  %v3924_v14 = vmul.f32 %v3758_v19, %v3758_v19  ;;  %v3763_v51 = vadd.f32 %v4789_v55, %v3394_v63  ;;  %v3392_v22 = vadd.f32 %v3277_v33, %v3023_v0  ;;  %v4790_v4 = vpop.f32.mrf.mxu0 }
 0x1df   : > { %v4742_v9 = vpop.f32.mrf.mxu1  ;;  %v3027_v55 = vadd.f32 %v5938_v53, %v2657_v42  ;;  %v3030_v0 = vadd.f32 %v5942_v24, %v2660_v26  ;;  %v2663_v33 = vadd.f32 %v5948_v61, %v5841_v8 }
 0x1e0   : > { %v3886_v10 = vadd.f32 %v3885_v47, %v3759_v13  ;;  %v3955_v35 = vadd.f32 %v3924_v14, %v3923_v40  ;;  %3859 = vst [vmem:[%s6042_s25 + $0x30] sm:$0xff] %v3763_v51  ;;  %v3761_v62 = vadd.f32 %v3646_v41, %v3392_v22  ;;  %v3395_v1 = vadd.f32 %v4742_v9, %v3026_v60  ;;  %v3649_v56 = vpop.f32.mrf.mxu0 }
 0x1e1   : > { %v3280_v54 = vpop.f32.mrf.mxu1  ;;  %v3028_v40 = vadd.f32 %v5946_v44, %v2658_v27  ;;  %v2661_v41 = vadd.f32 %v5952_v20, %v5844_v11  ;;  %v3929_v14 = vmul.f32 %v3763_v51, %v3763_v51  ;;  %v2664_v9 = vadd.f32 %v5956_v23, %v5847_v3 }
 0x1e2   : > { %v3956_v16 = vadd.f32 %v3955_v35, %v3925_v59  ;;  %3857 = vst [vmem:[%s6042_s25 + $0x20] sm:$0xff] %v3761_v62  ;;  %v3887_v45 = vadd.f32 %v3886_v10, %v3760_v48  ;;  %v3393_v13 = vadd.f32 %v3280_v54, %v3024_v37  ;;  %v3927_v50 = vmul.f32 %v3761_v62, %v3761_v62  ;;  %v4793_v5 = vpop.f32.mrf.mxu0 }
 0x1e3   : > { %v3764_v18 = vadd.f32 %v4790_v4, %v3395_v1  ;;  %v4745_v29 = vpop.f32.mrf.mxu1  ;;  %v3033_v35 = vadd.f32 %v5950_v2, %v2663_v33  ;;  %v3034_v1 = vadd.f32 %v5958_v28, %v2664_v9  ;;  %v2662_v54 = vadd.f32 %v5960_v21, %v5850_v7 }
 0x1e4   : > { %v3888_v25 = vadd.f32 %v3887_v45, %v3761_v62  ;;  %v3957_v32 = vadd.f32 %v3956_v16, %v3926_v49  ;;  %v3762_v57 = vadd.f32 %v3649_v56, %v3393_v13  ;;  %v3398_v39 = vadd.f32 %v4745_v29, %v3029_v52  ;;  %v3662_v48 = vpop.f32.mrf.mxu0 }
 0x1e5   : > { %3860 = vst [vmem:[%s6042_s25 + $0x38] sm:$0xff] %v3764_v18  ;;  %v3293_v19 = vpop.f32.mrf.mxu1  ;;  %v3930_v4 = vmul.f32 %v3764_v18, %v3764_v18  ;;  %v3031_v62 = vadd.f32 %v5954_v6, %v2661_v41  ;;  %v2667_v56 = vadd.f32 %v5964_v43, %v5853_v15 }
 0x1e6   : > { %v3958_v63 = vadd.f32 %v3957_v32, %v3927_v50  ;;  %3858 = vst [vmem:[%s6042_s25 + $0x28] sm:$0xff] %v3762_v57  ;;  %v3889_v36 = vadd.f32 %v3888_v25, %v3762_v57  ;;  %v3928_v46 = vmul.f32 %v3762_v57, %v3762_v57  ;;  %v3767_v30 = vadd.f32 %v4793_v5, %v3398_v39  ;;  %v4794_v24 = vpop.f32.mrf.mxu0  ;;  %v6218_v57 = vld [vmem:[#allocation4_spill] sm:$0xff]  ;;  %v6219_v39 = vld [vmem:[#allocation19_spill] sm:$0xff] }
 0x1e7   : > { %v3396_v53 = vadd.f32 %v3293_v19, %v3027_v55  ;;  %v4746_v47 = vpop.f32.mrf.mxu1  ;;  %v2665_v50 = vadd.f32 %v5968_v34, %v5856_v12  ;;  %v3032_v25 = vadd.f32 %v5962_v17, %v2662_v54  ;;  %v3037_v32 = vadd.f32 %v5966_v58, %v2667_v56  ;;  %v6229_v56 = vld [vmem:[#allocation8_spill] sm:$0xff] }
 0x1e8   : > { %v3890_v22 = vadd.f32 %v3889_v36, %v3763_v51  ;;  %v3959_v60 = vadd.f32 %v3958_v63, %v3928_v46  ;;  %3863 = vst [vmem:[%s6042_s25 + $0x50] sm:$0xff] %v3767_v30  ;;  %v3399_v37 = vadd.f32 %v4746_v47, %v3030_v0  ;;  %v3665_v8 = vpop.f32.mrf.mxu0  ;;  %v2668_v55 = vadd.f32 %v6219_v39, %v6218_v57  ;;  %v6220_v36 = vld [vmem:[#allocation18_spill] sm:$0xff]  ;;  %v6233_v57 = vld [vmem:[#allocation28_spill] sm:$0xff] }
 0x1e9   : > { %v3765_v44 = vadd.f32 %v3662_v48, %v3396_v53  ;;  %v3296_v59 = vpop.f32.mrf.mxu1  ;;  %v3035_v46 = vadd.f32 %v6220_v36, %v2665_v50 }
 0x1ea   : > { %v3960_v61 = vadd.f32 %v3959_v60, %v3929_v14  ;;  %v3891_v10 = vadd.f32 %v3890_v22, %v3764_v18  ;;  %v3768_v11 = vadd.f32 %v4794_v24, %v3399_v37  ;;  %v3397_v20 = vadd.f32 %v3296_v59, %v3028_v40  ;;  %v4797_v52 = vpop.f32.mrf.mxu0  ;;  %v6222_v40 = vld [vmem:[#allocation21_spill] sm:$0xff]  ;;  %v6223_v22 = vld [vmem:[#allocation20_spill] sm:$0xff]  ;;  %v6225_v59 = vld [vmem:[#allocation23_spill] sm:$0xff] }
 0x1eb   : > { %3861 = vst [vmem:[%s6042_s25 + $0x40] sm:$0xff] %v3765_v44  ;;  %v4749_v51 = vpop.f32.mrf.mxu1  ;;  %v3931_v26 = vmul.f32 %v3765_v44, %v3765_v44  ;;  %v3933_v18 = vmul.f32 %v3767_v30, %v3767_v30  ;;  %v3038_v60 = vadd.f32 %v6223_v22, %v2668_v55 }
 0x1ec   : > { %v3892_v42 = vadd.f32 %v3891_v10, %v3765_v44  ;;  %v3961_v3 = vadd.f32 %v3960_v61, %v3930_v4  ;;  %3864 = vst [vmem:[%s6042_s25 + $0x58] sm:$0xff] %v3768_v11  ;;  %v3766_v23 = vadd.f32 %v3665_v8, %v3397_v20  ;;  %v3402_v2 = vadd.f32 %v4749_v51, %v3033_v35  ;;  %v3678_v6 = vpop.f32.mrf.mxu0  ;;  %v6224_v44 = vld [vmem:[#allocation6_spill] sm:$0xff] }
 0x1ed   : > { %v3309_v49 = vpop.f32.mrf.mxu1  ;;  %v3934_v34 = vmul.f32 %v3768_v11, %v3768_v11  ;;  %v2671_v8 = vadd.f32 %v6225_v59, %v6224_v44  ;;  %v6239_v44 = vld [vmem:[#allocation12_spill] sm:$0xff]  ;;  %v6240_v59 = vld [vmem:[#allocation33_spill] sm:$0xff] }
 0x1ee   : > { %v3962_v16 = vadd.f32 %v3961_v3, %v3931_v26  ;;  %3862 = vst [vmem:[%s6042_s25 + $0x48] sm:$0xff] %v3766_v23  ;;  %v3893_v45 = vadd.f32 %v3892_v42, %v3766_v23  ;;  %v3932_v13 = vmul.f32 %v3766_v23, %v3766_v23  ;;  %v3400_v27 = vadd.f32 %v3309_v49, %v3031_v62  ;;  %v4798_v7 = vpop.f32.mrf.mxu0  ;;  %v6227_v26 = vld [vmem:[#allocation7_spill] sm:$0xff]  ;;  %v6228_v3 = vld [vmem:[#allocation25_spill] sm:$0xff] }
 0x1ef   : > { %v3771_v28 = vadd.f32 %v4797_v52, %v3402_v2  ;;  %v4750_v29 = vpop.f32.mrf.mxu1  ;;  %v6226_v52 = vld [vmem:[#allocation22_spill] sm:$0xff]  ;;  %v2669_v23 = vadd.f32 %v6228_v3, %v6227_v26  ;;  %v2672_v2 = vadd.f32 %v5988_v38, %v6229_v56  ;;  %v6232_v38 = vld [vmem:[#allocation9_spill] sm:$0xff]  ;;  %v6242_v56 = vld [vmem:[#allocation32_spill] sm:$0xff] }
 0x1f0   : > { %v3894_v21 = vadd.f32 %v3893_v45, %v3767_v30  ;;  %v3963_v5 = vadd.f32 %v3962_v16, %v3932_v13  ;;  %v3769_v15 = vadd.f32 %v3678_v6, %v3400_v27  ;;  %v3403_v43 = vadd.f32 %v4750_v29, %v3034_v1  ;;  %v3681_v12 = vpop.f32.mrf.mxu0  ;;  %v6221_v30 = vld [vmem:[#allocation5_spill] sm:$0xff]  ;;  %v6230_v27 = vld [vmem:[#allocation24_spill] sm:$0xff] }
 0x1f1   : > { %3867 = vst [vmem:[%s6042_s25 + $0x70] sm:$0xff] %v3771_v28  ;;  %v3312_v0 = vpop.f32.mrf.mxu1  ;;  %v2666_v33 = vadd.f32 %v6222_v40, %v6221_v30  ;;  %v3937_v49 = vmul.f32 %v3771_v28, %v3771_v28  ;;  %v3041_v50 = vadd.f32 %v6230_v27, %v2671_v8  ;;  %v2670_v39 = vadd.f32 %v6233_v57, %v6232_v38  ;;  %v6235_v30 = vld [vmem:[#allocation10_spill] sm:$0xff] }
 0x1f2   : > { %v3964_v19 = vadd.f32 %v3963_v5, %v3933_v18  ;;  %3865 = vst [vmem:[%s6042_s25 + $0x60] sm:$0xff] %v3769_v15  ;;  %v3895_v48 = vadd.f32 %v3894_v21, %v3768_v11  ;;  %v3772_v63 = vadd.f32 %v4798_v7, %v3403_v43  ;;  %v3401_v17 = vadd.f32 %v3312_v0, %v3032_v25  ;;  %v4801_v41 = vpop.f32.mrf.mxu0  ;;  %v6231_v25 = vld [vmem:[#allocation26_spill] sm:$0xff]  ;;  %v6234_v0 = vld [vmem:[#allocation27_spill] sm:$0xff] }
 0x1f3   : > { %v4753_v58 = vpop.f32.mrf.mxu1  ;;  %v3935_v47 = vmul.f32 %v3769_v15, %v3769_v15  ;;  %v3036_v42 = vadd.f32 %v6226_v52, %v2666_v33  ;;  %v2676_v8 = vadd.f32 %v6240_v59, %v6239_v44 }
 0x1f4   : > { %v3896_v53 = vadd.f32 %v3895_v48, %v3769_v15  ;;  %v3965_v24 = vadd.f32 %v3964_v19, %v3934_v34  ;;  %3868 = vst [vmem:[%s6042_s25 + $0x78] sm:$0xff] %v3772_v63  ;;  %v3406_v14 = vadd.f32 %v4753_v58, %v3037_v32  ;;  %v3770_v37 = vadd.f32 %v3681_v12, %v3401_v17  ;;  %v3694_v4 = vpop.f32.mrf.mxu0 }
 0x1f5   : > { %v3325_v9 = vpop.f32.mrf.mxu1  ;;  %v3938_v7 = vmul.f32 %v3772_v63, %v3772_v63  ;;  %v3039_v32 = vadd.f32 %v6231_v25, %v2669_v23  ;;  %v3042_v12 = vadd.f32 %v6234_v0, %v2672_v2  ;;  %v6248_v0 = vld [vmem:[#allocation36_spill] sm:$0xff] }
 0x1f6   : > { %v3966_v61 = vadd.f32 %v3965_v24, %v3935_v47  ;;  %v3775_v10 = vadd.f32 %v4801_v41, %v3406_v14  ;;  %v3404_v11 = vadd.f32 %v3325_v9, %v3035_v46  ;;  %3866 = vst [vmem:[%s6042_s25 + $0x68] sm:$0xff] %v3770_v37  ;;  %v3897_v20 = vadd.f32 %v3896_v53, %v3770_v37  ;;  %v4802_v51 = vpop.f32.mrf.mxu0  ;;  %v6237_v14 = vld [vmem:[#allocation29_spill] sm:$0xff] }
 0x1f7   : > { %v3936_v35 = vmul.f32 %v3770_v37, %v3770_v37  ;;  %v4754_v62 = vpop.f32.mrf.mxu1  ;;  %v3040_v22 = vadd.f32 %v6237_v14, %v2670_v39 }
 0x1f8   : > { %3871 = vst [vmem:[%s6042_s25 + $0x90] sm:$0xff] %v3775_v10  ;;  %v3773_v1 = vadd.f32 %v3694_v4, %v3404_v11  ;;  %v3407_v54 = vadd.f32 %v4754_v62, %v3038_v60  ;;  %v3898_v6 = vadd.f32 %v3897_v20, %v3771_v28  ;;  %v3697_v13 = vpop.f32.mrf.mxu0  ;;  %v6238_v60 = vld [vmem:[#allocation11_spill] sm:$0xff] }
 0x1f9   : > { %v3967_v16 = vadd.f32 %v3966_v61, %v3936_v35  ;;  %v3328_v45 = vpop.f32.mrf.mxu1  ;;  %v2673_v37 = vadd.f32 %v6000_v31, %v6238_v60  ;;  %v3941_v61 = vmul.f32 %v3775_v10, %v3775_v10 }
 0x1fa   : > { %3869 = vst [vmem:[%s6042_s25 + $0x80] sm:$0xff] %v3773_v1  ;;  %v3776_v18 = vadd.f32 %v4802_v51, %v3407_v54  ;;  %v3405_v29 = vadd.f32 %v3328_v45, %v3036_v42  ;;  %v3899_v5 = vadd.f32 %v3898_v6, %v3772_v63  ;;  %v4805_v43 = vpop.f32.mrf.mxu0  ;;  %v3939_v19 = vmul.f32 %v3773_v1, %v3773_v1  ;;  %v6236_v63 = vld [vmem:[#allocation30_spill] sm:$0xff]  ;;  %v6241_v51 = vld [vmem:[#allocation31_spill] sm:$0xff] }
 0x1fb   : > { %v3968_v21 = vadd.f32 %v3967_v16, %v3937_v49  ;;  %v4757_v15 = vpop.f32.mrf.mxu1  ;;  %v2675_v40 = vadd.f32 %v6236_v63, %v6235_v30  ;;  %v3043_v2 = vadd.f32 %v6242_v56, %v2673_v37  ;;  %v6243_v49 = vld [vmem:[#allocation13_spill] sm:$0xff]  ;;  %v6244_v6 = vld [vmem:[#allocation35_spill] sm:$0xff] }
 0x1fc   : > { %3872 = vst [vmem:[%s6042_s25 + $0x98] sm:$0xff] %v3776_v18  ;;  %v3774_v28 = vadd.f32 %v3697_v13, %v3405_v29  ;;  %v3410_v55 = vadd.f32 %v4757_v15, %v3041_v50  ;;  %v3900_v34 = vadd.f32 %v3899_v5, %v3773_v1  ;;  %v3710_v46 = vpop.f32.mrf.mxu0  ;;  %v3942_v3 = vmul.f32 %v3776_v18, %v3776_v18  ;;  %v6245_v13 = vld [vmem:[#allocation34_spill] sm:$0xff] }
 0x1fd   : > { %v3969_v48 = vadd.f32 %v3968_v21, %v3938_v7  ;;  %v3341_v36 = vpop.f32.mrf.mxu1  ;;  %v3045_v52 = vadd.f32 %v6241_v51, %v2675_v40  ;;  %v2674_v16 = vadd.f32 %v6244_v6, %v6243_v49  ;;  %v3046_v27 = vadd.f32 %v6245_v13, %v2676_v8  ;;  %v6246_v15 = vld [vmem:[#allocation14_spill] sm:$0xff]  ;;  %v6254_v8 = vld [vmem:[#allocation40_spill] sm:$0xff] }
 0x1fe   : > { %3870 = vst [vmem:[%s6042_s25 + $0x88] sm:$0xff] %v3774_v28  ;;  %v3940_v33 = vmul.f32 %v3774_v28, %v3774_v28  ;;  %v3779_v17 = vadd.f32 %v4805_v43, %v3410_v55  ;;  %v3408_v58 = vadd.f32 %v3341_v36, %v3039_v32  ;;  %v3901_v53 = vadd.f32 %v3900_v34, %v3774_v28  ;;  %v4806_v24 = vpop.f32.mrf.mxu0  ;;  %v6249_v34 = vld [vmem:[#allocation15_spill] sm:$0xff] }
 0x1ff   : > { %v3970_v41 = vadd.f32 %v3969_v48, %v3939_v19  ;;  %v4758_v47 = vpop.f32.mrf.mxu1  ;;  %v6250_v19 = vld [vmem:[#allocation39_spill] sm:$0xff] }
 0x200   : > { %3875 = vst [vmem:[%s6042_s25 + $0xb0] sm:$0xff] %v3779_v17  ;;  %v3777_v9 = vadd.f32 %v3710_v46, %v3408_v58  ;;  %v3411_v4 = vadd.f32 %v4758_v47, %v3042_v12  ;;  %v3902_v11 = vadd.f32 %v3901_v53, %v3775_v10  ;;  %v3713_v62 = vpop.f32.mrf.mxu0  ;;  %v3044_v12 = vadd.f32 %v6248_v0, %v2674_v16  ;;  %v6252_v47 = vld [vmem:[#allocation16_spill] sm:$0xff] }
 0x201   : > { %v3971_v20 = vadd.f32 %v3970_v41, %v3940_v33  ;;  %v3344_v35 = vpop.f32.mrf.mxu1  ;;  %v2677_v48 = vadd.f32 %v6250_v19, %v6249_v34  ;;  %v3945_v30 = vmul.f32 %v3779_v17, %v3779_v17  ;;  %v6251_v41 = vld [vmem:[#allocation38_spill] sm:$0xff] }
 0x202   : > { %3873 = vst [vmem:[%s6042_s25 + $0xa0] sm:$0xff] %v3777_v9  ;;  %v3780_v42 = vadd.f32 %v4806_v24, %v3411_v4  ;;  %v3409_v26 = vadd.f32 %v3344_v35, %v3040_v22  ;;  %v3903_v31 = vadd.f32 %v3902_v11, %v3776_v18  ;;  %v4809_v54 = vpop.f32.mrf.mxu0  ;;  %v3943_v29 = vmul.f32 %v3777_v9, %v3777_v9  ;;  %v6247_v18 = vld [vmem:[#allocation37_spill] sm:$0xff]  ;;  %v6256_v11 = vld [vmem:[#allocation43_spill] sm:$0xff] }
 0x203   : > { %v3972_v23 = vadd.f32 %v3971_v20, %v3941_v61  ;;  %v4761_v1 = vpop.f32.mrf.mxu1  ;;  %v2679_v43 = vadd.f32 %v6247_v18, %v6246_v15  ;;  %v6253_v24 = vld [vmem:[#allocation41_spill] sm:$0xff] }
 0x204   : > { %3876 = vst [vmem:[%s6042_s25 + $0xb8] sm:$0xff] %v3780_v42  ;;  %v3778_v10 = vadd.f32 %v3713_v62, %v3409_v26  ;;  %v3414_v45 = vadd.f32 %v4761_v1, %v3045_v52  ;;  %v3904_v50 = vadd.f32 %v3903_v31, %v3777_v9  ;;  %v3726_v5 = vpop.f32.mrf.mxu0  ;;  %v2680_v14 = vadd.f32 %v6253_v24, %v6252_v47  ;;  %v6255_v61 = vld [vmem:[#allocation17_spill] sm:$0xff]  ;;  %v6257_v31 = vld [vmem:[#allocation42_spill] sm:$0xff] }
 0x205   : > { %v3973_v7 = vadd.f32 %v3972_v23, %v3942_v3  ;;  %v3357_v21 = vpop.f32.mrf.mxu1  ;;  %v3049_v53 = vadd.f32 %v6251_v41, %v2679_v43  ;;  %v3946_v37 = vmul.f32 %v3780_v42, %v3780_v42  ;;  %v2678_v20 = vadd.f32 %v6256_v11, %v6255_v61 }
 0x206   : > { %3874 = vst [vmem:[%s6042_s25 + $0xa8] sm:$0xff] %v3778_v10  ;;  %v3944_v25 = vmul.f32 %v3778_v10, %v3778_v10  ;;  %v3783_v32 = vadd.f32 %v4809_v54, %v3414_v45  ;;  %v3412_v38 = vadd.f32 %v3357_v21, %v3043_v2  ;;  %v3905_v39 = vadd.f32 %v3904_v50, %v3778_v10  ;;  %v4810_v55 = vpop.f32.mrf.mxu0  ;;  %v6258_v10 = vld [vmem:[#allocation44_spill] sm:$0xff] }
 0x207   : > { %v3974_v57 = vadd.f32 %v3973_v7, %v3943_v29  ;;  %v4762_v28 = vpop.f32.mrf.mxu1  ;;  %v3050_v1 = vadd.f32 %v6257_v31, %v2680_v14  ;;  %v3048_v45 = vadd.f32 %v6258_v10, %v2678_v20 }
 0x208   : > { %3879 = vst [vmem:[%s6042_s25 + $0xd0] sm:$0xff] %v3783_v32  ;;  %v3781_v36 = vadd.f32 %v3726_v5, %v3412_v38  ;;  %v3415_v46 = vadd.f32 %v4762_v28, %v3046_v27  ;;  %v3906_v63 = vadd.f32 %v3905_v39, %v3779_v17  ;;  %v3729_v58 = vpop.f32.mrf.mxu0  ;;  %v3047_v17 = vadd.f32 %v6254_v8, %v2677_v48 }
 0x209   : > { %v3975_v40 = vadd.f32 %v3974_v57, %v3944_v25  ;;  %v3360_v33 = vpop.f32.mrf.mxu1  ;;  %v3949_v50 = vmul.f32 %v3783_v32, %v3783_v32 }
 0x20a   : > { %3877 = vst [vmem:[%s6042_s25 + $0xc0] sm:$0xff] %v3781_v36  ;;  %v3784_v22 = vadd.f32 %v4810_v55, %v3415_v46  ;;  %v3413_v60 = vadd.f32 %v3360_v33, %v3044_v12  ;;  %v3907_v4 = vadd.f32 %v3906_v63, %v3780_v42  ;;  %v4813_v59 = vpop.f32.mrf.mxu0  ;;  %v3947_v52 = vmul.f32 %v3781_v36, %v3781_v36 }
 0x20b   : > { %v3976_v9 = vadd.f32 %v3975_v40, %v3945_v30  ;;  %v4765_v44 = vpop.f32.mrf.mxu1 }
 0x20c   : > { %3880 = vst [vmem:[%s6042_s25 + $0xd8] sm:$0xff] %v3784_v22  ;;  %v3782_v35 = vadd.f32 %v3729_v58, %v3413_v60  ;;  %v3418_v62 = vadd.f32 %v4765_v44, %v3049_v53  ;;  %v3908_v51 = vadd.f32 %v3907_v4, %v3781_v36  ;;  %v3742_v23 = vpop.f32.mrf.mxu0  ;;  %v3950_v18 = vmul.f32 %v3784_v22, %v3784_v22 }
 0x20d   : > { %v3977_v26 = vadd.f32 %v3976_v9, %v3946_v37  ;;  %v3373_v3 = vpop.f32.mrf.mxu1 }
 0x20e   : > { %3878 = vst [vmem:[%s6042_s25 + $0xc8] sm:$0xff] %v3782_v35  ;;  %v3948_v42 = vmul.f32 %v3782_v35, %v3782_v35  ;;  %v3787_v54 = vadd.f32 %v4813_v59, %v3418_v62  ;;  %v3416_v56 = vadd.f32 %v3373_v3, %v3047_v17  ;;  %v3909_v49 = vadd.f32 %v3908_v51, %v3782_v35  ;;  %v4814_v16 = vpop.f32.mrf.mxu0 }
 0x20f   : > { %v3978_v2 = vadd.f32 %v3977_v26, %v3947_v52  ;;  %v4766_v6 = vpop.f32.mrf.mxu1 }
 0x210   : > { %3883 = vst [vmem:[%s6042_s25 + $0xf0] sm:$0xff] %v3787_v54  ;;  %v3785_v13 = vadd.f32 %v3742_v23, %v3416_v56  ;;  %v3419_v27 = vadd.f32 %v4766_v6, %v3050_v1  ;;  %v3910_v29 = vadd.f32 %v3909_v49, %v3783_v32  ;;  %v3745_v38 = vpop.f32.mrf.mxu0  ;;  %v3953_v32 = vmul.f32 %v3787_v54, %v3787_v54 }
 0x211   : > { %v3979_v7 = vadd.f32 %v3978_v2, %v3948_v42  ;;  %v3376_v21 = vpop.f32.mrf.mxu1 }
 0x212   : > { %3881 = vst [vmem:[%s6042_s25 + $0xe0] sm:$0xff] %v3785_v13  ;;  %v3788_v5 = vadd.f32 %v4814_v16, %v3419_v27  ;;  %v3417_v15 = vadd.f32 %v3376_v21, %v3048_v45  ;;  %v3911_v25 = vadd.f32 %v3910_v29, %v3784_v22  ;;  %v3951_v28 = vmul.f32 %v3785_v13, %v3785_v13 }
 0x213   : > { %v3980_v43 = vadd.f32 %v3979_v7, %v3949_v50 }
 0x214   : > { %3884 = vst [vmem:[%s6042_s25 + $0xf8] sm:$0xff] %v3788_v5  ;;  %v3786_v57 = vadd.f32 %v3745_v38, %v3417_v15  ;;  %v3912_v39 = vadd.f32 %v3911_v25, %v3785_v13  ;;  %v3954_v36 = vmul.f32 %v3788_v5, %v3788_v5 }
 0x215   : > { %v3981_v55 = vadd.f32 %v3980_v43, %v3950_v18 }
 0x216   : > { %3882 = vst [vmem:[%s6042_s25 + $0xe8] sm:$0xff] %v3786_v57  ;;  %v3952_v0 = vmul.f32 %v3786_v57, %v3786_v57  ;;  %v3913_v34 = vadd.f32 %v3912_v39, %v3786_v57 }
 0x217   : > { %v3982_v12 = vadd.f32 %v3981_v55, %v3951_v28 }
 0x218   : > { %v3914_v19 = vadd.f32 %v3913_v34, %v3787_v54 }
 0x219   : > { %v3983_v48 = vadd.f32 %v3982_v12, %v3952_v0 }
 0x21a   : > { %v3915_v46 = vadd.f32 %v3914_v19, %v3788_v5 }
 0x21b   : > { %v3984_v30 = vadd.f32 %v3983_v48, %v3953_v32 }
 0x21c   : > { %v3916_v63 = vrot.slane %v3915_v46, 4 }
 0x21d   : > { %v3985_v40 = vadd.f32 %v3984_v30, %v3954_v36 }
 0x21e   : > { %v3917_v33 = vadd.f32 %v3916_v63, %v3915_v46 }
 0x21f   : > { %v3986_v58 = vrot.slane %v3985_v40, 4 }
 0x220   : > { %v3918_v41 = vrot.slane %v3917_v33, 2 }
 0x221   : > { %v3987_v53 = vadd.f32 %v3986_v58, %v3985_v40 }
 0x222   : > { %v3919_v47 = vadd.f32 %v3918_v41, %v3917_v33 }
 0x223   : > { %v3988_v24 = vrot.slane %v3987_v53, 2 }
 0x224   : > { %v3920_v14 = vrot.slane %v3919_v47, 1 }
 0x225   : > { %v3989_v22 = vadd.f32 %v3988_v24, %v3987_v53 }
 0x226   : > { %v3921_v60 = vadd.f32 %v3920_v14, %v3919_v47 }
 0x227   : > { %v3990_v37 = vrot.slane %v3989_v22, 1 }
 0x228   : > { %3922 = vst [vmem:[%s236_s28] sm:$0x1] %v3921_v60 }
 0x229   : > { %v3991_v9 = vadd.f32 %v3990_v37, %v3989_v22 }
 0x22b   : > { %3992 = vst [vmem:[%s236_s28 + $0x1] sm:$0x1] %v3991_v9 }
 0x22c PF: > { %s16_s18 = sadd.s32 1, %s4919_s18  }
 0x22d   : > { %p13_p5 = scmp.ge.s32.totalorder %s16_s18, 4  }
 0x22f   :  { %15 = sbr.rel (!%p13_p5) target bundleno = 1 (0x1), region = 80 }

</bundles_post_ra>
